<compile_context>
chip_gen: v7x
topology: tpu7x:2x2x1
jax: 0.10.0
libtpu: 0.0.40
codegen_flags: <defaults>
</compile_context>

<pallas_src>
import jax
import jax.numpy as jnp
from jax import lax
from jax.experimental import pallas as pl
from jax.experimental.pallas import tpu as pltpu


def residual_stack_kernel(x_ref, w3_ref, w1_ref, o_ref, hp_ref, col_ref):
    # x_ref:   (m_blk, C)          m_blk = nb*H*W rows of NHWC activations (f32)
    # w3_ref:  (L, 9*C, Cres)      bf16 3x3 conv weights, (dy,dx,cin) -> K = 9*C
    # w1_ref:  (L, Cres, C)        bf16 1x1 conv weights (in, out)
    # o_ref:   (m_blk, C)          f32 output
    # hp_ref:  (nb, H+2, W+2, C)   f32 zero-halo scratch (VMEM, persistent)
    # col_ref: (m_blk, 9*C)        bf16 im2col patch matrix scratch (VMEM)
    nb, hp2, wp2, C = hp_ref.shape
    H, W = hp2 - 2, wp2 - 2
    M = nb * H * W
    L = w3_ref.shape[0]

    # Zero only the 1-px border strips (O(H+W) stores instead of O(H*W));
    # the interior is overwritten every layer.  Re-done each grid step on
    # purpose -- see header note about per-core scratch under "parallel".
    hp_ref[:, 0:1, :, :] = jnp.zeros((nb, 1, wp2, C), jnp.float32)
    hp_ref[:, H + 1:H + 2, :, :] = jnp.zeros((nb, 1, wp2, C), jnp.float32)
    hp_ref[:, :, 0:1, :] = jnp.zeros((nb, hp2, 1, C), jnp.float32)
    hp_ref[:, :, W + 1:W + 2, :] = jnp.zeros((nb, hp2, 1, C), jnp.float32)

    # Residual stream carried in registers (f32).
    x = x_ref[...].astype(jnp.float32)                          # (M, C)

    for l in range(L):  # L is small -> static unroll is fine
        # ReLU -> write only the interior of the persistent halo scratch.
        hp_ref[:, 1:H + 1, 1:W + 1, :] = (
            jnp.maximum(x, 0.0).reshape(nb, H, W, C))

        # im2col: 9 shifted halo windows -> (M, 9*C) bf16 patch matrix.
        for tap in range(9):
            dy, dx = tap // 3, tap % 3
            win = hp_ref[:, dy:dy + H, dx:dx + W, :]            # (nb, H, W, C)
            col_ref[:, tap * C:(tap + 1) * C] = (
                win.reshape(M, C).astype(jnp.bfloat16))

        # conv3x3 (no bias): ONE bf16 MXU matmul, K = 9*C, f32 accumulation.
        h = jnp.dot(col_ref[...], w3_ref[l],
                    preferred_element_type=jnp.float32)         # (M, Cres)

        # ReLU -> conv1x1 (no bias, bf16 inputs) -> residual add (f32).
        y = jnp.dot(jnp.maximum(h, 0.0).astype(jnp.bfloat16), w1_ref[l],
                    preferred_element_type=jnp.float32)         # (M, C)
        x = x + y

    # final F.relu
    o_ref[...] = jnp.maximum(x, 0.0).astype(o_ref.dtype)


def _choose_images_per_block(N, H, W, target_rows=512):
    """Images per grid block: prefer >= 2 grid steps (pipelining + both v7x
    TensorCores) while keeping the matmul M dim at <= target_rows rows."""
    divisors = [d for d in range(1, N + 1) if N % d == 0]
    good = [d for d in divisors if N // d >= 2 and d * H * W <= target_rows]
    if good:
        return max(good)
    fit = [d for d in divisors if d * H * W <= target_rows]
    return max(fit) if fit else 1


def residual_stack(x_nchw, w3, w1):
    """x_nchw: (N, C, H, W) float32 (PyTorch layout).
       w3: (L, 3, 3, C, Cres) HWIO per layer, w1: (L, Cres, C)."""
    N, C, H, W = x_nchw.shape
    L, _, _, _, Cres = w3.shape

    # NCHW -> NHWC -> (N*H*W, C).  Boundary relayouts live outside the kernel;
    # in a full NHWC model they would disappear entirely.
    x = jnp.transpose(x_nchw, (0, 2, 3, 1)).reshape(N * H * W, C)
    # Collapse (dy, dx, cin) -> K = 9*C, matching the im2col column order.
    # Matmul inputs are bf16; accumulation stays f32 inside the kernel.
    w3_flat = w3.reshape(L, 9 * C, Cres).astype(jnp.bfloat16)
    w1_bf16 = w1.astype(jnp.bfloat16)

    nb = _choose_images_per_block(N, H, W)
    m_blk = nb * H * W
    grid = (N // nb,)
    # TODO(synk): for very large images strip-tile H (1-row halo) instead of
    # whole images per block.

    # Explicit VMEM budget (sized against v7x's 64 MiB physical VMEM):
    # double-buffered x/out blocks + resident weights + halo + im2col scratch.
    needed = (2 * 2 * m_blk * C * 4                         # x, out (f32, 2-deep)
              + 2 * (L * 9 * C * Cres + L * Cres * C) * 2   # weights (bf16, 2-deep)
              + nb * (H + 2) * (W + 2) * C * 4              # halo scratch (f32)
              + m_blk * 9 * C * 2)                          # im2col scratch (bf16)
    vmem_limit = min(48 * 1024 * 1024, max(32 * 1024 * 1024, 4 * needed))

    out = pl.pallas_call(
        residual_stack_kernel,
        out_shape=jax.ShapeDtypeStruct((N * H * W, C), x.dtype),
        grid_spec=pltpu.PrefetchScalarGridSpec(
            num_scalar_prefetch=0,
            grid=grid,
            in_specs=[
                pl.BlockSpec((m_blk, C), lambda g: (g, 0)),
                pl.BlockSpec((L, 9 * C, Cres), lambda g: (0, 0, 0)),
                pl.BlockSpec((L, Cres, C), lambda g: (0, 0, 0)),
            ],
            out_specs=pl.BlockSpec((m_blk, C), lambda g: (g, 0)),
            scratch_shapes=[
                pltpu.VMEM((nb, H + 2, W + 2, C), jnp.float32),   # halo buffer
                pltpu.VMEM((m_blk, 9 * C), jnp.bfloat16),         # im2col matrix
            ],
        ),
        compiler_params=pltpu.CompilerParams(
            dimension_semantics=("parallel",),
            vmem_limit_bytes=vmem_limit),
    )(x, w3_flat, w1_bf16)

    return jnp.transpose(out.reshape(N, H, W, C), (0, 3, 1, 2))  # -> NCHW


def reference_forward(x_nchw, w3, w1):
    """Pure-JAX f32 reference mirroring the PyTorch ResidualStack forward."""
    L = w3.shape[0]
    x = jnp.transpose(x_nchw, (0, 2, 3, 1))  # NHWC
    for l in range(L):
        h = jax.nn.relu(x)
        y1 = lax.conv_general_dilated(
            h, w3[l], window_strides=(1, 1), padding="SAME",
            dimension_numbers=("NHWC", "HWIO", "NHWC"))
        h2 = jax.nn.relu(y1)
        y2 = jnp.einsum("nhwc,co->nhwo", h2, w1[l])
        x = x + y2
    return jnp.transpose(jax.nn.relu(x), (0, 3, 1, 2))


if __name__ == "__main__":
    # Module hyperparameters (residual add requires in_channels == num_hiddens)
    batch = 2
    in_channels = 16          # == num_hiddens
    num_hiddens = 16
    num_residual_layers = 2
    num_residual_hiddens = 8
    H = Wd = 16               # N*H*W = 512 -> 2 grid blocks of 256 MXU rows

    key = jax.random.PRNGKey(0)
    kx, k3, k1 = jax.random.split(key, 3)

    x = jax.random.normal(kx, (batch, in_channels, H, Wd), dtype=jnp.float32)
    # conv3x3 weights per layer, HWIO: (L, 3, 3, Cin, Cres)
    w3 = 0.1 * jax.random.normal(
        k3, (num_residual_layers, 3, 3, in_channels, num_residual_hiddens),
        dtype=jnp.float32)
    # conv1x1 weights per layer, (Cres_in, Chid_out): (L, Cres, Chid)
    w1 = 0.1 * jax.random.normal(
        k1, (num_residual_layers, num_residual_hiddens, num_hiddens),
        dtype=jnp.float32)

    out = residual_stack(x, w3, w1)
    out = jax.block_until_ready(out)

    ref = reference_forward(x, w3, w1)
    assert out.shape == (batch, num_hiddens, H, Wd)
    # Tolerance is bf16-matmul-input level (weights/activations fed to the MXU
    # in bf16, f32 accumulation); the f32-only debug path matched at 1e-5.
    assert jnp.allclose(out, ref, rtol=5e-2, atol=5e-2), (
        "max abs diff = %f" % float(jnp.max(jnp.abs(out - ref))))

    print("KERNEL_OK")
</pallas_src>

<mosaic_0001>
module attributes {stable_mosaic.version = 11 : i64} {
  func.func @residual_stack_kernel(%arg0: i32, %arg1: memref<256x16xf32, #tpu.memory_space<vmem>>, %arg2: memref<2x144x8xbf16, #tpu.memory_space<vmem>>, %arg3: memref<2x8x16xbf16, #tpu.memory_space<vmem>>, %arg4: memref<256x16xf32, #tpu.memory_space<vmem>>, %arg5: memref<1x18x18x16xf32, #tpu.memory_space<vmem>>, %arg6: memref<256x144xbf16, #tpu.memory_space<vmem>>) attributes {dimension_semantics = [#tpu.dimension_semantics<parallel>], iteration_bounds = array<i64: 2>, scalar_prefetch = 0 : i64, scratch_operands = 2 : i64, tpu.core_type = #tpu.core_type<tc>, window_params = [{transform_indices = @transform_0, window_bounds = array<i64: 256, 16>}, {pipeline_mode = #tpu.pipeline_mode<synchronous>, transform_indices = @transform_1, window_bounds = array<i64: 2, 144, 8>}, {pipeline_mode = #tpu.pipeline_mode<synchronous>, transform_indices = @transform_2, window_bounds = array<i64: 2, 8, 16>}, {transform_indices = @transform_3, window_bounds = array<i64: 256, 16>}]} {
    %cst = arith.constant 0.000000e+00 : f32
    %0 = vector.broadcast %cst : f32 to vector<1x1x18x16xf32>
    %c0 = arith.constant 0 : index
    %c0_0 = arith.constant 0 : index
    %c0_1 = arith.constant 0 : index
    %c0_2 = arith.constant 0 : index
    %1 = vector.load %arg5[%c0, %c0_0, %c0_1, %c0_2] : memref<1x18x18x16xf32, #tpu.memory_space<vmem>>, vector<1x1x18x16xf32>
    tpu.vector_store %arg5[%c0, %c0_0, %c0_1, %c0_2], %0 {strides = array<i32>} : memref<1x18x18x16xf32, #tpu.memory_space<vmem>>, vector<1x1x18x16xf32>,
    %cst_3 = arith.constant 0.000000e+00 : f32
    %2 = vector.broadcast %cst_3 : f32 to vector<1x1x18x16xf32>
    %c0_4 = arith.constant 0 : index
    %c17 = arith.constant 17 : index
    %c0_5 = arith.constant 0 : index
    %c0_6 = arith.constant 0 : index
    %3 = vector.load %arg5[%c0_4, %c17, %c0_5, %c0_6] : memref<1x18x18x16xf32, #tpu.memory_space<vmem>>, vector<1x1x18x16xf32>
    tpu.vector_store %arg5[%c0_4, %c17, %c0_5, %c0_6], %2 {strides = array<i32>} : memref<1x18x18x16xf32, #tpu.memory_space<vmem>>, vector<1x1x18x16xf32>,
    %cst_7 = arith.constant 0.000000e+00 : f32
    %4 = vector.broadcast %cst_7 : f32 to vector<1x18x1x16xf32>
    %c0_8 = arith.constant 0 : index
    %c0_9 = arith.constant 0 : index
    %c0_10 = arith.constant 0 : index
    %c0_11 = arith.constant 0 : index
    %5 = vector.load %arg5[%c0_8, %c0_9, %c0_10, %c0_11] : memref<1x18x18x16xf32, #tpu.memory_space<vmem>>, vector<1x18x1x16xf32>
    tpu.vector_store %arg5[%c0_8, %c0_9, %c0_10, %c0_11], %4 {strides = array<i32>} : memref<1x18x18x16xf32, #tpu.memory_space<vmem>>, vector<1x18x1x16xf32>,
    %cst_12 = arith.constant 0.000000e+00 : f32
    %6 = vector.broadcast %cst_12 : f32 to vector<1x18x1x16xf32>
    %c0_13 = arith.constant 0 : index
    %c0_14 = arith.constant 0 : index
    %c17_15 = arith.constant 17 : index
    %c0_16 = arith.constant 0 : index
    %7 = vector.load %arg5[%c0_13, %c0_14, %c17_15, %c0_16] : memref<1x18x18x16xf32, #tpu.memory_space<vmem>>, vector<1x18x1x16xf32>
    tpu.vector_store %arg5[%c0_13, %c0_14, %c17_15, %c0_16], %6 {strides = array<i32>} : memref<1x18x18x16xf32, #tpu.memory_space<vmem>>, vector<1x18x1x16xf32>,
    %c0_17 = arith.constant 0 : index
    %c0_18 = arith.constant 0 : index
    %8 = vector.load %arg1[%c0_17, %c0_18] : memref<256x16xf32, #tpu.memory_space<vmem>>, vector<256x16xf32>
    %cst_19 = arith.constant 0.000000e+00 : f32
    %9 = vector.broadcast %cst_19 : f32 to vector<256x16xf32>
    %10 = arith.maximumf %8, %9 : vector<256x16xf32>
    %11 = vector.shape_cast %10 : vector<256x16xf32> to vector<1x16x16x16xf32>
    %c0_20 = arith.constant 0 : index
    %c1 = arith.constant 1 : index
    %c1_21 = arith.constant 1 : index
    %c0_22 = arith.constant 0 : index
    %12 = vector.load %arg5[%c0_20, %c1, %c1_21, %c0_22] : memref<1x18x18x16xf32, #tpu.memory_space<vmem>>, vector<1x16x16x16xf32>
    tpu.vector_store %arg5[%c0_20, %c1, %c1_21, %c0_22], %11 {strides = array<i32>} : memref<1x18x18x16xf32, #tpu.memory_space<vmem>>, vector<1x16x16x16xf32>,
    %c0_23 = arith.constant 0 : index
    %c0_24 = arith.constant 0 : index
    %c0_25 = arith.constant 0 : index
    %c0_26 = arith.constant 0 : index
    %13 = vector.load %arg5[%c0_23, %c0_24, %c0_25, %c0_26] : memref<1x18x18x16xf32, #tpu.memory_space<vmem>>, vector<1x16x16x16xf32>
    %14 = vector.shape_cast %13 : vector<1x16x16x16xf32> to vector<256x16xf32>
    %15 = arith.truncf %14 : vector<256x16xf32> to vector<256x16xbf16>
    %c0_27 = arith.constant 0 : index
    %c0_28 = arith.constant 0 : index
    %16 = vector.load %arg6[%c0_27, %c0_28] : memref<256x144xbf16, #tpu.memory_space<vmem>>, vector<256x16xbf16>
    tpu.vector_store %arg6[%c0_27, %c0_28], %15 {strides = array<i32>} : memref<256x144xbf16, #tpu.memory_space<vmem>>, vector<256x16xbf16>,
    %c0_29 = arith.constant 0 : index
    %c0_30 = arith.constant 0 : index
    %c1_31 = arith.constant 1 : index
    %c0_32 = arith.constant 0 : index
    %17 = vector.load %arg5[%c0_29, %c0_30, %c1_31, %c0_32] : memref<1x18x18x16xf32, #tpu.memory_space<vmem>>, vector<1x16x16x16xf32>
    %18 = vector.shape_cast %17 : vector<1x16x16x16xf32> to vector<256x16xf32>
    %19 = arith.truncf %18 : vector<256x16xf32> to vector<256x16xbf16>
    %c0_33 = arith.constant 0 : index
    %c16 = arith.constant 16 : index
    %20 = vector.load %arg6[%c0_33, %c16] : memref<256x144xbf16, #tpu.memory_space<vmem>>, vector<256x16xbf16>
    tpu.vector_store %arg6[%c0_33, %c16], %19 {strides = array<i32>} : memref<256x144xbf16, #tpu.memory_space<vmem>>, vector<256x16xbf16>,
    %c0_34 = arith.constant 0 : index
    %c0_35 = arith.constant 0 : index
    %c2 = arith.constant 2 : index
    %c0_36 = arith.constant 0 : index
    %21 = vector.load %arg5[%c0_34, %c0_35, %c2, %c0_36] : memref<1x18x18x16xf32, #tpu.memory_space<vmem>>, vector<1x16x16x16xf32>
    %22 = vector.shape_cast %21 : vector<1x16x16x16xf32> to vector<256x16xf32>
    %23 = arith.truncf %22 : vector<256x16xf32> to vector<256x16xbf16>
    %c0_37 = arith.constant 0 : index
    %c32 = arith.constant 32 : index
    %24 = vector.load %arg6[%c0_37, %c32] : memref<256x144xbf16, #tpu.memory_space<vmem>>, vector<256x16xbf16>
    tpu.vector_store %arg6[%c0_37, %c32], %23 {strides = array<i32>} : memref<256x144xbf16, #tpu.memory_space<vmem>>, vector<256x16xbf16>,
    %c0_38 = arith.constant 0 : index
    %c1_39 = arith.constant 1 : index
    %c0_40 = arith.constant 0 : index
    %c0_41 = arith.constant 0 : index
    %25 = vector.load %arg5[%c0_38, %c1_39, %c0_40, %c0_41] : memref<1x18x18x16xf32, #tpu.memory_space<vmem>>, vector<1x16x16x16xf32>
    %26 = vector.shape_cast %25 : vector<1x16x16x16xf32> to vector<256x16xf32>
    %27 = arith.truncf %26 : vector<256x16xf32> to vector<256x16xbf16>
    %c0_42 = arith.constant 0 : index
    %c48 = arith.constant 48 : index
    %28 = vector.load %arg6[%c0_42, %c48] : memref<256x144xbf16, #tpu.memory_space<vmem>>, vector<256x16xbf16>
    tpu.vector_store %arg6[%c0_42, %c48], %27 {strides = array<i32>} : memref<256x144xbf16, #tpu.memory_space<vmem>>, vector<256x16xbf16>,
    %c0_43 = arith.constant 0 : index
    %c1_44 = arith.constant 1 : index
    %c1_45 = arith.constant 1 : index
    %c0_46 = arith.constant 0 : index
    %29 = vector.load %arg5[%c0_43, %c1_44, %c1_45, %c0_46] : memref<1x18x18x16xf32, #tpu.memory_space<vmem>>, vector<1x16x16x16xf32>
    %30 = vector.shape_cast %29 : vector<1x16x16x16xf32> to vector<256x16xf32>
    %31 = arith.truncf %30 : vector<256x16xf32> to vector<256x16xbf16>
    %c0_47 = arith.constant 0 : index
    %c64 = arith.constant 64 : index
    %32 = vector.load %arg6[%c0_47, %c64] : memref<256x144xbf16, #tpu.memory_space<vmem>>, vector<256x16xbf16>
    tpu.vector_store %arg6[%c0_47, %c64], %31 {strides = array<i32>} : memref<256x144xbf16, #tpu.memory_space<vmem>>, vector<256x16xbf16>,
    %c0_48 = arith.constant 0 : index
    %c1_49 = arith.constant 1 : index
    %c2_50 = arith.constant 2 : index
    %c0_51 = arith.constant 0 : index
    %33 = vector.load %arg5[%c0_48, %c1_49, %c2_50, %c0_51] : memref<1x18x18x16xf32, #tpu.memory_space<vmem>>, vector<1x16x16x16xf32>
    %34 = vector.shape_cast %33 : vector<1x16x16x16xf32> to vector<256x16xf32>
    %35 = arith.truncf %34 : vector<256x16xf32> to vector<256x16xbf16>
    %c0_52 = arith.constant 0 : index
    %c80 = arith.constant 80 : index
    %36 = vector.load %arg6[%c0_52, %c80] : memref<256x144xbf16, #tpu.memory_space<vmem>>, vector<256x16xbf16>
    tpu.vector_store %arg6[%c0_52, %c80], %35 {strides = array<i32>} : memref<256x144xbf16, #tpu.memory_space<vmem>>, vector<256x16xbf16>,
    %c0_53 = arith.constant 0 : index
    %c2_54 = arith.constant 2 : index
    %c0_55 = arith.constant 0 : index
    %c0_56 = arith.constant 0 : index
    %37 = vector.load %arg5[%c0_53, %c2_54, %c0_55, %c0_56] : memref<1x18x18x16xf32, #tpu.memory_space<vmem>>, vector<1x16x16x16xf32>
    %38 = vector.shape_cast %37 : vector<1x16x16x16xf32> to vector<256x16xf32>
    %39 = arith.truncf %38 : vector<256x16xf32> to vector<256x16xbf16>
    %c0_57 = arith.constant 0 : index
    %c96 = arith.constant 96 : index
    %40 = vector.load %arg6[%c0_57, %c96] : memref<256x144xbf16, #tpu.memory_space<vmem>>, vector<256x16xbf16>
    tpu.vector_store %arg6[%c0_57, %c96], %39 {strides = array<i32>} : memref<256x144xbf16, #tpu.memory_space<vmem>>, vector<256x16xbf16>,
    %c0_58 = arith.constant 0 : index
    %c2_59 = arith.constant 2 : index
    %c1_60 = arith.constant 1 : index
    %c0_61 = arith.constant 0 : index
    %41 = vector.load %arg5[%c0_58, %c2_59, %c1_60, %c0_61] : memref<1x18x18x16xf32, #tpu.memory_space<vmem>>, vector<1x16x16x16xf32>
    %42 = vector.shape_cast %41 : vector<1x16x16x16xf32> to vector<256x16xf32>
    %43 = arith.truncf %42 : vector<256x16xf32> to vector<256x16xbf16>
    %c0_62 = arith.constant 0 : index
    %c112 = arith.constant 112 : index
    %44 = vector.load %arg6[%c0_62, %c112] : memref<256x144xbf16, #tpu.memory_space<vmem>>, vector<256x16xbf16>
    tpu.vector_store %arg6[%c0_62, %c112], %43 {strides = array<i32>} : memref<256x144xbf16, #tpu.memory_space<vmem>>, vector<256x16xbf16>,
    %c0_63 = arith.constant 0 : index
    %c2_64 = arith.constant 2 : index
    %c2_65 = arith.constant 2 : index
    %c0_66 = arith.constant 0 : index
    %45 = vector.load %arg5[%c0_63, %c2_64, %c2_65, %c0_66] : memref<1x18x18x16xf32, #tpu.memory_space<vmem>>, vector<1x16x16x16xf32>
    %46 = vector.shape_cast %45 : vector<1x16x16x16xf32> to vector<256x16xf32>
    %47 = arith.truncf %46 : vector<256x16xf32> to vector<256x16xbf16>
    %c0_67 = arith.constant 0 : index
    %c128 = arith.constant 128 : index
    %48 = vector.load %arg6[%c0_67, %c128] : memref<256x144xbf16, #tpu.memory_space<vmem>>, vector<256x16xbf16>
    tpu.vector_store %arg6[%c0_67, %c128], %47 {strides = array<i32>} : memref<256x144xbf16, #tpu.memory_space<vmem>>, vector<256x16xbf16>,
    %c0_68 = arith.constant 0 : index
    %c0_69 = arith.constant 0 : index
    %49 = vector.load %arg6[%c0_68, %c0_69] : memref<256x144xbf16, #tpu.memory_space<vmem>>, vector<256x144xbf16>
    %c0_70 = arith.constant 0 : index
    %c0_71 = arith.constant 0 : index
    %c0_72 = arith.constant 0 : index
    %50 = vector.load %arg2[%c0_70, %c0_71, %c0_72] : memref<2x144x8xbf16, #tpu.memory_space<vmem>>, vector<1x144x8xbf16>
    %51 = vector.shape_cast %50 : vector<1x144x8xbf16> to vector<144x8xbf16>
    %cst_73 = arith.constant dense<0.000000e+00> : vector<256x8xf32>
    %52 = tpu.matmul %49, %51, %cst_73 {dimension_numbers = #tpu.dot_dimension_numbers<[1], [0], [0], [1], [0, 0, 1, 1], [], []>} : vector<256x144xbf16>, vector<144x8xbf16>, vector<256x8xf32> -> vector<256x8xf32>
    %cst_74 = arith.constant 0.000000e+00 : f32
    %53 = vector.broadcast %cst_74 : f32 to vector<256x8xf32>
    %54 = arith.maximumf %52, %53 : vector<256x8xf32>
    %55 = arith.truncf %54 : vector<256x8xf32> to vector<256x8xbf16>
    %c0_75 = arith.constant 0 : index
    %c0_76 = arith.constant 0 : index
    %c0_77 = arith.constant 0 : index
    %56 = vector.load %arg3[%c0_75, %c0_76, %c0_77] : memref<2x8x16xbf16, #tpu.memory_space<vmem>>, vector<1x8x16xbf16>
    %57 = vector.shape_cast %56 : vector<1x8x16xbf16> to vector<8x16xbf16>
    %cst_78 = arith.constant dense<0.000000e+00> : vector<256x16xf32>
    %58 = tpu.matmul %55, %57, %cst_78 {dimension_numbers = #tpu.dot_dimension_numbers<[1], [0], [0], [1], [0, 0, 1, 1], [], []>} : vector<256x8xbf16>, vector<8x16xbf16>, vector<256x16xf32> -> vector<256x16xf32>
    %59 = arith.addf %8, %58 : vector<256x16xf32>
    %cst_79 = arith.constant 0.000000e+00 : f32
    %60 = vector.broadcast %cst_79 : f32 to vector<256x16xf32>
    %61 = arith.maximumf %59, %60 : vector<256x16xf32>
    %62 = vector.shape_cast %61 : vector<256x16xf32> to vector<1x16x16x16xf32>
    %c0_80 = arith.constant 0 : index
    %c1_81 = arith.constant 1 : index
    %c1_82 = arith.constant 1 : index
    %c0_83 = arith.constant 0 : index
    %63 = vector.load %arg5[%c0_80, %c1_81, %c1_82, %c0_83] : memref<1x18x18x16xf32, #tpu.memory_space<vmem>>, vector<1x16x16x16xf32>
    tpu.vector_store %arg5[%c0_80, %c1_81, %c1_82, %c0_83], %62 {strides = array<i32>} : memref<1x18x18x16xf32, #tpu.memory_space<vmem>>, vector<1x16x16x16xf32>,
    %c0_84 = arith.constant 0 : index
    %c0_85 = arith.constant 0 : index
    %c0_86 = arith.constant 0 : index
    %c0_87 = arith.constant 0 : index
    %64 = vector.load %arg5[%c0_84, %c0_85, %c0_86, %c0_87] : memref<1x18x18x16xf32, #tpu.memory_space<vmem>>, vector<1x16x16x16xf32>
    %65 = vector.shape_cast %64 : vector<1x16x16x16xf32> to vector<256x16xf32>
    %66 = arith.truncf %65 : vector<256x16xf32> to vector<256x16xbf16>
    %c0_88 = arith.constant 0 : index
    %c0_89 = arith.constant 0 : index
    %67 = vector.load %arg6[%c0_88, %c0_89] : memref<256x144xbf16, #tpu.memory_space<vmem>>, vector<256x16xbf16>
    tpu.vector_store %arg6[%c0_88, %c0_89], %66 {strides = array<i32>} : memref<256x144xbf16, #tpu.memory_space<vmem>>, vector<256x16xbf16>,
    %c0_90 = arith.constant 0 : index
    %c0_91 = arith.constant 0 : index
    %c1_92 = arith.constant 1 : index
    %c0_93 = arith.constant 0 : index
    %68 = vector.load %arg5[%c0_90, %c0_91, %c1_92, %c0_93] : memref<1x18x18x16xf32, #tpu.memory_space<vmem>>, vector<1x16x16x16xf32>
    %69 = vector.shape_cast %68 : vector<1x16x16x16xf32> to vector<256x16xf32>
    %70 = arith.truncf %69 : vector<256x16xf32> to vector<256x16xbf16>
    %c0_94 = arith.constant 0 : index
    %c16_95 = arith.constant 16 : index
    %71 = vector.load %arg6[%c0_94, %c16_95] : memref<256x144xbf16, #tpu.memory_space<vmem>>, vector<256x16xbf16>
    tpu.vector_store %arg6[%c0_94, %c16_95], %70 {strides = array<i32>} : memref<256x144xbf16, #tpu.memory_space<vmem>>, vector<256x16xbf16>,
    %c0_96 = arith.constant 0 : index
    %c0_97 = arith.constant 0 : index
    %c2_98 = arith.constant 2 : index
    %c0_99 = arith.constant 0 : index
    %72 = vector.load %arg5[%c0_96, %c0_97, %c2_98, %c0_99] : memref<1x18x18x16xf32, #tpu.memory_space<vmem>>, vector<1x16x16x16xf32>
    %73 = vector.shape_cast %72 : vector<1x16x16x16xf32> to vector<256x16xf32>
    %74 = arith.truncf %73 : vector<256x16xf32> to vector<256x16xbf16>
    %c0_100 = arith.constant 0 : index
    %c32_101 = arith.constant 32 : index
    %75 = vector.load %arg6[%c0_100, %c32_101] : memref<256x144xbf16, #tpu.memory_space<vmem>>, vector<256x16xbf16>
    tpu.vector_store %arg6[%c0_100, %c32_101], %74 {strides = array<i32>} : memref<256x144xbf16, #tpu.memory_space<vmem>>, vector<256x16xbf16>,
    %c0_102 = arith.constant 0 : index
    %c1_103 = arith.constant 1 : index
    %c0_104 = arith.constant 0 : index
    %c0_105 = arith.constant 0 : index
    %76 = vector.load %arg5[%c0_102, %c1_103, %c0_104, %c0_105] : memref<1x18x18x16xf32, #tpu.memory_space<vmem>>, vector<1x16x16x16xf32>
    %77 = vector.shape_cast %76 : vector<1x16x16x16xf32> to vector<256x16xf32>
    %78 = arith.truncf %77 : vector<256x16xf32> to vector<256x16xbf16>
    %c0_106 = arith.constant 0 : index
    %c48_107 = arith.constant 48 : index
    %79 = vector.load %arg6[%c0_106, %c48_107] : memref<256x144xbf16, #tpu.memory_space<vmem>>, vector<256x16xbf16>
    tpu.vector_store %arg6[%c0_106, %c48_107], %78 {strides = array<i32>} : memref<256x144xbf16, #tpu.memory_space<vmem>>, vector<256x16xbf16>,
    %c0_108 = arith.constant 0 : index
    %c1_109 = arith.constant 1 : index
    %c1_110 = arith.constant 1 : index
    %c0_111 = arith.constant 0 : index
    %80 = vector.load %arg5[%c0_108, %c1_109, %c1_110, %c0_111] : memref<1x18x18x16xf32, #tpu.memory_space<vmem>>, vector<1x16x16x16xf32>
    %81 = vector.shape_cast %80 : vector<1x16x16x16xf32> to vector<256x16xf32>
    %82 = arith.truncf %81 : vector<256x16xf32> to vector<256x16xbf16>
    %c0_112 = arith.constant 0 : index
    %c64_113 = arith.constant 64 : index
    %83 = vector.load %arg6[%c0_112, %c64_113] : memref<256x144xbf16, #tpu.memory_space<vmem>>, vector<256x16xbf16>
    tpu.vector_store %arg6[%c0_112, %c64_113], %82 {strides = array<i32>} : memref<256x144xbf16, #tpu.memory_space<vmem>>, vector<256x16xbf16>,
    %c0_114 = arith.constant 0 : index
    %c1_115 = arith.constant 1 : index
    %c2_116 = arith.constant 2 : index
    %c0_117 = arith.constant 0 : index
    %84 = vector.load %arg5[%c0_114, %c1_115, %c2_116, %c0_117] : memref<1x18x18x16xf32, #tpu.memory_space<vmem>>, vector<1x16x16x16xf32>
    %85 = vector.shape_cast %84 : vector<1x16x16x16xf32> to vector<256x16xf32>
    %86 = arith.truncf %85 : vector<256x16xf32> to vector<256x16xbf16>
    %c0_118 = arith.constant 0 : index
    %c80_119 = arith.constant 80 : index
    %87 = vector.load %arg6[%c0_118, %c80_119] : memref<256x144xbf16, #tpu.memory_space<vmem>>, vector<256x16xbf16>
    tpu.vector_store %arg6[%c0_118, %c80_119], %86 {strides = array<i32>} : memref<256x144xbf16, #tpu.memory_space<vmem>>, vector<256x16xbf16>,
    %c0_120 = arith.constant 0 : index
    %c2_121 = arith.constant 2 : index
    %c0_122 = arith.constant 0 : index
    %c0_123 = arith.constant 0 : index
    %88 = vector.load %arg5[%c0_120, %c2_121, %c0_122, %c0_123] : memref<1x18x18x16xf32, #tpu.memory_space<vmem>>, vector<1x16x16x16xf32>
    %89 = vector.shape_cast %88 : vector<1x16x16x16xf32> to vector<256x16xf32>
    %90 = arith.truncf %89 : vector<256x16xf32> to vector<256x16xbf16>
    %c0_124 = arith.constant 0 : index
    %c96_125 = arith.constant 96 : index
    %91 = vector.load %arg6[%c0_124, %c96_125] : memref<256x144xbf16, #tpu.memory_space<vmem>>, vector<256x16xbf16>
    tpu.vector_store %arg6[%c0_124, %c96_125], %90 {strides = array<i32>} : memref<256x144xbf16, #tpu.memory_space<vmem>>, vector<256x16xbf16>,
    %c0_126 = arith.constant 0 : index
    %c2_127 = arith.constant 2 : index
    %c1_128 = arith.constant 1 : index
    %c0_129 = arith.constant 0 : index
    %92 = vector.load %arg5[%c0_126, %c2_127, %c1_128, %c0_129] : memref<1x18x18x16xf32, #tpu.memory_space<vmem>>, vector<1x16x16x16xf32>
    %93 = vector.shape_cast %92 : vector<1x16x16x16xf32> to vector<256x16xf32>
    %94 = arith.truncf %93 : vector<256x16xf32> to vector<256x16xbf16>
    %c0_130 = arith.constant 0 : index
    %c112_131 = arith.constant 112 : index
    %95 = vector.load %arg6[%c0_130, %c112_131] : memref<256x144xbf16, #tpu.memory_space<vmem>>, vector<256x16xbf16>
    tpu.vector_store %arg6[%c0_130, %c112_131], %94 {strides = array<i32>} : memref<256x144xbf16, #tpu.memory_space<vmem>>, vector<256x16xbf16>,
    %c0_132 = arith.constant 0 : index
    %c2_133 = arith.constant 2 : index
    %c2_134 = arith.constant 2 : index
    %c0_135 = arith.constant 0 : index
    %96 = vector.load %arg5[%c0_132, %c2_133, %c2_134, %c0_135] : memref<1x18x18x16xf32, #tpu.memory_space<vmem>>, vector<1x16x16x16xf32>
    %97 = vector.shape_cast %96 : vector<1x16x16x16xf32> to vector<256x16xf32>
    %98 = arith.truncf %97 : vector<256x16xf32> to vector<256x16xbf16>
    %c0_136 = arith.constant 0 : index
    %c128_137 = arith.constant 128 : index
    %99 = vector.load %arg6[%c0_136, %c128_137] : memref<256x144xbf16, #tpu.memory_space<vmem>>, vector<256x16xbf16>
    tpu.vector_store %arg6[%c0_136, %c128_137], %98 {strides = array<i32>} : memref<256x144xbf16, #tpu.memory_space<vmem>>, vector<256x16xbf16>,
    %c0_138 = arith.constant 0 : index
    %c0_139 = arith.constant 0 : index
    %100 = vector.load %arg6[%c0_138, %c0_139] : memref<256x144xbf16, #tpu.memory_space<vmem>>, vector<256x144xbf16>
    %c1_140 = arith.constant 1 : index
    %c0_141 = arith.constant 0 : index
    %c0_142 = arith.constant 0 : index
    %101 = vector.load %arg2[%c1_140, %c0_141, %c0_142] : memref<2x144x8xbf16, #tpu.memory_space<vmem>>, vector<1x144x8xbf16>
    %102 = vector.shape_cast %101 : vector<1x144x8xbf16> to vector<144x8xbf16>
    %cst_143 = arith.constant dense<0.000000e+00> : vector<256x8xf32>
    %103 = tpu.matmul %100, %102, %cst_143 {dimension_numbers = #tpu.dot_dimension_numbers<[1], [0], [0], [1], [0, 0, 1, 1], [], []>} : vector<256x144xbf16>, vector<144x8xbf16>, vector<256x8xf32> -> vector<256x8xf32>
    %cst_144 = arith.constant 0.000000e+00 : f32
    %104 = vector.broadcast %cst_144 : f32 to vector<256x8xf32>
    %105 = arith.maximumf %103, %104 : vector<256x8xf32>
    %106 = arith.truncf %105 : vector<256x8xf32> to vector<256x8xbf16>
    %c1_145 = arith.constant 1 : index
    %c0_146 = arith.constant 0 : index
    %c0_147 = arith.constant 0 : index
    %107 = vector.load %arg3[%c1_145, %c0_146, %c0_147] : memref<2x8x16xbf16, #tpu.memory_space<vmem>>, vector<1x8x16xbf16>
    %108 = vector.shape_cast %107 : vector<1x8x16xbf16> to vector<8x16xbf16>
    %cst_148 = arith.constant dense<0.000000e+00> : vector<256x16xf32>
    %109 = tpu.matmul %106, %108, %cst_148 {dimension_numbers = #tpu.dot_dimension_numbers<[1], [0], [0], [1], [0, 0, 1, 1], [], []>} : vector<256x8xbf16>, vector<8x16xbf16>, vector<256x16xf32> -> vector<256x16xf32>
    %110 = arith.addf %59, %109 : vector<256x16xf32>
    %cst_149 = arith.constant 0.000000e+00 : f32
    %111 = vector.broadcast %cst_149 : f32 to vector<256x16xf32>
    %112 = arith.maximumf %110, %111 : vector<256x16xf32>
    %c0_150 = arith.constant 0 : index
    %c0_151 = arith.constant 0 : index
    %113 = vector.load %arg4[%c0_150, %c0_151] : memref<256x16xf32, #tpu.memory_space<vmem>>, vector<256x16xf32>
    tpu.vector_store %arg4[%c0_150, %c0_151], %112 {strides = array<i32>} : memref<256x16xf32, #tpu.memory_space<vmem>>, vector<256x16xf32>,
    return
  }
  func.func @transform_0(%arg0: i32) -> (i32, i32) {
    %c0_i32 = arith.constant 0 : i32
    %c0_i32_0 = arith.constant 0 : i32
    return %arg0, %c0_i32 : i32, i32
  }
  func.func @transform_1(%arg0: i32) -> (i32, i32, i32) {
    %c0_i32 = arith.constant 0 : i32
    %c0_i32_0 = arith.constant 0 : i32
    %c0_i32_1 = arith.constant 0 : i32
    %c0_i32_2 = arith.constant 0 : i32
    return %c0_i32, %c0_i32_0, %c0_i32_1 : i32, i32, i32
  }
  func.func @transform_2(%arg0: i32) -> (i32, i32, i32) {
    %c0_i32 = arith.constant 0 : i32
    %c0_i32_0 = arith.constant 0 : i32
    %c0_i32_1 = arith.constant 0 : i32
    %c0_i32_2 = arith.constant 0 : i32
    return %c0_i32, %c0_i32_0, %c0_i32_1 : i32, i32, i32
  }
  func.func @transform_3(%arg0: i32) -> (i32, i32) {
    %c0_i32 = arith.constant 0 : i32
    %c0_i32_0 = arith.constant 0 : i32
    return %arg0, %c0_i32 : i32, i32
  }
}

</mosaic_0001>

<bundles_post_ra>
// kernel: tpu_custom_call.1
= control target key start
LH: loop header
LB: loop body
LE: loop exit
PB: predicated region body
PF: predicated region fallthrough
CT: control target
= control target key end

     0   :  { %s4097_s12 = smov 0   ;;  %s5302_s0 = inlined_call_operand.vmem [shape: f32[512,16], index: 0, kind: input, shape index: {}]   ;;  %s5303_s1 = inlined_call_operand.vmem [shape: bf16[2,144,8], index: 1, kind: input, shape index: {}]   ;;  %s5304_s2 = inlined_call_operand.vmem [shape: bf16[2,8,16], index: 2, kind: input, shape index: {}]   ;;  %s5305_s3 = inlined_call_operand.vmem [shape: f32[512,16], index: 3, kind: output, shape index: {}]  }
   0x1 LB: > { %s3774_s13 = sadd.s32 4294967295, %s4066_s12   ;;  %p3778_p0 = scmp.ge.s32.totalorder %s4066_s12, 1  ;;  %s4066_s12 = sphi %s4097_s12, %s13_s12  }
   0x2   : > { %p138_p1 = scmp.lt.s32.totalorder %s4066_s12, 3 }
   0x4   : > { %p139_p2 = pnand %p3778_p0, %p138_p1 }
   0x5   : > { %vm175_vm0 = vcmask (!%p139_p2), 130048   ;;  %vm178_vm1 = vcmask (!%p139_p2), 123904   ;;  %vm184_vm2 = vcmask (!%p139_p2), 122880   ;;  %v4068_v0 = vmov (!%p139_p2), 0.0   ;;  %s3779_s14 = sshll.u32 (!%p139_p2), %s3774_s13, 5  ;;  %v4010_v1 = vld [vmem:[%s5303_s1] sm:$0xff] (!%p139_p2)  }
   0x6   : > { %142 = sbr.rel (%p139_p2) target bundleno = 1412 (0x584), region = 32  ;;  %176 = vst.msk [vmem:[#allocation2] sm:$0xff] (!%p139_p2), %vm175_vm0, %v4068_v0  ;;  %177 = vst.msk [vmem:[#allocation2 + $0x8] sm:$0xff] (!%p139_p2), %vm175_vm0, %v4068_v0  ;;  %p163_p3 = scmp.lt.s32.totalorder (!%p139_p2), %s3779_s14, 63  ;;  %v4069_v2 = vmov (!%p139_p2), 0   ;;  %v4011_v3 = vld [vmem:[%s5303_s1 + $0x8] sm:$0xff] (!%p139_p2)  }
   0x7   : > { %179 = vst.msk [vmem:[#allocation2 + $0x10] sm:$0x3] (!%p139_p2), %vm178_vm1, %v4068_v0  ;;  %183 = vst.msk [vmem:[#allocation2 + $0x1a8] sm:$0x3] (!%p139_p2), %vm178_vm1, %v4068_v0  ;;  %1502 = vmatprep.subr.bf16.mxu0 (!%p139_p2), %v4069_v2  ;;  %v4012_v4 = vld [vmem:[%s5303_s1 + $0x10] sm:$0xff] (!%p139_p2)   ;;  %v4013_v12 = vld [vmem:[%s5303_s1 + $0x18] sm:$0xff] (!%p139_p2)  }
   0x8   : > { %181 = vst.msk [vmem:[#allocation2 + $0x198] sm:$0xff] (!%p139_p2), %vm175_vm0, %v4068_v0  ;;  %182 = vst.msk [vmem:[#allocation2 + $0x1a0] sm:$0xff] (!%p139_p2), %vm175_vm0, %v4068_v0  ;;  %1503 = vmatpush1.bf16.msra.mxu0 (!%p139_p2), %v4010_v1  ;;  %s4070_s27 = smov (!%p139_p2), 16   ;;  %v4014_v37 = vld [vmem:[%s5303_s1 + $0x20] sm:$0xff] (!%p139_p2)   ;;  %s4071_s30 = smov (!%p139_p2), 32   ;;  %v4015_v56 = vld [vmem:[%s5303_s1 + $0x28] sm:$0xff] (!%p139_p2)  }
   0x9   : > { %186 = vst.msk [vmem:[#allocation2 + $0x18] sm:$0x1] (!%p139_p2), %vm184_vm2, %v4068_v0  ;;  %187 = vst.msk [vmem:[#allocation2 + $0x30] sm:$0x1] (!%p139_p2), %vm184_vm2, %v4068_v0  ;;  %1504 = vmatprep.subr.bf16.mxu0 (!%p139_p2), %v4069_v2  ;;  %s4072_s6 = smov (!%p139_p2), 48   ;;  %s4073_s7 = smov (!%p139_p2), 80  }
   0xa   : > { %188 = vst.msk [vmem:[#allocation2 + $0x48] sm:$0x1] (!%p139_p2), %vm184_vm2, %v4068_v0  ;;  %189 = vst.msk [vmem:[#allocation2 + $0x60] sm:$0x1] (!%p139_p2), %vm184_vm2, %v4068_v0  ;;  %s4074_s10 = smov (!%p139_p2), 64   ;;  %s4075_s11 = smov (!%p139_p2), 112  }
   0xb   : > { %190 = vst.msk [vmem:[#allocation2 + $0x78] sm:$0x1] (!%p139_p2), %vm184_vm2, %v4068_v0  ;;  %191 = vst.msk [vmem:[#allocation2 + $0x90] sm:$0x1] (!%p139_p2), %vm184_vm2, %v4068_v0  ;;  %s4076_s13 = smov (!%p139_p2), 96   ;;  %vm494_vm3 = vcmask (!%p139_p2), 261248  }
   0xc   : > { %192 = vst.msk [vmem:[#allocation2 + $0xa8] sm:$0x1] (!%p139_p2), %vm184_vm2, %v4068_v0  ;;  %193 = vst.msk [vmem:[#allocation2 + $0xc0] sm:$0x1] (!%p139_p2), %vm184_vm2, %v4068_v0  ;;  %1505 = vmatpush1.bf16.msra.mxu0 (!%p139_p2), %v4011_v3  ;;  %vm623_vm4 = vcmask (!%p139_p2), 392448   ;;  %vm752_vm5 = vcmask (!%p139_p2), 523648  }
   0xd   : > { %194 = vst.msk [vmem:[#allocation2 + $0xd8] sm:$0x1] %vm184_vm2, %v4068_v0  ;;  %195 = vst.msk [vmem:[#allocation2 + $0xf0] sm:$0x1] %vm184_vm2, %v4068_v0  ;;  %s5307_s14 = smov (!%p163_p3, %s3779_s14), 63  ;;  %v382_v5 = vld [vmem:[#allocation2 + $0x1] sm:$0xff]  ;;  %1506 = vmatprep.subr.bf16.mxu0 %v4069_v2 }
   0xe   : > { %196 = vst.msk [vmem:[#allocation2 + $0x108] sm:$0x1] %vm184_vm2, %v4068_v0  ;;  %197 = vst.msk [vmem:[#allocation2 + $0x120] sm:$0x1] %vm184_vm2, %v4068_v0  ;;  %s3780_s19 = sshll.u32 %s5307_s14, 3  ;;  %v383_v6 = vld [vmem:[#allocation2 + $0x9] sm:$0xff] }
   0xf   : > { %198 = vst.msk [vmem:[#allocation2 + $0x138] sm:$0x1] %vm184_vm2, %v4068_v0  ;;  %199 = vst.msk [vmem:[#allocation2 + $0x150] sm:$0x1] %vm184_vm2, %v4068_v0  ;;  %s4163_s22 = scalar_lea.vmem %s5302_s0, %s3780_s19  ;;  %v511_v7 = vld [vmem:[#allocation2 + $0x2] sm:$0xff]  ;;  %v414_v8 = vpack.c.bf16 %v383_v6, %v382_v5  ;;  %vm881_vm6 = vcmask 654848  }
  0x10   : > { %200 = vst.msk [vmem:[#allocation2 + $0x168] sm:$0x1] %vm184_vm2, %v4068_v0  ;;  %201 = vst.msk [vmem:[#allocation2 + $0x180] sm:$0x1] %vm184_vm2, %v4068_v0  ;;  %v221_v10 = vld [vmem:[%s4163_s22] sm:$0xff]  ;;  %v222_v11 = vld [vmem:[%s4163_s22 + $0x8] sm:$0xff]  ;;  %1507 = vmatpush1.bf16.msra.mxu0 %v4012_v4 }
  0x11   : > { %204 = vst.msk [vmem:[#allocation2 + $0x29] sm:$0x1] %vm184_vm2, %v4068_v0  ;;  %205 = vst.msk [vmem:[#allocation2 + $0x41] sm:$0x1] %vm184_vm2, %v4068_v0  ;;  %v253_v13 = vmax.f32 %v221_v10, 0.0  ;;  %v254_v14 = vmax.f32 %v222_v11, 0.0  ;;  %446 = vrot.lane.b32.xlu0 %v414_v8, %s4070_s27  ;;  %1508 = vmatprep.subr.bf16.mxu0 %v4069_v2 }
  0x12   : > { %206 = vst.msk [vmem:[#allocation2 + $0x59] sm:$0x1] %vm184_vm2, %v4068_v0  ;;  %207 = vst.msk [vmem:[#allocation2 + $0x71] sm:$0x1] %vm184_vm2, %v4068_v0  ;;  %v223_v15 = vld [vmem:[%s4163_s22 + $0x10] sm:$0xff]  ;;  %v224_v16 = vld [vmem:[%s4163_s22 + $0x18] sm:$0xff] }
  0x13   : > { %208 = vst.msk [vmem:[#allocation2 + $0x89] sm:$0x1] %vm184_vm2, %v4068_v0  ;;  %209 = vst.msk [vmem:[#allocation2 + $0xa1] sm:$0x1] %vm184_vm2, %v4068_v0  ;;  %v225_v17 = vld [vmem:[%s4163_s22 + $0x20] sm:$0xff]  ;;  %v255_v19 = vmax.f32 %v223_v15, 0.0 }
  0x14   : > { %210 = vst.msk [vmem:[#allocation2 + $0xb9] sm:$0x1] %vm184_vm2, %v4068_v0  ;;  %211 = vst.msk [vmem:[#allocation2 + $0xd1] sm:$0x1] %vm184_vm2, %v4068_v0  ;;  %v256_v20 = vmax.f32 %v224_v16, 0.0  ;;  %v226_v21 = vld [vmem:[%s4163_s22 + $0x28] sm:$0xff]  ;;  %1509 = vmatpush1.bf16.msra.mxu0 %v4013_v12 }
  0x15   : > { %212 = vst.msk [vmem:[#allocation2 + $0xe9] sm:$0x1] %vm184_vm2, %v4068_v0  ;;  %213 = vst.msk [vmem:[#allocation2 + $0x101] sm:$0x1] %vm184_vm2, %v4068_v0  ;;  %v257_v22 = vmax.f32 %v225_v17, 0.0  ;;  %v227_v23 = vld [vmem:[%s4163_s22 + $0x30] sm:$0xff]  ;;  %1510 = vmatprep.subr.bf16.mxu0 %v4069_v2 }
  0x16   : > { %214 = vst.msk [vmem:[#allocation2 + $0x119] sm:$0x1] %vm184_vm2, %v4068_v0  ;;  %215 = vst.msk [vmem:[#allocation2 + $0x131] sm:$0x1] %vm184_vm2, %v4068_v0  ;;  %v228_v24 = vld [vmem:[%s4163_s22 + $0x38] sm:$0xff]  ;;  %v258_v25 = vmax.f32 %v226_v21, 0.0 }
  0x17   : > { %216 = vst.msk [vmem:[#allocation2 + $0x149] sm:$0x1] %vm184_vm2, %v4068_v0  ;;  %217 = vst.msk [vmem:[#allocation2 + $0x161] sm:$0x1] %vm184_vm2, %v4068_v0  ;;  %v259_v26 = vmax.f32 %v227_v23, 0.0  ;;  %v260_v27 = vmax.f32 %v228_v24, 0.0 }
  0x18   : > { %218 = vst.msk [vmem:[#allocation2 + $0x179] sm:$0x1] %vm184_vm2, %v4068_v0  ;;  %219 = vst.msk [vmem:[#allocation2 + $0x191] sm:$0x1] %vm184_vm2, %v4068_v0  ;;  %v229_v28 = vld [vmem:[%s4163_s22 + $0x40] sm:$0xff]  ;;  %v230_v29 = vld [vmem:[%s4163_s22 + $0x48] sm:$0xff]  ;;  %1511 = vmatpush1.bf16.msra.mxu0 %v4014_v37 }
  0x19   : > { %220 = vst.msk [vmem:[#allocation2 + $0x1a9] sm:$0x1] %vm184_vm2, %v4068_v0  ;;  %185 = vst.msk [vmem:[#allocation2] sm:$0x1] %vm184_vm2, %v4068_v0  ;;  %v231_v30 = vld [vmem:[%s4163_s22 + $0x50] sm:$0xff]  ;;  %v261_v31 = vmax.f32 %v229_v28, 0.0  ;;  %1512 = vmatprep.subr.bf16.mxu0 %v4069_v2 }
  0x1a   : > { %203 = vst.msk [vmem:[#allocation2 + $0x11] sm:$0x1] %vm184_vm2, %v4068_v0  ;;  %202 = vst.msk [vmem:[#allocation2 + $0x198] sm:$0x1] %vm184_vm2, %v4068_v0  ;;  %v262_v32 = vmax.f32 %v230_v29, 0.0  ;;  %v232_v33 = vld [vmem:[%s4163_s22 + $0x58] sm:$0xff] }
  0x1b   : > { %286 = vst.msk [vmem:[#allocation2 + $0x19] sm:$0xff] %vm175_vm0, %v253_v13  ;;  %287 = vst.msk [vmem:[#allocation2 + $0x21] sm:$0xff] %vm175_vm0, %v254_v14  ;;  %v263_v34 = vmax.f32 %v231_v30, 0.0  ;;  %v233_v35 = vld [vmem:[%s4163_s22 + $0x60] sm:$0xff]  ;;  %v234_v36 = vld [vmem:[%s4163_s22 + $0x68] sm:$0xff]  ;;  %v264_v38 = vmax.f32 %v232_v33, 0.0 }
  0x1c   : > { %288 = vst.msk [vmem:[#allocation2 + $0x31] sm:$0xff] %vm175_vm0, %v255_v19  ;;  %289 = vst.msk [vmem:[#allocation2 + $0x39] sm:$0xff] %vm175_vm0, %v256_v20  ;;  %v265_v39 = vmax.f32 %v233_v35, 0.0  ;;  %v266_v40 = vmax.f32 %v234_v36, 0.0  ;;  %v235_v41 = vld [vmem:[%s4163_s22 + $0x70] sm:$0xff]  ;;  %v236_v42 = vld [vmem:[%s4163_s22 + $0x78] sm:$0xff]  ;;  %1513 = vmatpush1.bf16.msra.mxu0 %v4015_v56 }
  0x1d   : > { %290 = vst.msk [vmem:[#allocation2 + $0x49] sm:$0xff] %vm175_vm0, %v257_v22  ;;  %291 = vst.msk [vmem:[#allocation2 + $0x51] sm:$0xff] %vm175_vm0, %v258_v25  ;;  %v237_v43 = vld [vmem:[%s4163_s22 + $0x80] sm:$0xff]  ;;  %v267_v44 = vmax.f32 %v235_v41, 0.0  ;;  %v268_v45 = vmax.f32 %v236_v42, 0.0  ;;  %v238_v46 = vld [vmem:[%s4163_s22 + $0x88] sm:$0xff]  ;;  %1514 = vmatprep.subr.bf16.mxu0 %v4069_v2 }
  0x1e   : > { %292 = vst.msk [vmem:[#allocation2 + $0x61] sm:$0xff] %vm175_vm0, %v259_v26  ;;  %293 = vst.msk [vmem:[#allocation2 + $0x69] sm:$0xff] %vm175_vm0, %v260_v27  ;;  %v269_v47 = vmax.f32 %v237_v43, 0.0  ;;  %v319_v48 = vld [vmem:[#allocation2 + $0x8] sm:$0xff]  ;;  %v270_v50 = vmax.f32 %v238_v46, 0.0  ;;  %v239_v52 = vld [vmem:[%s4163_s22 + $0x90] sm:$0xff] }
  0x1f   : > { %294 = vst.msk [vmem:[#allocation2 + $0x79] sm:$0xff] %vm175_vm0, %v261_v31  ;;  %295 = vst.msk [vmem:[#allocation2 + $0x81] sm:$0xff] %vm175_vm0, %v262_v32  ;;  %v240_v53 = vld [vmem:[%s4163_s22 + $0x98] sm:$0xff]  ;;  %v271_v54 = vmax.f32 %v239_v52, 0.0  ;;  %v4016_v14 = vld [vmem:[%s5303_s1 + $0x30] sm:$0xff]   ;;  %vm1010_vm7 = vcmask 786048  }
  0x20   : > { %296 = vst.msk [vmem:[#allocation2 + $0x91] sm:$0xff] %vm175_vm0, %v263_v34  ;;  %v318_v49 = vld [vmem:[#allocation2] sm:$0xff]  ;;  %297 = vst.msk [vmem:[#allocation2 + $0x99] sm:$0xff] %vm175_vm0, %v264_v38  ;;  %v272_v55 = vmax.f32 %v240_v53, 0.0  ;;  %1515 = vmatpush1.bf16.msra.mxu0 %v4016_v14  ;;  %vm1140_vm8 = vcmask 917248   ;;  %vm1269_vm9 = vcmask 1048448  }
  0x21   : > { %v512_v9 = vld [vmem:[#allocation2 + $0xa] sm:$0xff]  ;;  %298 = vst.msk [vmem:[#allocation2 + $0xa9] sm:$0xff] %vm175_vm0, %v265_v39  ;;  %299 = vst.msk [vmem:[#allocation2 + $0xb1] sm:$0xff] %vm175_vm0, %v266_v40  ;;  %v350_v51 = vpack.c.bf16 %v319_v48, %v318_v49  ;;  %1516 = vmatprep.subr.bf16.mxu0 %v4069_v2  ;;  %v4017_v48 = vld [vmem:[%s5303_s1 + $0x38] sm:$0xff]   ;;  %vm1761_vm10 = vcmask 1043456   ;;  %vm1712_vm11 = vcmask 64512  }
  0x22   : > { %v543_v18 = vpack.c.bf16 %v512_v9, %v511_v7  ;;  %300 = vst.msk [vmem:[#allocation2 + $0xc1] sm:$0xff] %vm175_vm0, %v267_v44  ;;  %301 = vst.msk [vmem:[#allocation2 + $0xc9] sm:$0xff] %vm175_vm0, %v268_v45  ;;  %v640_v57 = vld [vmem:[#allocation2 + $0x18] sm:$0xff]  ;;  %v641_v58 = vld [vmem:[#allocation2 + $0x20] sm:$0xff] }
  0x23   : > { %302 = vst.msk [vmem:[#allocation2 + $0xd9] sm:$0xff] %vm175_vm0, %v269_v47  ;;  %303 = vst.msk [vmem:[#allocation2 + $0xe1] sm:$0xff] %vm175_vm0, %v270_v50  ;;  %v769_v59 = vld [vmem:[#allocation2 + $0x19] sm:$0xff]  ;;  %v672_v60 = vpack.c.bf16 %v641_v58, %v640_v57  ;;  %v770_v61 = vld [vmem:[#allocation2 + $0x21] sm:$0xff] }
  0x24   : > { %575 = vrot.lane.b32.xlu0 %v543_v18, %s4071_s30  ;;  %366 = vst.msk [vmem:[#allocation3] sm:$0xff] %vm175_vm0, %v350_v51  ;;  %304 = vst.msk [vmem:[#allocation2 + $0xf1] sm:$0xff] %vm175_vm0, %v271_v54  ;;  %v898_v62 = vld [vmem:[#allocation2 + $0x1a] sm:$0xff]  ;;  %v899_v63 = vld [vmem:[#allocation2 + $0x22] sm:$0xff]  ;;  %v801_v5 = vpack.c.bf16 %v770_v61, %v769_v59  ;;  %1517 = vmatpush1.bf16.msra.mxu0 %v4017_v48 }
  0x25   : > { %305 = vst.msk [vmem:[#allocation2 + $0xf9] sm:$0xff] %vm175_vm0, %v272_v55  ;;  %v930_v0 = vpack.c.bf16 %v899_v63, %v898_v62  ;;  %v1028_v1 = vld [vmem:[#allocation2 + $0x30] sm:$0xff]  ;;  %v1029_v3 = vld [vmem:[#allocation2 + $0x38] sm:$0xff]  ;;  %704 = vrot.lane.b32.xlu1 %v672_v60, %s4072_s6  ;;  %367 = vst.msk [vmem:[#allocation3 + $0x10] sm:$0xff] %vm175_vm0, %v672_v60  ;;  %1518 = vmatprep.subr.bf16.mxu0 %v4069_v2 }
  0x26   : > { %v1157_v4 = vld [vmem:[#allocation2 + $0x31] sm:$0xff]  ;;  %v4225_v6 = vpack.c.bf16 %v1029_v3, %v1028_v1  ;;  %v1158_v7 = vld [vmem:[#allocation2 + $0x39] sm:$0xff]  ;;  %v1030_v12 = vld [vmem:[#allocation2 + $0x48] sm:$0xff] }
  0x27   : > { %v900_v8 = vld [vmem:[#allocation2 + $0x32] sm:$0xff]  ;;  %v901_v9 = vld [vmem:[#allocation2 + $0x3a] sm:$0xff]  ;;  %v4229_v10 = vpack.c.bf16 %v1158_v7, %v1157_v4  ;;  %v902_v16 = vld [vmem:[#allocation2 + $0x4a] sm:$0xff] }
  0x28   : > { %962 = vrot.lane.b32.xlu0 %v930_v0, %s4073_s7  ;;  %v4231_v11 = vpack.c.bf16 %v901_v9, %v900_v8  ;;  %v1031_v13 = vld [vmem:[#allocation2 + $0x50] sm:$0xff]  ;;  %368 = vst.msk [vmem:[#allocation3 + $0x20] sm:$0xff] %vm175_vm0, %v4225_v6  ;;  %v1032_v19 = vld [vmem:[#allocation2 + $0x60] sm:$0xff]  ;;  %v1033_v20 = vld [vmem:[#allocation2 + $0x68] sm:$0xff] }
  0x29   : > { %v4236_v15 = vpack.c.bf16 %v1031_v13, %v1030_v12  ;;  %v903_v17 = vld [vmem:[#allocation2 + $0x52] sm:$0xff]  ;;  %833 = vrot.lane.b32.xlu1 %v801_v5, %s4074_s10  ;;  %v4246_v21 = vpack.c.bf16 %v1033_v20, %v1032_v19  ;;  %v904_v22 = vld [vmem:[#allocation2 + $0x62] sm:$0xff]  ;;  %v905_v23 = vld [vmem:[#allocation2 + $0x6a] sm:$0xff] }
  0x2a   : > { %v4241_v18 = vpack.c.bf16 %v903_v17, %v902_v16  ;;  %1334 = vst.msk [vmem:[#allocation3 + $0x8] sm:$0xff] %vm175_vm0, %v4231_v11  ;;  %v4252_v24 = vpack.c.bf16 %v905_v23, %v904_v22  ;;  %v1034_v25 = vld [vmem:[#allocation2 + $0x78] sm:$0xff]  ;;  %v1035_v26 = vld [vmem:[#allocation2 + $0x80] sm:$0xff]  ;;  %v910_v34 = vld [vmem:[#allocation2 + $0xaa] sm:$0xff] }
  0x2b   : > { %369 = vst.msk [vmem:[#allocation3 + $0x30] sm:$0xff] %vm175_vm0, %v4236_v15  ;;  %v4256_v27 = vpack.c.bf16 %v1035_v26, %v1034_v25  ;;  %v906_v28 = vld [vmem:[#allocation2 + $0x7a] sm:$0xff]  ;;  %v907_v29 = vld [vmem:[#allocation2 + $0x82] sm:$0xff]  ;;  %370 = vst.msk [vmem:[#allocation3 + $0x40] sm:$0xff] %vm175_vm0, %v4246_v21 }
  0x2c   : > { %1221 = vrot.lane.b32.xlu0 %v4229_v10, %s4075_s11  ;;  %1335 = vst.msk [vmem:[#allocation3 + $0x18] sm:$0xff] %vm175_vm0, %v4241_v18  ;;  %v4261_v30 = vpack.c.bf16 %v907_v29, %v906_v28  ;;  %1336 = vst.msk [vmem:[#allocation3 + $0x28] sm:$0xff] %vm175_vm0, %v4252_v24  ;;  %v908_v31 = vld [vmem:[#allocation2 + $0x92] sm:$0xff]  ;;  %v909_v32 = vld [vmem:[#allocation2 + $0x9a] sm:$0xff] }
  0x2d   : > { %1092 = vrot.lane.b32.xlu1 %v4225_v6, %s4076_s13  ;;  %371 = vst.msk [vmem:[#allocation3 + $0x50] sm:$0xff] %vm175_vm0, %v4256_v27  ;;  %v4270_v33 = vpack.c.bf16 %v909_v32, %v908_v31  ;;  %v911_v35 = vld [vmem:[#allocation2 + $0xb2] sm:$0xff]  ;;  %v912_v37 = vld [vmem:[#allocation2 + $0xc2] sm:$0xff]  ;;  %v913_v38 = vld [vmem:[#allocation2 + $0xca] sm:$0xff] }
  0x2e   : > { %1337 = vst.msk [vmem:[#allocation3 + $0x38] sm:$0xff] %vm175_vm0, %v4261_v30  ;;  %v4274_v36 = vpack.c.bf16 %v911_v35, %v910_v34  ;;  %v4281_v39 = vpack.c.bf16 %v913_v38, %v912_v37  ;;  %v914_v40 = vld [vmem:[#allocation2 + $0xda] sm:$0xff]  ;;  %v915_v41 = vld [vmem:[#allocation2 + $0xe2] sm:$0xff]  ;;  %v1044_v44 = vld [vmem:[#allocation2 + $0xf0] sm:$0xff] }
  0x2f   : > { %1338 = vst.msk [vmem:[#allocation3 + $0x48] sm:$0xff] %vm175_vm0, %v4270_v33  ;;  %v1159_v42 = vld [vmem:[#allocation2 + $0x49] sm:$0xff]  ;;  %v4285_v43 = vpack.c.bf16 %v915_v41, %v914_v40  ;;  %v1045_v45 = vld [vmem:[#allocation2 + $0xf8] sm:$0xff]  ;;  %v4018_v49 = vld [vmem:[%s5303_s1 + $0x40] sm:$0xff]  }
  0x30   : > { %577 = vrot.lane.b32.xlu0 %v930_v0, %s4071_s30  ;;  %1339 = vst.msk [vmem:[#allocation3 + $0x58] sm:$0xff] %vm175_vm0, %v4274_v36  ;;  %1340 = vst.msk [vmem:[#allocation3 + $0x68] sm:$0xff] %vm175_vm0, %v4281_v39  ;;  %v1160_v46 = vld [vmem:[#allocation2 + $0x51] sm:$0xff]  ;;  %v4291_v47 = vpack.c.bf16 %v1045_v45, %v1044_v44  ;;  %v917_v52 = vld [vmem:[#allocation2 + $0xfa] sm:$0xff]  ;;  %1519 = vmatpush1.bf16.msra.mxu0 %v4018_v49 }
  0x31   : > { %448 = vrot.lane.b32.xlu1 %v801_v5, %s4070_s27  ;;  %v1351_v50 = vld [vmem:[#allocation3 + $0x8] sm:$0xff]  ;;  %1341 = vst.msk [vmem:[#allocation3 + $0x78] sm:$0xff] %vm175_vm0, %v4285_v43  ;;  %v241_v53 = vld [vmem:[%s4163_s22 + $0xa0] sm:$0xff]  ;;  %v242_v55 = vld [vmem:[%s4163_s22 + $0xa8] sm:$0xff]  ;;  %v1190_v58 = vpack.c.bf16 %v1160_v46, %v1159_v42 }
  0x32   : > { %3792 = vmatprep.mubr.msk.bf16.mxu0 %vm175_vm0, %v1351_v50  ;;  %v916_v51 = vld [vmem:[#allocation2 + $0xf2] sm:$0xff]  ;;  %376 = vst.msk [vmem:[#allocation3 + $0xa0] sm:$0xff] %vm175_vm0, %v4291_v47  ;;  %v273_v56 = vmax.f32 %v241_v53, 0.0  ;;  %v274_v59 = vmax.f32 %v242_v55, 0.0  ;;  %v245_v62 = vld [vmem:[%s4163_s22 + $0xc0] sm:$0xff]  ;;  %v246_v63 = vld [vmem:[%s4163_s22 + $0xc8] sm:$0xff] }
  0x33   : > { %v4308_v54 = vpack.c.bf16 %v917_v52, %v916_v51  ;;  %v243_v57 = vld [vmem:[%s4163_s22 + $0xb0] sm:$0xff]  ;;  %v244_v60 = vld [vmem:[%s4163_s22 + $0xb8] sm:$0xff]  ;;  %v277_v1 = vmax.f32 %v245_v62, 0.0  ;;  %v278_v3 = vmax.f32 %v246_v63, 0.0  ;;  %v1161_v4 = vld [vmem:[#allocation2 + $0x61] sm:$0xff] }
  0x34   : > { %835 = vrot.lane.b32.xlu0 %v4229_v10, %s4074_s10  ;;  %v275_v61 = vmax.f32 %v243_v57, 0.0  ;;  %306 = vst.msk [vmem:[#allocation2 + $0x109] sm:$0xff] %vm175_vm0, %v273_v56  ;;  %v276_v0 = vmax.f32 %v244_v60, 0.0  ;;  %307 = vst.msk [vmem:[#allocation2 + $0x111] sm:$0xff] %vm175_vm0, %v274_v59  ;;  %v1162_v5 = vld [vmem:[#allocation2 + $0x69] sm:$0xff]  ;;  %v248_v26 = vld [vmem:[%s4163_s22 + $0xd8] sm:$0xff] }
  0x35   : > { %706 = vrot.lane.b32.xlu1 %v4225_v6, %s4072_s6  ;;  %1342 = vst.msk [vmem:[#allocation3 + $0x88] sm:$0xff] %vm175_vm0, %v4308_v54  ;;  %310 = vst.msk [vmem:[#allocation2 + $0x139] sm:$0xff] %vm175_vm0, %v277_v1  ;;  %v1191_v7 = vpack.c.bf16 %v1162_v5, %v1161_v4  ;;  %v247_v25 = vld [vmem:[%s4163_s22 + $0xd0] sm:$0xff]  ;;  %v280_v29 = vmax.f32 %v248_v26, 0.0  ;;  %v1163_v35 = vld [vmem:[#allocation2 + $0x79] sm:$0xff] }
  0x36   : > { %308 = vst.msk [vmem:[#allocation2 + $0x121] sm:$0xff] %vm175_vm0, %v275_v61  ;;  %309 = vst.msk [vmem:[#allocation2 + $0x129] sm:$0xff] %vm175_vm0, %v276_v0  ;;  %v279_v28 = vmax.f32 %v247_v25, 0.0  ;;  %v249_v42 = vld [vmem:[%s4163_s22 + $0xe0] sm:$0xff]  ;;  %v250_v44 = vld [vmem:[%s4163_s22 + $0xe8] sm:$0xff] }
  0x37   : > { %311 = vst.msk [vmem:[#allocation2 + $0x141] sm:$0xff] %vm175_vm0, %v278_v3  ;;  %313 = vst.msk [vmem:[#allocation2 + $0x159] sm:$0xff] %vm175_vm0, %v280_v29  ;;  %v282_v45 = vmax.f32 %v250_v44, 0.0  ;;  %v1165_v46 = vld [vmem:[#allocation2 + $0x91] sm:$0xff]  ;;  %v1166_v48 = vld [vmem:[#allocation2 + $0x99] sm:$0xff] }
  0x38   : > { %1094 = vrot.lane.b32.xlu0 %v4236_v15, %s4076_s13  ;;  %312 = vst.msk [vmem:[#allocation2 + $0x151] sm:$0xff] %vm175_vm0, %v279_v28  ;;  %v1036_v49 = vld [vmem:[#allocation2 + $0x90] sm:$0xff]  ;;  %v1037_v50 = vld [vmem:[#allocation2 + $0x98] sm:$0xff]  ;;  %v1193_v51 = vpack.c.bf16 %v1166_v48, %v1165_v46  ;;  %v1038_v62 = vld [vmem:[#allocation2 + $0xa8] sm:$0xff] }
  0x39   : > { %964 = vrot.lane.b32.xlu1 %v4231_v11, %s4073_s7  ;;  %315 = vst.msk [vmem:[#allocation2 + $0x171] sm:$0xff] %vm175_vm0, %v282_v45  ;;  %v252_v59 = vld [vmem:[%s4163_s22 + $0xf8] sm:$0xff]  ;;  %v1039_v63 = vld [vmem:[#allocation2 + $0xb0] sm:$0xff]  ;;  %v337_v46 = vld [vmem:[#allocation2 + $0xe0] sm:$0xff] }
  0x3a   : > { %v284_v61 = vmax.f32 %v252_v59, 0.0  ;;  %v330_v0 = vld [vmem:[#allocation2 + $0x90] sm:$0xff]  ;;  %v331_v1 = vld [vmem:[#allocation2 + $0x98] sm:$0xff]  ;;  %v1065_v4 = vpack.c.bf16 %v1039_v63, %v1038_v62  ;;  %v1353_v62 = vld [vmem:[#allocation3 + $0x18] sm:$0xff] }
  0x3b   : > { %v1046_v6 = vld [vmem:[#allocation2 + $0x108] sm:$0xff]  ;;  %v1047_v8 = vld [vmem:[#allocation2 + $0x110] sm:$0xff]  ;;  %v356_v3 = vpack.c.bf16 %v331_v1, %v330_v0  ;;  %v336_v45 = vld [vmem:[#allocation2 + $0xd8] sm:$0xff] }
  0x3c   : > { %450 = vrot.lane.b32.xlu0 %v4229_v10, %s4070_s27  ;;  %v918_v9 = vld [vmem:[#allocation2 + $0x10a] sm:$0xff]  ;;  %v4334_v10 = vpack.c.bf16 %v1047_v8, %v1046_v6  ;;  %v919_v12 = vld [vmem:[#allocation2 + $0x112] sm:$0xff]  ;;  %317 = vst.msk [vmem:[#allocation2 + $0x189] sm:$0xff] %vm175_vm0, %v284_v61  ;;  %v359_v48 = vpack.c.bf16 %v337_v46, %v336_v45 }
  0x3d   : > { %1223 = vrot.lane.b32.xlu1 %v1190_v58, %s4075_s11  ;;  %v1048_v13 = vld [vmem:[#allocation2 + $0x120] sm:$0xff]  ;;  %v1049_v14 = vld [vmem:[#allocation2 + $0x128] sm:$0xff]  ;;  %v4336_v16 = vpack.c.bf16 %v919_v12, %v918_v9  ;;  %v1050_v19 = vld [vmem:[#allocation2 + $0x138] sm:$0xff]  ;;  %372 = vst.msk [vmem:[#allocation3 + $0x60] sm:$0xff] %vm175_vm0, %v356_v3 }
  0x3e   : > { %v921_v17 = vld [vmem:[#allocation2 + $0x12a] sm:$0xff]  ;;  %377 = vst.msk [vmem:[#allocation3 + $0xb0] sm:$0xff] %vm175_vm0, %v4334_v10  ;;  %v1051_v22 = vld [vmem:[#allocation2 + $0x140] sm:$0xff]  ;;  %375 = vst.msk [vmem:[#allocation3 + $0x90] sm:$0xff] %vm175_vm0, %v359_v48 }
  0x3f   : > { %1343 = vst.msk [vmem:[#allocation3 + $0x98] sm:$0xff] %vm175_vm0, %v4336_v16  ;;  %v4350_v23 = vpack.c.bf16 %v1051_v22, %v1050_v19  ;;  %v922_v31 = vld [vmem:[#allocation2 + $0x13a] sm:$0xff]  ;;  %v923_v32 = vld [vmem:[#allocation2 + $0x142] sm:$0xff]  ;;  %v1052_v37 = vld [vmem:[#allocation2 + $0x150] sm:$0xff] }
  0x40   : > { %708 = vrot.lane.b32.xlu0 %v4236_v15, %s4072_s6  ;;  %v4338_v15 = vpack.c.bf16 %v1049_v14, %v1048_v13  ;;  %v4366_v34 = vpack.c.bf16 %v923_v32, %v922_v31  ;;  %v1053_v38 = vld [vmem:[#allocation2 + $0x158] sm:$0xff]  ;;  %v332_v12 = vld [vmem:[#allocation2 + $0xa8] sm:$0xff]  ;;  %v333_v13 = vld [vmem:[#allocation2 + $0xb0] sm:$0xff] }
  0x41   : > { %579 = vrot.lane.b32.xlu1 %v4231_v11, %s4071_s30  ;;  %v920_v11 = vld [vmem:[#allocation2 + $0x122] sm:$0xff]  ;;  %379 = vst.msk [vmem:[#allocation3 + $0xd0] sm:$0xff] %vm175_vm0, %v4350_v23  ;;  %v4374_v40 = vpack.c.bf16 %v1053_v38, %v1052_v37  ;;  %v924_v52 = vld [vmem:[#allocation2 + $0x152] sm:$0xff]  ;;  %v925_v53 = vld [vmem:[#allocation2 + $0x15a] sm:$0xff]  ;;  %v357_v14 = vpack.c.bf16 %v333_v13, %v332_v12 }
  0x42   : > { %v4344_v20 = vpack.c.bf16 %v921_v17, %v920_v11  ;;  %378 = vst.msk [vmem:[#allocation3 + $0xc0] sm:$0xff] %vm175_vm0, %v4338_v15  ;;  %1345 = vst.msk [vmem:[#allocation3 + $0xb8] sm:$0xff] %vm175_vm0, %v4366_v34  ;;  %v4392_v55 = vpack.c.bf16 %v925_v53, %v924_v52  ;;  %v927_v6 = vld [vmem:[#allocation2 + $0x172] sm:$0xff]  ;;  %v1169_v11 = vld [vmem:[#allocation2 + $0xc1] sm:$0xff] }
  0x43   : > { %380 = vst.msk [vmem:[#allocation3 + $0xe0] sm:$0xff] %vm175_vm0, %v4374_v40  ;;  %v1168_v8 = vld [vmem:[#allocation2 + $0xb1] sm:$0xff]  ;;  %v1170_v17 = vld [vmem:[#allocation2 + $0xc9] sm:$0xff]  ;;  %373 = vst.msk [vmem:[#allocation3 + $0x70] sm:$0xff] %vm175_vm0, %v357_v14 }
  0x44   : > { %966 = vrot.lane.b32.xlu0 %v4241_v18, %s4073_s7  ;;  %1344 = vst.msk [vmem:[#allocation3 + $0xa8] sm:$0xff] %vm175_vm0, %v4344_v20  ;;  %1346 = vst.msk [vmem:[#allocation3 + $0xc8] sm:$0xff] %vm175_vm0, %v4392_v55  ;;  %v1040_v19 = vld [vmem:[#allocation2 + $0xc0] sm:$0xff]  ;;  %v1041_v22 = vld [vmem:[#allocation2 + $0xc8] sm:$0xff]  ;;  %v1195_v25 = vpack.c.bf16 %v1170_v17, %v1169_v11 }
  0x45   : > { %837 = vrot.lane.b32.xlu1 %v1190_v58, %s4074_s10  ;;  %v929_v28 = vld [vmem:[#allocation2 + $0x18a] sm:$0xff]  ;;  %v1066_v31 = vpack.c.bf16 %v1041_v22, %v1040_v19  ;;  %v1043_v32 = vld [vmem:[#allocation2 + $0xe0] sm:$0xff] }
  0x48   : > { %1225 = vrot.lane.b32.xlu0 %v1191_v7, %s4075_s11 }
  0x49   : > { %1096 = vrot.lane.b32.xlu1 %v4246_v21, %s4076_s13 }
  0x4c   : > { %581 = vrot.lane.b32.xlu0 %v4241_v18, %s4071_s30  ;;  %v1164_v18 = vld [vmem:[#allocation2 + $0x81] sm:$0xff] }
  0x4d   : > { %452 = vrot.lane.b32.xlu1 %v1190_v58, %s4070_s27  ;;  %v1192_v41 = vpack.c.bf16 %v1164_v18, %v1163_v35  ;;  %v1064_v58 = vpack.c.bf16 %v1037_v50, %v1036_v49  ;;  %v334_v35 = vld [vmem:[#allocation2 + $0xc0] sm:$0xff]  ;;  %v335_v18 = vld [vmem:[#allocation2 + $0xc8] sm:$0xff]  ;;  %v1173_v49 = vld [vmem:[#allocation2 + $0xf1] sm:$0xff] }
  0x4e   : > { %v358_v37 = vpack.c.bf16 %v335_v18, %v334_v35  ;;  %v1174_v50 = vld [vmem:[#allocation2 + $0xf9] sm:$0xff] }
  0x50   : > { %839 = vrot.lane.b32.xlu0 %v1191_v7, %s4074_s10  ;;  %374 = vst.msk [vmem:[#allocation3 + $0x80] sm:$0xff] %vm175_vm0, %v358_v37  ;;  %v1181_v37 = vld [vmem:[#allocation2 + $0x151] sm:$0xff] }
  0x51   : > { %710 = vrot.lane.b32.xlu1 %v4246_v21, %s4072_s6  ;;  %v281_v21 = vmax.f32 %v249_v42, 0.0  ;;  %v1172_v42 = vld [vmem:[#allocation2 + $0xe1] sm:$0xff] }
  0x53   : > { %314 = vst.msk [vmem:[#allocation2 + $0x169] sm:$0xff] %vm175_vm0, %v281_v21 }
  0x54   : > { %1098 = vrot.lane.b32.xlu0 %v4256_v27, %s4076_s13 }
  0x55   : > { %968 = vrot.lane.b32.xlu1 %v4252_v24, %s4073_s7 }
  0x58   : > { %454 = vrot.lane.b32.xlu0 %v1191_v7, %s4070_s27 }
  0x59   : > { %1227 = vrot.lane.b32.xlu1 %v1192_v41, %s4075_s11 }
  0x5a   : > { %v1054_v56 = vld [vmem:[#allocation2 + $0x168] sm:$0xff]  ;;  %v1055_v57 = vld [vmem:[#allocation2 + $0x170] sm:$0xff] }
  0x5b   : > { %v926_v5 = vld [vmem:[#allocation2 + $0x16a] sm:$0xff] }
  0x5c   : > { %712 = vrot.lane.b32.xlu0 %v4256_v27, %s4072_s6  ;;  %v4394_v27 = vpack.c.bf16 %v1055_v57, %v1054_v56  ;;  %v4412_v7 = vpack.c.bf16 %v927_v6, %v926_v5  ;;  %v1177_v5 = vld [vmem:[#allocation2 + $0x121] sm:$0xff]  ;;  %v1178_v6 = vld [vmem:[#allocation2 + $0x129] sm:$0xff] }
  0x5d   : > { %583 = vrot.lane.b32.xlu1 %v4252_v24, %s4071_s30  ;;  %v251_v24 = vld [vmem:[%s4163_s22 + $0xf0] sm:$0xff] }
  0x5e   : > { %381 = vst.msk [vmem:[#allocation3 + $0xf0] sm:$0xff] %vm175_vm0, %v4394_v27  ;;  %v283_v60 = vmax.f32 %v251_v24, 0.0  ;;  %1347 = vst.msk [vmem:[#allocation3 + $0xd8] sm:$0xff] %vm175_vm0, %v4412_v7 }
  0x60   : > { %970 = vrot.lane.b32.xlu0 %v4261_v30, %s4073_s7  ;;  %316 = vst.msk [vmem:[#allocation2 + $0x181] sm:$0xff] %vm175_vm0, %v283_v60  ;;  %v1176_v60 = vld [vmem:[#allocation2 + $0x111] sm:$0xff] }
  0x61   : > { %841 = vrot.lane.b32.xlu1 %v1192_v41, %s4074_s10 }
  0x64   : > { %1229 = vrot.lane.b32.xlu0 %v1193_v51, %s4075_s11 }
  0x65   : > { %1100 = vrot.lane.b32.xlu1 %v1064_v58, %s4076_s13 }
  0x67   : > { %v928_v26 = vld [vmem:[#allocation2 + $0x182] sm:$0xff] }
  0x68   : > { %585 = vrot.lane.b32.xlu0 %v4261_v30, %s4071_s30  ;;  %v1167_v30 = vld [vmem:[#allocation2 + $0xa9] sm:$0xff]  ;;  %v4428_v29 = vpack.c.bf16 %v929_v28, %v928_v26 }
  0x69   : > { %456 = vrot.lane.b32.xlu1 %v1192_v41, %s4070_s27  ;;  %v1194_v9 = vpack.c.bf16 %v1168_v8, %v1167_v30  ;;  %v1171_v41 = vld [vmem:[#allocation2 + $0xd9] sm:$0xff]  ;;  %v1199_v8 = vpack.c.bf16 %v1178_v6, %v1177_v5  ;;  %v1357_v28 = vld [vmem:[#allocation3 + $0x38] sm:$0xff] }
  0x6a   : > { %1348 = vst.msk [vmem:[#allocation3 + $0xe8] sm:$0xff] %vm175_vm0, %v4428_v29  ;;  %v1196_v44 = vpack.c.bf16 %v1172_v42, %v1171_v41  ;;  %v1316_v5 = vld [vmem:[#allocation2 + $0x19a] sm:$0xff]  ;;  %v1317_v6 = vld [vmem:[#allocation2 + $0x1a2] sm:$0xff] }
  0x6c   : > { %843 = vrot.lane.b32.xlu0 %v1193_v51, %s4074_s10 }
  0x6d   : > { %714 = vrot.lane.b32.xlu1 %v1064_v58, %s4072_s6 }
  0x70   : > { %1102 = vrot.lane.b32.xlu0 %v1065_v4, %s4076_s13 }
  0x71   : > { %972 = vrot.lane.b32.xlu1 %v4270_v33, %s4073_s7 }
  0x74   : > { %458 = vrot.lane.b32.xlu0 %v1193_v51, %s4070_s27  ;;  %v1197_v51 = vpack.c.bf16 %v1174_v50, %v1173_v49 }
  0x75   : > { %1231 = vrot.lane.b32.xlu1 %v1194_v9, %s4075_s11 }
  0x78   : > { %716 = vrot.lane.b32.xlu0 %v1065_v4, %s4072_s6 }
  0x79   : > { %587 = vrot.lane.b32.xlu1 %v4270_v33, %s4071_s30  ;;  %v1042_v33 = vld [vmem:[#allocation2 + $0xd8] sm:$0xff] }
  0x7a   : > { %v1067_v38 = vpack.c.bf16 %v1043_v32, %v1042_v33 }
  0x7c   : > { %974 = vrot.lane.b32.xlu0 %v4274_v36, %s4073_s7 }
  0x7d   : > { %845 = vrot.lane.b32.xlu1 %v1194_v9, %s4074_s10 }
  0x80   : > { %1233 = vrot.lane.b32.xlu0 %v1195_v25, %s4075_s11 }
  0x81   : > { %1104 = vrot.lane.b32.xlu1 %v1066_v31, %s4076_s13 }
  0x84   : > { %589 = vrot.lane.b32.xlu0 %v4274_v36, %s4071_s30  ;;  %v447_v36 = vpop.permute.xlu0 %446 }
  0x85   : > { %460 = vrot.lane.b32.xlu1 %v1194_v9, %s4070_s27  ;;  %495 = vst.msk [vmem:[#allocation3] sm:$0xff] %vm494_vm3, %v447_v36 }
  0x88   : > { %847 = vrot.lane.b32.xlu0 %v1195_v25, %s4074_s10 }
  0x89   : > { %718 = vrot.lane.b32.xlu1 %v1066_v31, %s4072_s6 }
  0x8c   : > { %1106 = vrot.lane.b32.xlu0 %v1067_v38, %s4076_s13 }
  0x8d   : > { %976 = vrot.lane.b32.xlu1 %v4281_v39, %s4073_s7 }
  0x90   : > { %462 = vrot.lane.b32.xlu0 %v1195_v25, %s4070_s27  ;;  %v1180_v25 = vld [vmem:[#allocation2 + $0x141] sm:$0xff] }
  0x91   : > { %1235 = vrot.lane.b32.xlu1 %v1196_v44, %s4075_s11 }
  0x94   : > { %720 = vrot.lane.b32.xlu0 %v1067_v38, %s4072_s6  ;;  %v1182_v38 = vld [vmem:[#allocation2 + $0x159] sm:$0xff] }
  0x95   : > { %591 = vrot.lane.b32.xlu1 %v4281_v39, %s4071_s30  ;;  %v1201_v42 = vpack.c.bf16 %v1182_v38, %v1181_v37 }
  0x96   : > { %v576_v21 = vpop.permute.xlu0 %575 }
  0x97   : > { %624 = vst.msk [vmem:[#allocation3] sm:$0xff] %vm623_vm4, %v576_v21  ;;  %v705_v52 = vpop.permute.xlu1 %704 }
  0x98   : > { %978 = vrot.lane.b32.xlu0 %v4285_v43, %s4073_s7  ;;  %753 = vst.msk [vmem:[#allocation3] sm:$0xff] %vm752_vm5, %v705_v52 }
  0x99   : > { %849 = vrot.lane.b32.xlu1 %v1196_v44, %s4074_s10 }
  0x9a   : > { %v963_v53 = vpop.permute.xlu0 %962 }
  0x9b   : > { %v834_v56 = vpop.permute.xlu1 %833 }
  0x9c   : > { %1237 = vrot.lane.b32.xlu0 %v1197_v51, %s4075_s11  ;;  %882 = vst.msk [vmem:[#allocation3] sm:$0xff] %vm881_vm6, %v834_v56 }
  0x9d   : > { %1011 = vst.msk [vmem:[#allocation3] sm:$0xff] %vm1010_vm7, %v963_v53  ;;  %1108 = vrot.lane.b32.xlu1 %v4291_v47, %s4076_s13  ;;  %v1361_v53 = vld [vmem:[#allocation3 + $0x58] sm:$0xff] }
  0x9e   : > { %v1222_v57 = vpop.permute.xlu0 %1221 }
  0x9f   : > { %v1093_v39 = vpop.permute.xlu1 %1092 }
  0xa0   : > { %593 = vrot.lane.b32.xlu0 %v4285_v43, %s4071_s30  ;;  %1141 = vst.msk [vmem:[#allocation3] sm:$0xff] %vm1140_vm8, %v1093_v39  ;;  %v1175_v43 = vld [vmem:[#allocation2 + $0x109] sm:$0xff] }
  0xa1   : > { %1270 = vst.msk [vmem:[#allocation3] sm:$0xff] %vm1269_vm9, %v1222_v57  ;;  %464 = vrot.lane.b32.xlu1 %v1196_v44, %s4070_s27  ;;  %v1198_v1 = vpack.c.bf16 %v1176_v60, %v1175_v43  ;;  %v1186_v43 = vld [vmem:[#allocation2 + $0x189] sm:$0xff] }
  0xa2   : > { %v578_v58 = vpop.permute.xlu0 %577 }
  0xa3   : > { %v449_v24 = vpop.permute.xlu1 %448 }
  0xa4   : > { %851 = vrot.lane.b32.xlu0 %v1197_v51, %s4074_s10  ;;  %496 = vst.msk [vmem:[#allocation3 + $0x10] sm:$0xff] %vm494_vm3, %v449_v24 }
  0xa5   : > { %625 = vst.msk [vmem:[#allocation3 + $0x10] sm:$0xff] %vm623_vm4, %v578_v58  ;;  %722 = vrot.lane.b32.xlu1 %v4291_v47, %s4072_s6 }
  0xa6   : > { %v836_v59 = vpop.permute.xlu0 %835 }
  0xa7   : > { %v707_v61 = vpop.permute.xlu1 %706 }
  0xa8   : > { %1110 = vrot.lane.b32.xlu0 %v4334_v10, %s4076_s13  ;;  %754 = vst.msk [vmem:[#allocation3 + $0x10] sm:$0xff] %vm752_vm5, %v707_v61  ;;  %v1350_v63 = vld [vmem:[#allocation3] sm:$0xff]  ;;  %v1056_v61 = vld [vmem:[#allocation2 + $0x180] sm:$0xff] }
  0xa9   : > { %883 = vst.msk [vmem:[#allocation3 + $0x10] sm:$0xff] %vm881_vm6, %v836_v59  ;;  %1535 = vmatmul.mubr.bf16.vlgmr.msra.gmra.mrb[0].mxu0 %v1350_v63  ;;  %980 = vrot.lane.b32.xlu1 %v4308_v54, %s4073_s7  ;;  %v1185_v59 = vld [vmem:[#allocation2 + $0x181] sm:$0xff] }
  0xaa   : > { %v1095_v0 = vpop.permute.xlu0 %1094  ;;  %3793 = vmatprep.mubr.msk.bf16.mxu0 %vm175_vm0, %v1353_v62  ;;  %v1057_v62 = vld [vmem:[#allocation2 + $0x188] sm:$0xff]  ;;  %v1203_v63 = vpack.c.bf16 %v1186_v43, %v1185_v59 }
  0xab   : > { %v965_v47 = vpop.permute.xlu1 %964 }
  0xac   : > { %466 = vrot.lane.b32.xlu0 %v1197_v51, %s4070_s27  ;;  %1012 = vst.msk [vmem:[#allocation3 + $0x10] sm:$0xff] %vm1010_vm7, %v965_v47  ;;  %v1184_v51 = vld [vmem:[#allocation2 + $0x171] sm:$0xff] }
  0xad   : > { %1142 = vst.msk [vmem:[#allocation3 + $0x10] sm:$0xff] %vm1140_vm8, %v1095_v0  ;;  %1239 = vrot.lane.b32.xlu1 %v1198_v1, %s4075_s11  ;;  %v1363_v47 = vld [vmem:[#allocation3 + $0x68] sm:$0xff] }
  0xae   : > { %v451_v3 = vpop.permute.xlu0 %450 }
  0xaf   : > { %497 = vst.msk [vmem:[#allocation3 + $0x20] sm:$0xff] %vm494_vm3, %v451_v3  ;;  %v1224_v4 = vpop.permute.xlu1 %1223 }
  0xb0   : > { %724 = vrot.lane.b32.xlu0 %v4334_v10, %s4072_s6  ;;  %1271 = vst.msk [vmem:[#allocation3 + $0x10] sm:$0xff] %vm1269_vm9, %v1224_v4  ;;  %v1355_v10 = vld [vmem:[#allocation3 + $0x28] sm:$0xff] }
  0xb1   : > { %595 = vrot.lane.b32.xlu1 %v4308_v54, %s4071_s30 }
  0xb2   : > { %v709_v30 = vpop.permute.xlu0 %708 }
  0xb3   : > { %v580_v9 = vpop.permute.xlu1 %579 }
  0xb4   : > { %982 = vrot.lane.b32.xlu0 %v4336_v16, %s4073_s7  ;;  %626 = vst.msk [vmem:[#allocation3 + $0x20] sm:$0xff] %vm623_vm4, %v580_v9  ;;  %v1058_v9 = vld [vmem:[#allocation2 + $0x198] sm:$0xff] }
  0xb5   : > { %755 = vst.msk [vmem:[#allocation3 + $0x20] sm:$0xff] %vm752_vm5, %v709_v30  ;;  %853 = vrot.lane.b32.xlu1 %v1198_v1, %s4074_s10  ;;  %v1333_v30 = vpack.c.bf16 %v1317_v6, %v1316_v5 }
  0xb6   : > { %v967_v12 = vpop.permute.xlu0 %966 }
  0xb7   : > { %v838_v13 = vpop.permute.xlu1 %837  ;;  %v1352_v14 = vld [vmem:[#allocation3 + $0x10] sm:$0xff]  ;;  %1349 = vst.msk [vmem:[#allocation3 + $0xf8] sm:$0xff] %vm175_vm0, %v1333_v30 }
  0xb8   : > { %1241 = vrot.lane.b32.xlu0 %v1199_v8, %s4075_s11  ;;  %884 = vst.msk [vmem:[#allocation3 + $0x20] sm:$0xff] %vm881_vm6, %v838_v13  ;;  %1543 = vmatmul.mubr.bf16.gmra.mrb[4].mxu0 %v1352_v14 }
  0xb9   : > { %1013 = vst.msk [vmem:[#allocation3 + $0x20] sm:$0xff] %vm1010_vm7, %v967_v12  ;;  %1112 = vrot.lane.b32.xlu1 %v4338_v15, %s4076_s13  ;;  %3794 = vmatprep.mubr.msk.bf16.mxu0 %vm175_vm0, %v1355_v10  ;;  %v1059_v12 = vld [vmem:[#allocation2 + $0x1a0] sm:$0xff] }
  0xba   : > { %v1226_v54 = vpop.permute.xlu0 %1225  ;;  %v1075_v13 = vpack.c.bf16 %v1059_v12, %v1058_v9 }
  0xbb   : > { %v1097_v11 = vpop.permute.xlu1 %1096 }
  0xbc   : > { %597 = vrot.lane.b32.xlu0 %v4336_v16, %s4071_s30  ;;  %1143 = vst.msk [vmem:[#allocation3 + $0x20] sm:$0xff] %vm1140_vm8, %v1097_v11  ;;  %v1179_v16 = vld [vmem:[#allocation2 + $0x139] sm:$0xff]  ;;  %v1188_v11 = vld [vmem:[#allocation2 + $0x1a1] sm:$0xff] }
  0xbd   : > { %1272 = vst.msk [vmem:[#allocation3 + $0x20] sm:$0xff] %vm1269_vm9, %v1226_v54  ;;  %468 = vrot.lane.b32.xlu1 %v1198_v1, %s4070_s27  ;;  %v1200_v32 = vpack.c.bf16 %v1180_v25, %v1179_v16 }
  0xbe   : > { %v582_v17 = vpop.permute.xlu0 %581 }
  0xbf   : > { %v453_v19 = vpop.permute.xlu1 %452 }
  0xc0   : > { %855 = vrot.lane.b32.xlu0 %v1199_v8, %s4074_s10  ;;  %498 = vst.msk [vmem:[#allocation3 + $0x30] sm:$0xff] %vm494_vm3, %v453_v19 }
  0xc1   : > { %627 = vst.msk [vmem:[#allocation3 + $0x30] sm:$0xff] %vm623_vm4, %v582_v17  ;;  %726 = vrot.lane.b32.xlu1 %v4338_v15, %s4072_s6  ;;  %v4585_v17 = vld [vmem:[#allocation3 + $0xf8] sm:$0xff] }
  0xc2   : > { %v840_v22 = vpop.permute.xlu0 %839  ;;  %3045 = vst.msk [vmem:[#allocation3 + $0xf8] sm:$0xff] %vm175_vm0, %v1333_v30 }
  0xc3   : > { %v711_v26 = vpop.permute.xlu1 %710 }
  0xc4   : > { %1114 = vrot.lane.b32.xlu0 %v4350_v23, %s4076_s13  ;;  %756 = vst.msk [vmem:[#allocation3 + $0x30] sm:$0xff] %vm752_vm5, %v711_v26  ;;  %v1354_v31 = vld [vmem:[#allocation3 + $0x20] sm:$0xff] }
  0xc5   : > { %885 = vst.msk [vmem:[#allocation3 + $0x30] sm:$0xff] %vm881_vm6, %v840_v22  ;;  %984 = vrot.lane.b32.xlu1 %v4344_v20, %s4073_s7  ;;  %1551 = vmatmul.mubr.bf16.gmra.mrb[8].mxu0 %v1354_v31  ;;  %v1365_v22 = vld [vmem:[#allocation3 + $0x78] sm:$0xff] }
  0xc6   : > { %v1099_v33 = vpop.permute.xlu0 %1098  ;;  %3795 = vmatprep.mubr.msk.bf16.mxu0 %vm175_vm0, %v1357_v28 }
  0xc7   : > { %v969_v15 = vpop.permute.xlu1 %968 }
  0xc8   : > { %470 = vrot.lane.b32.xlu0 %v1199_v8, %s4070_s27  ;;  %1014 = vst.msk [vmem:[#allocation3 + $0x30] sm:$0xff] %vm1010_vm7, %v969_v15 }
  0xc9   : > { %1144 = vst.msk [vmem:[#allocation3 + $0x30] sm:$0xff] %vm1140_vm8, %v1099_v33  ;;  %1243 = vrot.lane.b32.xlu1 %v1200_v32, %s4075_s11 }
  0xca   : > { %v455_v35 = vpop.permute.xlu0 %454 }
  0xcb   : > { %499 = vst.msk [vmem:[#allocation3 + $0x40] sm:$0xff] %vm494_vm3, %v455_v35  ;;  %v1228_v18 = vpop.permute.xlu1 %1227  ;;  %v1367_v35 = vld [vmem:[#allocation3 + $0x88] sm:$0xff] }
  0xcc   : > { %728 = vrot.lane.b32.xlu0 %v4350_v23, %s4072_s6  ;;  %1273 = vst.msk [vmem:[#allocation3 + $0x30] sm:$0xff] %vm1269_vm9, %v1228_v18  ;;  %v1359_v23 = vld [vmem:[#allocation3 + $0x48] sm:$0xff] }
  0xcd   : > { %599 = vrot.lane.b32.xlu1 %v4344_v20, %s4071_s30 }
  0xce   : > { %v713_v41 = vpop.permute.xlu0 %712 }
  0xcf   : > { %v584_v36 = vpop.permute.xlu1 %583 }
  0xd0   : > { %986 = vrot.lane.b32.xlu0 %v4366_v34, %s4073_s7  ;;  %628 = vst.msk [vmem:[#allocation3 + $0x40] sm:$0xff] %vm623_vm4, %v584_v36 }
  0xd1   : > { %757 = vst.msk [vmem:[#allocation3 + $0x40] sm:$0xff] %vm752_vm5, %v713_v41  ;;  %857 = vrot.lane.b32.xlu1 %v1200_v32, %s4074_s10  ;;  %v1711_v41 = vld [vmem:[%s5304_s2] sm:$0xf] }
  0xd2   : > { %v971_v44 = vpop.permute.xlu0 %970  ;;  %3990 = vmatprep.subr.msk.bf16.mxu1 %vm1761_vm10, %v1711_v41 }
  0xd3   : > { %v842_v21 = vpop.permute.xlu1 %841  ;;  %v1356_v45 = vld [vmem:[#allocation3 + $0x30] sm:$0xff] }
  0xd4   : > { %1245 = vrot.lane.b32.xlu0 %v1201_v42, %s4075_s11  ;;  %886 = vst.msk [vmem:[#allocation3 + $0x40] sm:$0xff] %vm881_vm6, %v842_v21  ;;  %1559 = vmatmul.mubr.bf16.gmra.mrb[12].mxu0 %v1356_v45 }
  0xd5   : > { %1015 = vst.msk [vmem:[#allocation3 + $0x40] sm:$0xff] %vm1010_vm7, %v971_v44  ;;  %1116 = vrot.lane.b32.xlu1 %v4374_v40, %s4076_s13  ;;  %3796 = vmatprep.mubr.msk.bf16.mxu0 %vm175_vm0, %v1359_v23 }
  0xd6   : > { %v1230_v20 = vpop.permute.xlu0 %1229 }
  0xd7   : > { %v1101_v46 = vpop.permute.xlu1 %1100 }
  0xd8   : > { %601 = vrot.lane.b32.xlu0 %v4366_v34, %s4071_s30  ;;  %1145 = vst.msk [vmem:[#allocation3 + $0x40] sm:$0xff] %vm1140_vm8, %v1101_v46  ;;  %v1183_v34 = vld [vmem:[#allocation2 + $0x169] sm:$0xff] }
  0xd9   : > { %1274 = vst.msk [vmem:[#allocation3 + $0x40] sm:$0xff] %vm1269_vm9, %v1230_v20  ;;  %472 = vrot.lane.b32.xlu1 %v1200_v32, %s4070_s27  ;;  %v1202_v39 = vpack.c.bf16 %v1184_v51, %v1183_v34  ;;  %v1369_v20 = vld [vmem:[#allocation3 + $0x98] sm:$0xff] }
  0xda   : > { %v586_v48 = vpop.permute.xlu0 %585 }
  0xdb   : > { %v457_v49 = vpop.permute.xlu1 %456 }
  0xdc   : > { %859 = vrot.lane.b32.xlu0 %v1201_v42, %s4074_s10  ;;  %500 = vst.msk [vmem:[#allocation3 + $0x50] sm:$0xff] %vm494_vm3, %v457_v49 }
  0xdd   : > { %629 = vst.msk [vmem:[#allocation3 + $0x50] sm:$0xff] %vm623_vm4, %v586_v48  ;;  %730 = vrot.lane.b32.xlu1 %v4374_v40, %s4072_s6 }
  0xde   : > { %v844_v50 = vpop.permute.xlu0 %843 }
  0xdf   : > { %v715_v52 = vpop.permute.xlu1 %714 }
  0xe0   : > { %1118 = vrot.lane.b32.xlu0 %v4394_v27, %s4076_s13  ;;  %758 = vst.msk [vmem:[#allocation3 + $0x50] sm:$0xff] %vm752_vm5, %v715_v52  ;;  %v1358_v56 = vld [vmem:[#allocation3 + $0x40] sm:$0xff] }
  0xe1   : > { %887 = vst.msk [vmem:[#allocation3 + $0x50] sm:$0xff] %vm881_vm6, %v844_v50  ;;  %988 = vrot.lane.b32.xlu1 %v4392_v55, %s4073_s7  ;;  %1567 = vmatmul.mubr.bf16.gmra.mrb[16].mxu0 %v1358_v56  ;;  %v1371_v56 = vld [vmem:[#allocation3 + $0xa8] sm:$0xff] }
  0xe2   : > { %v1103_v57 = vpop.permute.xlu0 %1102  ;;  %3797 = vmatprep.mubr.msk.bf16.mxu0 %vm175_vm0, %v1361_v53 }
  0xe3   : > { %v973_v40 = vpop.permute.xlu1 %972 }
  0xe4   : > { %474 = vrot.lane.b32.xlu0 %v1201_v42, %s4070_s27  ;;  %1016 = vst.msk [vmem:[#allocation3 + $0x50] sm:$0xff] %vm1010_vm7, %v973_v40  ;;  %v1763_v42 = vsel %vm1761_vm10, %v1711_v41, 0 }
  0xe5   : > { %1146 = vst.msk [vmem:[#allocation3 + $0x50] sm:$0xff] %vm1140_vm8, %v1103_v57  ;;  %1247 = vrot.lane.b32.xlu1 %v1202_v39, %s4075_s11  ;;  %3921 = vmatpush3.bf16.msra.mxu1 %v1763_v42 }
  0xe6   : > { %v459_v58 = vpop.permute.xlu0 %458  ;;  %3199 = vmatprep.subr.bf16.mxu1 %v4069_v2 }
  0xe7   : > { %501 = vst.msk [vmem:[#allocation3 + $0x60] sm:$0xff] %vm494_vm3, %v459_v58  ;;  %v1232_v24 = vpop.permute.xlu1 %1231 }
  0xe8   : > { %732 = vrot.lane.b32.xlu0 %v4394_v27, %s4072_s6  ;;  %1275 = vst.msk [vmem:[#allocation3 + $0x50] sm:$0xff] %vm1269_vm9, %v1232_v24  ;;  %v1074_v27 = vpack.c.bf16 %v1057_v62, %v1056_v61  ;;  %v1373_v61 = vld [vmem:[#allocation3 + $0xb8] sm:$0xff] }
  0xe9   : > { %603 = vrot.lane.b32.xlu1 %v4392_v55, %s4071_s30 }
  0xea   : > { %v717_v60 = vpop.permute.xlu0 %716 }
  0xeb   : > { %v588_v0 = vpop.permute.xlu1 %587 }
  0xec   : > { %990 = vrot.lane.b32.xlu0 %v4412_v7, %s4073_s7  ;;  %630 = vst.msk [vmem:[#allocation3 + $0x60] sm:$0xff] %vm623_vm4, %v588_v0 }
  0xed   : > { %759 = vst.msk [vmem:[#allocation3 + $0x60] sm:$0xff] %vm752_vm5, %v717_v60  ;;  %861 = vrot.lane.b32.xlu1 %v1202_v39, %s4074_s10 }
  0xee   : > { %v975_v1 = vpop.permute.xlu0 %974 }
  0xef   : > { %v846_v3 = vpop.permute.xlu1 %845  ;;  %v1360_v55 = vld [vmem:[#allocation3 + $0x50] sm:$0xff] }
  0xf0   : > { %1249 = vrot.lane.b32.xlu0 %v1203_v63, %s4075_s11  ;;  %888 = vst.msk [vmem:[#allocation3 + $0x60] sm:$0xff] %vm881_vm6, %v846_v3  ;;  %1575 = vmatmul.mubr.bf16.gmra.mrb[20].mxu0 %v1360_v55 }
  0xf1   : > { %1017 = vst.msk [vmem:[#allocation3 + $0x60] sm:$0xff] %vm1010_vm7, %v975_v1  ;;  %1120 = vrot.lane.b32.xlu1 %v1074_v27, %s4076_s13  ;;  %3798 = vmatprep.mubr.msk.bf16.mxu0 %vm175_vm0, %v1363_v47 }
  0xf2   : > { %v1234_v4 = vpop.permute.xlu0 %1233 }
  0xf3   : > { %v1105_v8 = vpop.permute.xlu1 %1104 }
  0xf4   : > { %605 = vrot.lane.b32.xlu0 %v4412_v7, %s4071_s30  ;;  %1147 = vst.msk [vmem:[#allocation3 + $0x60] sm:$0xff] %vm1140_vm8, %v1105_v8  ;;  %v1187_v7 = vld [vmem:[#allocation2 + $0x199] sm:$0xff] }
  0xf5   : > { %1276 = vst.msk [vmem:[#allocation3 + $0x60] sm:$0xff] %vm1269_vm9, %v1234_v4  ;;  %476 = vrot.lane.b32.xlu1 %v1202_v39, %s4070_s27  ;;  %v1204_v26 = vpack.c.bf16 %v1188_v11, %v1187_v7  ;;  %v1375_v4 = vld [vmem:[#allocation3 + $0xc8] sm:$0xff] }
  0xf6   : > { %v590_v10 = vpop.permute.xlu0 %589 }
  0xf7   : > { %v461_v14 = vpop.permute.xlu1 %460 }
  0xf8   : > { %863 = vrot.lane.b32.xlu0 %v1203_v63, %s4074_s10  ;;  %502 = vst.msk [vmem:[#allocation3 + $0x70] sm:$0xff] %vm494_vm3, %v461_v14  ;;  %v1377_v14 = vld [vmem:[#allocation3 + $0xd8] sm:$0xff] }
  0xf9   : > { %631 = vst.msk [vmem:[#allocation3 + $0x70] sm:$0xff] %vm623_vm4, %v590_v10  ;;  %734 = vrot.lane.b32.xlu1 %v1074_v27, %s4072_s6 }
  0xfa   : > { %v848_v54 = vpop.permute.xlu0 %847 }
  0xfb   : > { %v719_v19 = vpop.permute.xlu1 %718 }
  0xfc   : > { %1122 = vrot.lane.b32.xlu0 %v1075_v13, %s4076_s13  ;;  %760 = vst.msk [vmem:[#allocation3 + $0x70] sm:$0xff] %vm752_vm5, %v719_v19  ;;  %v1362_v16 = vld [vmem:[#allocation3 + $0x60] sm:$0xff] }
  0xfd   : > { %889 = vst.msk [vmem:[#allocation3 + $0x70] sm:$0xff] %vm881_vm6, %v848_v54  ;;  %992 = vrot.lane.b32.xlu1 %v4428_v29, %s4073_s7  ;;  %1583 = vmatmul.mubr.bf16.gmra.mrb[24].mxu0 %v1362_v16 }
  0xfe   : > { %v1107_v25 = vpop.permute.xlu0 %1106  ;;  %3799 = vmatprep.mubr.msk.bf16.mxu0 %vm175_vm0, %v1365_v22 }
  0xff   : > { %v977_v28 = vpop.permute.xlu1 %976 }
 0x100   : > { %1018 = vst.msk [vmem:[#allocation3 + $0x70] sm:$0xff] %vm1010_vm7, %v977_v28  ;;  %v1379_v28 = vld [vmem:[#allocation3 + $0xe8] sm:$0xff] }
 0x101   : > { %1148 = vst.msk [vmem:[#allocation3 + $0x70] sm:$0xff] %vm1140_vm8, %v1107_v25  ;;  %1251 = vrot.lane.b32.xlu1 %v1204_v26, %s4075_s11 }
 0x102   : > { %v463_v31 = vpop.permute.xlu0 %462 }
 0x103   : > { %503 = vst.msk [vmem:[#allocation3 + $0x80] sm:$0xff] %vm494_vm3, %v463_v31  ;;  %v1236_v33 = vpop.permute.xlu1 %1235 }
 0x104   : > { %1277 = vst.msk [vmem:[#allocation3 + $0x70] sm:$0xff] %vm1269_vm9, %v1236_v33 }
 0x106   : > { %v721_v32 = vpop.permute.xlu0 %720 }
 0x107   : > { %v592_v15 = vpop.permute.xlu1 %591 }
 0x108   : > { %632 = vst.msk [vmem:[#allocation3 + $0x80] sm:$0xff] %vm623_vm4, %v592_v15 }
 0x109   : > { %761 = vst.msk [vmem:[#allocation3 + $0x80] sm:$0xff] %vm752_vm5, %v721_v32 }
 0x10a   : > { %v979_v29 = vpop.permute.xlu0 %978 }
 0x10b   : > { %v850_v18 = vpop.permute.xlu1 %849  ;;  %v1364_v37 = vld [vmem:[#allocation3 + $0x70] sm:$0xff] }
 0x10c   : > { %890 = vst.msk [vmem:[#allocation3 + $0x80] sm:$0xff] %vm881_vm6, %v850_v18  ;;  %1591 = vmatmul.mubr.bf16.gmra.mrb[28].mxu0 %v1364_v37 }
 0x10d   : > { %1019 = vst.msk [vmem:[#allocation3 + $0x80] sm:$0xff] %vm1010_vm7, %v979_v29  ;;  %3800 = vmatprep.mubr.msk.bf16.mxu0 %vm175_vm0, %v1367_v35 }
 0x10e   : > { %v1238_v38 = vpop.permute.xlu0 %1237 }
 0x10f   : > { %v1109_v36 = vpop.permute.xlu1 %1108 }
 0x110   : > { %1149 = vst.msk [vmem:[#allocation3 + $0x80] sm:$0xff] %vm1140_vm8, %v1109_v36 }
 0x111   : > { %1278 = vst.msk [vmem:[#allocation3 + $0x80] sm:$0xff] %vm1269_vm9, %v1238_v38 }
 0x112   : > { %v594_v44 = vpop.permute.xlu0 %593 }
 0x113   : > { %v465_v23 = vpop.permute.xlu1 %464 }
 0x114   : > { %504 = vst.msk [vmem:[#allocation3 + $0x90] sm:$0xff] %vm494_vm3, %v465_v23 }
 0x115   : > { %633 = vst.msk [vmem:[#allocation3 + $0x90] sm:$0xff] %vm623_vm4, %v594_v44 }
 0x116   : > { %v852_v21 = vpop.permute.xlu0 %851 }
 0x117   : > { %v723_v45 = vpop.permute.xlu1 %722 }
 0x118   : > { %762 = vst.msk [vmem:[#allocation3 + $0x90] sm:$0xff] %vm752_vm5, %v723_v45  ;;  %v1366_v46 = vld [vmem:[#allocation3 + $0x80] sm:$0xff] }
 0x119   : > { %891 = vst.msk [vmem:[#allocation3 + $0x90] sm:$0xff] %vm881_vm6, %v852_v21  ;;  %1599 = vmatmul.mubr.bf16.gmra.mrb[32].mxu0 %v1366_v46 }
 0x11a   : > { %v1111_v48 = vpop.permute.xlu0 %1110  ;;  %3801 = vmatprep.mubr.msk.bf16.mxu0 %vm175_vm0, %v1369_v20 }
 0x11b   : > { %v981_v49 = vpop.permute.xlu1 %980 }
 0x11c   : > { %1020 = vst.msk [vmem:[#allocation3 + $0x90] sm:$0xff] %vm1010_vm7, %v981_v49 }
 0x11d   : > { %1150 = vst.msk [vmem:[#allocation3 + $0x90] sm:$0xff] %vm1140_vm8, %v1111_v48 }
 0x11e   : > { %v467_v50 = vpop.permute.xlu0 %466 }
 0x11f   : > { %505 = vst.msk [vmem:[#allocation3 + $0xa0] sm:$0xff] %vm494_vm3, %v467_v50  ;;  %v1240_v34 = vpop.permute.xlu1 %1239 }
 0x120   : > { %1279 = vst.msk [vmem:[#allocation3 + $0x90] sm:$0xff] %vm1269_vm9, %v1240_v34 }
 0x122   : > { %v725_v51 = vpop.permute.xlu0 %724 }
 0x123   : > { %v596_v52 = vpop.permute.xlu1 %595 }
 0x124   : > { %634 = vst.msk [vmem:[#allocation3 + $0xa0] sm:$0xff] %vm623_vm4, %v596_v52 }
 0x125   : > { %763 = vst.msk [vmem:[#allocation3 + $0xa0] sm:$0xff] %vm752_vm5, %v725_v51 }
 0x126   : > { %v983_v53 = vpop.permute.xlu0 %982 }
 0x127   : > { %v854_v57 = vpop.permute.xlu1 %853  ;;  %v1368_v39 = vld [vmem:[#allocation3 + $0x90] sm:$0xff] }
 0x128   : > { %892 = vst.msk [vmem:[#allocation3 + $0xa0] sm:$0xff] %vm881_vm6, %v854_v57  ;;  %1607 = vmatmul.mubr.bf16.gmra.mrb[36].mxu0 %v1368_v39 }
 0x129   : > { %1021 = vst.msk [vmem:[#allocation3 + $0xa0] sm:$0xff] %vm1010_vm7, %v983_v53  ;;  %3802 = vmatprep.mubr.msk.bf16.mxu0 %vm175_vm0, %v1371_v56 }
 0x12a   : > { %v1242_v40 = vpop.permute.xlu0 %1241 }
 0x12b   : > { %v1113_v58 = vpop.permute.xlu1 %1112 }
 0x12c   : > { %1151 = vst.msk [vmem:[#allocation3 + $0xa0] sm:$0xff] %vm1140_vm8, %v1113_v58 }
 0x12d   : > { %1280 = vst.msk [vmem:[#allocation3 + $0xa0] sm:$0xff] %vm1269_vm9, %v1242_v40 }
 0x12e   : > { %v598_v24 = vpop.permute.xlu0 %597 }
 0x12f   : > { %v469_v59 = vpop.permute.xlu1 %468 }
 0x130   : > { %506 = vst.msk [vmem:[#allocation3 + $0xb0] sm:$0xff] %vm494_vm3, %v469_v59 }
 0x131   : > { %635 = vst.msk [vmem:[#allocation3 + $0xb0] sm:$0xff] %vm623_vm4, %v598_v24 }
 0x132   : > { %v856_v43 = vpop.permute.xlu0 %855 }
 0x133   : > { %v727_v60 = vpop.permute.xlu1 %726 }
 0x134   : > { %764 = vst.msk [vmem:[#allocation3 + $0xb0] sm:$0xff] %vm752_vm5, %v727_v60  ;;  %v1370_v62 = vld [vmem:[#allocation3 + $0xa0] sm:$0xff] }
 0x135   : > { %893 = vst.msk [vmem:[#allocation3 + $0xb0] sm:$0xff] %vm881_vm6, %v856_v43  ;;  %1615 = vmatmul.mubr.bf16.gmra.mrb[40].mxu0 %v1370_v62 }
 0x136   : > { %v1115_v63 = vpop.permute.xlu0 %1114  ;;  %3803 = vmatprep.mubr.msk.bf16.mxu0 %vm175_vm0, %v1373_v61 }
 0x137   : > { %v985_v0 = vpop.permute.xlu1 %984 }
 0x138   : > { %1022 = vst.msk [vmem:[#allocation3 + $0xb0] sm:$0xff] %vm1010_vm7, %v985_v0 }
 0x139   : > { %1152 = vst.msk [vmem:[#allocation3 + $0xb0] sm:$0xff] %vm1140_vm8, %v1115_v63 }
 0x13a   : > { %v471_v1 = vpop.permute.xlu0 %470 }
 0x13b   : > { %507 = vst.msk [vmem:[#allocation3 + $0xc0] sm:$0xff] %vm494_vm3, %v471_v1  ;;  %v1244_v27 = vpop.permute.xlu1 %1243 }
 0x13c   : > { %1281 = vst.msk [vmem:[#allocation3 + $0xb0] sm:$0xff] %vm1269_vm9, %v1244_v27 }
 0x13e   : > { %v729_v47 = vpop.permute.xlu0 %728 }
 0x13f   : > { %v600_v3 = vpop.permute.xlu1 %599 }
 0x140   : > { %636 = vst.msk [vmem:[#allocation3 + $0xc0] sm:$0xff] %vm623_vm4, %v600_v3 }
 0x141   : > { %765 = vst.msk [vmem:[#allocation3 + $0xc0] sm:$0xff] %vm752_vm5, %v729_v47 }
 0x142   : > { %v987_v55 = vpop.permute.xlu0 %986 }
 0x143   : > { %v858_v5 = vpop.permute.xlu1 %857  ;;  %v1372_v6 = vld [vmem:[#allocation3 + $0xb0] sm:$0xff] }
 0x144   : > { %894 = vst.msk [vmem:[#allocation3 + $0xc0] sm:$0xff] %vm881_vm6, %v858_v5  ;;  %1623 = vmatmul.mubr.bf16.gmra.mrb[44].mxu0 %v1372_v6 }
 0x145   : > { %1023 = vst.msk [vmem:[#allocation3 + $0xc0] sm:$0xff] %vm1010_vm7, %v987_v55  ;;  %3804 = vmatprep.mubr.msk.bf16.mxu0 %vm175_vm0, %v1375_v4 }
 0x146   : > { %v1246_v30 = vpop.permute.xlu0 %1245 }
 0x147   : > { %v1117_v8 = vpop.permute.xlu1 %1116 }
 0x148   : > { %1153 = vst.msk [vmem:[#allocation3 + $0xc0] sm:$0xff] %vm1140_vm8, %v1117_v8 }
 0x149   : > { %1282 = vst.msk [vmem:[#allocation3 + $0xc0] sm:$0xff] %vm1269_vm9, %v1246_v30 }
 0x14a   : > { %v602_v9 = vpop.permute.xlu0 %601 }
 0x14b   : > { %v473_v12 = vpop.permute.xlu1 %472 }
 0x14c   : > { %508 = vst.msk [vmem:[#allocation3 + $0xd0] sm:$0xff] %vm494_vm3, %v473_v12 }
 0x14d   : > { %637 = vst.msk [vmem:[#allocation3 + $0xd0] sm:$0xff] %vm623_vm4, %v602_v9 }
 0x14e   : > { %v860_v10 = vpop.permute.xlu0 %859 }
 0x14f   : > { %v731_v13 = vpop.permute.xlu1 %730 }
 0x150   : > { %766 = vst.msk [vmem:[#allocation3 + $0xd0] sm:$0xff] %vm752_vm5, %v731_v13  ;;  %v1374_v54 = vld [vmem:[#allocation3 + $0xc0] sm:$0xff] }
 0x151   : > { %895 = vst.msk [vmem:[#allocation3 + $0xd0] sm:$0xff] %vm881_vm6, %v860_v10  ;;  %1631 = vmatmul.mubr.bf16.gmra.mrb[48].mxu0 %v1374_v54 }
 0x152   : > { %v1119_v7 = vpop.permute.xlu0 %1118  ;;  %3805 = vmatprep.mubr.msk.bf16.mxu0 %vm175_vm0, %v1377_v14 }
 0x153   : > { %v989_v11 = vpop.permute.xlu1 %988 }
 0x154   : > { %1024 = vst.msk [vmem:[#allocation3 + $0xd0] sm:$0xff] %vm1010_vm7, %v989_v11 }
 0x155   : > { %1154 = vst.msk [vmem:[#allocation3 + $0xd0] sm:$0xff] %vm1140_vm8, %v1119_v7 }
 0x156   : > { %v475_v19 = vpop.permute.xlu0 %474 }
 0x157   : > { %509 = vst.msk [vmem:[#allocation3 + $0xe0] sm:$0xff] %vm494_vm3, %v475_v19  ;;  %v1248_v22 = vpop.permute.xlu1 %1247 }
 0x158   : > { %1283 = vst.msk [vmem:[#allocation3 + $0xd0] sm:$0xff] %vm1269_vm9, %v1248_v22 }
 0x15a   : > { %v733_v16 = vpop.permute.xlu0 %732 }
 0x15b   : > { %v604_v25 = vpop.permute.xlu1 %603 }
 0x15c   : > { %638 = vst.msk [vmem:[#allocation3 + $0xe0] sm:$0xff] %vm623_vm4, %v604_v25 }
 0x15d   : > { %767 = vst.msk [vmem:[#allocation3 + $0xe0] sm:$0xff] %vm752_vm5, %v733_v16 }
 0x15e   : > { %v991_v26 = vpop.permute.xlu0 %990 }
 0x15f   : > { %v862_v31 = vpop.permute.xlu1 %861  ;;  %v1376_v33 = vld [vmem:[#allocation3 + $0xd0] sm:$0xff] }
 0x160   : > { %896 = vst.msk [vmem:[#allocation3 + $0xe0] sm:$0xff] %vm881_vm6, %v862_v31  ;;  %1639 = vmatmul.mubr.bf16.gmra.mrb[52].mxu0 %v1376_v33 }
 0x161   : > { %1025 = vst.msk [vmem:[#allocation3 + $0xe0] sm:$0xff] %vm1010_vm7, %v991_v26  ;;  %3806 = vmatprep.mubr.msk.bf16.mxu0 %vm175_vm0, %v1379_v28 }
 0x162   : > { %v1250_v32 = vpop.permute.xlu0 %1249 }
 0x163   : > { %v1121_v15 = vpop.permute.xlu1 %1120 }
 0x164   : > { %1155 = vst.msk [vmem:[#allocation3 + $0xe0] sm:$0xff] %vm1140_vm8, %v1121_v15 }
 0x165   : > { %1284 = vst.msk [vmem:[#allocation3 + $0xe0] sm:$0xff] %vm1269_vm9, %v1250_v32 }
 0x166   : > { %v606_v29 = vpop.permute.xlu0 %605 }
 0x167   : > { %v477_v35 = vpop.permute.xlu1 %476 }
 0x168   : > { %510 = vst.msk [vmem:[#allocation3 + $0xf0] sm:$0xff] %vm494_vm3, %v477_v35 }
 0x169   : > { %639 = vst.msk [vmem:[#allocation3 + $0xf0] sm:$0xff] %vm623_vm4, %v606_v29 }
 0x16a   : > { %v864_v18 = vpop.permute.xlu0 %863 }
 0x16b   : > { %v735_v37 = vpop.permute.xlu1 %734 }
 0x16c   : > { %768 = vst.msk [vmem:[#allocation3 + $0xf0] sm:$0xff] %vm752_vm5, %v735_v37  ;;  %v1378_v38 = vld [vmem:[#allocation3 + $0xe0] sm:$0xff] }
 0x16d   : > { %1647 = vmatmul.mubr.bf16.gmra.mrb[56].mxu0 %v1378_v38  ;;  %897 = vst.msk [vmem:[#allocation3 + $0xf0] sm:$0xff] %vm881_vm6, %v864_v18 }
 0x16e   : > { %v1123_v41 = vpop.permute.xlu0 %1122  ;;  %3807 = vmatprep.mubr.msk.bf16.mxu0 %vm175_vm0, %v4585_v17 }
 0x16f   : > { %v993_v42 = vpop.permute.xlu1 %992 }
 0x170   : > { %1026 = vst.msk [vmem:[#allocation3 + $0xf0] sm:$0xff] %vm1010_vm7, %v993_v42  ;;  %v2087_v42 = vld [vmem:[#allocation2 + $0x9] sm:$0xff] }
 0x171   : > { %1156 = vst.msk [vmem:[#allocation3 + $0xf0] sm:$0xff] %vm1140_vm8, %v1123_v41  ;;  %v2086_v41 = vld [vmem:[#allocation2 + $0x1] sm:$0xff] }
 0x173   : > { %v1252_v36 = vpop.permute.xlu1 %1251 }
 0x174   : > { %1285 = vst.msk [vmem:[#allocation3 + $0xf0] sm:$0xff] %vm1269_vm9, %v1252_v36  ;;  %v2214_v36 = vld [vmem:[#allocation2 + $0x2] sm:$0xff] }
 0x17b   : > { %v1380_v44 = vld [vmem:[#allocation3 + $0xf0] sm:$0xff] }
 0x17c   : > { %v1536_v23 = vpop.f32.mrb[0].mxu0  ;;  %1655 = vmatmul.mubr.bf16.gmra.mrb[60].mxu0 %v1380_v44 }
 0x17d   : > { %v1663_v21 = vmax.f32 %v1536_v23, 0.0  ;;  %v1538_v45 = vpop.f32.mrb[1].mxu0  ;;  %v2118_v23 = vpack.c.bf16 %v2087_v42, %v2086_v41 }
 0x17e   : > { %v1539_v20 = vpop.f32.mrb[2].mxu0 }
 0x17f   : > { %v1664_v46 = vmax.f32 %v1539_v20, 0.0  ;;  %v1541_v48 = vpop.f32.mrb[3].mxu0  ;;  %2150 = vrot.lane.b32.xlu0 %v2118_v23, %s4070_s27 }
 0x181   : > { %v1695_v49 = vpack.c.bf16 %v1664_v46, %v1663_v21  ;;  %v2215_v21 = vld [vmem:[#allocation2 + $0xa] sm:$0xff] }
 0x182   : > { %v2246_v46 = vpack.c.bf16 %v2215_v21, %v2214_v36 }
 0x183   : > { %3922 = vmatprep.mubr.msk.bf16.mxu1 %vm1712_vm11, %v1695_v49 }
 0x184   : > { %2278 = vrot.lane.b32.xlu1 %v2246_v46, %s4071_s30 }
 0x18b   : > { %v1544_v17 = vpop.f32.mrb[4].mxu0 }
 0x18c   : > { %v1546_v50 = vpop.f32.mrb[5].mxu0  ;;  %v1665_v51 = vmax.f32 %v1544_v17, 0.0 }
 0x18d   : > { %v1547_v34 = vpop.f32.mrb[6].mxu0 }
 0x18e   : > { %v1666_v52 = vmax.f32 %v1547_v34, 0.0  ;;  %v1549_v53 = vpop.f32.mrb[7].mxu0 }
 0x190   : > { %v1696_v56 = vpack.c.bf16 %v1666_v52, %v1665_v51 }
 0x192   : > { %3923 = vmatmul.mubr.msk.bf16.vlgmr.msra.gmra.mrb[0].mxu1 %vm1712_vm11, %v1696_v56 }
 0x198   : > { %v1552_v57 = vpop.f32.mrb[8].mxu0 }
 0x199   : > { %v1667_v39 = vmax.f32 %v1552_v57, 0.0  ;;  %v1554_v40 = vpop.f32.mrb[9].mxu0 }
 0x19a   : > { %v1555_v58 = vpop.f32.mrb[10].mxu0 }
 0x19b   : > { %v1668_v24 = vmax.f32 %v1555_v58, 0.0  ;;  %v1557_v59 = vpop.f32.mrb[11].mxu0 }
 0x19d   : > { %v1697_v43 = vpack.c.bf16 %v1668_v24, %v1667_v39 }
 0x19f   : > { %3926 = vmatprep.mubr.msk.bf16.mxu1 %vm1712_vm11, %v1697_v43 }
 0x1a7   : > { %v1560_v60 = vpop.f32.mrb[12].mxu0 }
 0x1a8   : > { %v1562_v61 = vpop.f32.mrb[13].mxu0  ;;  %v1669_v63 = vmax.f32 %v1560_v60, 0.0 }
 0x1a9   : > { %v1563_v62 = vpop.f32.mrb[14].mxu0 }
 0x1aa   : > { %v1670_v0 = vmax.f32 %v1563_v62, 0.0  ;;  %v1565_v1 = vpop.f32.mrb[15].mxu0 }
 0x1ac   : > { %v1698_v27 = vpack.c.bf16 %v1670_v0, %v1669_v63 }
 0x1ae   : > { %3927 = vmatmul.mubr.msk.bf16.gmra.mrb[4].mxu1 %vm1712_vm11, %v1698_v27 }
 0x1b4   : > { %v1568_v47 = vpop.f32.mrb[16].mxu0 }
 0x1b5   : > { %v1671_v3 = vmax.f32 %v1568_v47, 0.0  ;;  %v1570_v55 = vpop.f32.mrb[17].mxu0 }
 0x1b6   : > { %v1571_v4 = vpop.f32.mrb[18].mxu0 }
 0x1b7   : > { %v1672_v5 = vmax.f32 %v1571_v4, 0.0  ;;  %v1573_v6 = vpop.f32.mrb[19].mxu0 }
 0x1b9   : > { %v1699_v30 = vpack.c.bf16 %v1672_v5, %v1671_v3 }
 0x1bb   : > { %3930 = vmatprep.mubr.msk.bf16.mxu1 %vm1712_vm11, %v1699_v30 }
 0x1c3   : > { %v1576_v8 = vpop.f32.mrb[20].mxu0 }
 0x1c4   : > { %v1578_v9 = vpop.f32.mrb[21].mxu0  ;;  %v1673_v10 = vmax.f32 %v1576_v8, 0.0 }
 0x1c5   : > { %v1579_v12 = vpop.f32.mrb[22].mxu0 }
 0x1c6   : > { %v1674_v13 = vmax.f32 %v1579_v12, 0.0  ;;  %v1581_v14 = vpop.f32.mrb[23].mxu0 }
 0x1c8   : > { %v1700_v54 = vpack.c.bf16 %v1674_v13, %v1673_v10 }
 0x1ca   : > { %3931 = vmatmul.mubr.msk.bf16.gmra.mrb[8].mxu1 %vm1712_vm11, %v1700_v54 }
 0x1d0   : > { %v1584_v7 = vpop.f32.mrb[24].mxu0 }
 0x1d1   : > { %v1675_v11 = vmax.f32 %v1584_v7, 0.0  ;;  %v1586_v19 = vpop.f32.mrb[25].mxu0 }
 0x1d2   : > { %v1587_v22 = vpop.f32.mrb[26].mxu0 }
 0x1d3   : > { %v1676_v16 = vmax.f32 %v1587_v22, 0.0  ;;  %v1589_v25 = vpop.f32.mrb[27].mxu0 }
 0x1d5   : > { %v1701_v26 = vpack.c.bf16 %v1676_v16, %v1675_v11 }
 0x1d7   : > { %3934 = vmatprep.mubr.msk.bf16.mxu1 %vm1712_vm11, %v1701_v26 }
 0x1df   : > { %v1592_v28 = vpop.f32.mrb[28].mxu0 }
 0x1e0   : > { %v1594_v31 = vpop.f32.mrb[29].mxu0  ;;  %v1677_v32 = vmax.f32 %v1592_v28, 0.0 }
 0x1e1   : > { %v1595_v33 = vpop.f32.mrb[30].mxu0 }
 0x1e2   : > { %v1678_v15 = vmax.f32 %v1595_v33, 0.0  ;;  %v1597_v29 = vpop.f32.mrb[31].mxu0 }
 0x1e4   : > { %v1702_v35 = vpack.c.bf16 %v1678_v15, %v1677_v32 }
 0x1e6   : > { %3935 = vmatmul.mubr.msk.bf16.gmra.mrb[12].mxu1 %vm1712_vm11, %v1702_v35  ;;  %v4019_v35 = vld [vmem:[%s5303_s1 + $0x48] sm:$0xff]  }
 0x1e7   : > { %3200 = vmatpush1.bf16.msra.mxu1 %v4019_v35 }
 0x1e8   : > { %3201 = vmatprep.subr.bf16.mxu1 %v4069_v2 }
 0x1ec   : > { %v1600_v18 = vpop.f32.mrb[32].mxu0 }
 0x1ed   : > { %v1679_v37 = vmax.f32 %v1600_v18, 0.0  ;;  %v1602_v38 = vpop.f32.mrb[33].mxu0  ;;  %v2022_v18 = vld [vmem:[#allocation2] sm:$0xff] }
 0x1ee   : > { %v1603_v44 = vpop.f32.mrb[34].mxu0  ;;  %v4020_v38 = vld [vmem:[%s5303_s1 + $0x50] sm:$0xff]  }
 0x1ef   : > { %v1680_v45 = vmax.f32 %v1603_v44, 0.0  ;;  %v1605_v20 = vpop.f32.mrb[35].mxu0  ;;  %3202 = vmatpush1.bf16.msra.mxu1 %v4020_v38  ;;  %v4028_v44 = vld [vmem:[%s4163_s22 + $0x10] sm:$0xff] }
 0x1f0   : > { %3203 = vmatprep.subr.bf16.mxu1 %v4069_v2  ;;  %v4029_v20 = vld [vmem:[%s4163_s22] sm:$0xff] }
 0x1f1   : > { %v1703_v48 = vpack.c.bf16 %v1680_v45, %v1679_v37  ;;  %v2023_v37 = vld [vmem:[#allocation2 + $0x8] sm:$0xff]  ;;  %v2151_v36 = vpop.permute.xlu0 %2150 }
 0x1f2   : > { %v2054_v41 = vpack.c.bf16 %v2023_v37, %v2022_v18 }
 0x1f3   : > { %3938 = vmatprep.mubr.msk.bf16.mxu1 %vm1712_vm11, %v1703_v48 }
 0x1f4   : > { %2070 = vst.msk [vmem:[#allocation3] sm:$0xff] %vm175_vm0, %v2054_v41 }
 0x1f5   : > { %2198 = vst.msk [vmem:[#allocation3] sm:$0xff] %vm494_vm3, %v2151_v36 }
 0x1f6   : > { %v2279_v45 = vpop.permute.xlu1 %2278 }
 0x1f7   : > { %2326 = vst.msk [vmem:[#allocation3] sm:$0xff] %vm623_vm4, %v2279_v45 }
 0x1fb   : > { %v1608_v49 = vpop.f32.mrb[36].mxu0 }
 0x1fc   : > { %v1610_v17 = vpop.f32.mrb[37].mxu0  ;;  %v1681_v34 = vmax.f32 %v1608_v49, 0.0 }
 0x1fd   : > { %v1611_v50 = vpop.f32.mrb[38].mxu0  ;;  %v4030_v17 = vld [vmem:[%s4163_s22 + $0x18] sm:$0xff] }
 0x1fe   : > { %v1682_v51 = vmax.f32 %v1611_v50, 0.0  ;;  %v1613_v52 = vpop.f32.mrb[39].mxu0 }
 0x200   : > { %v1704_v53 = vpack.c.bf16 %v1682_v51, %v1681_v34  ;;  %v4021_v51 = vld [vmem:[%s5303_s1 + $0x58] sm:$0xff]  }
 0x201   : > { %3204 = vmatpush1.bf16.msra.mxu1 %v4021_v51 }
 0x202   : > { %3939 = vmatmul.mubr.msk.bf16.gmra.mrb[16].mxu1 %vm1712_vm11, %v1704_v53  ;;  %v4031_v53 = vld [vmem:[%s4163_s22 + $0x8] sm:$0xff]  ;;  %3205 = vmatprep.subr.bf16.mxu1 %v4069_v2 }
 0x208   : > { %v1616_v56 = vpop.f32.mrb[40].mxu0 }
 0x209   : > { %v1683_v57 = vmax.f32 %v1616_v56, 0.0  ;;  %v1618_v39 = vpop.f32.mrb[41].mxu0 }
 0x20a   : > { %v1619_v40 = vpop.f32.mrb[42].mxu0 }
 0x20b   : > { %v1684_v58 = vmax.f32 %v1619_v40, 0.0  ;;  %v1621_v24 = vpop.f32.mrb[43].mxu0  ;;  %v4022_v40 = vld [vmem:[%s5303_s1 + $0x60] sm:$0xff]  }
 0x20c   : > { %3206 = vmatpush1.bf16.msra.mxu1 %v4022_v40 }
 0x20d   : > { %v1705_v59 = vpack.c.bf16 %v1684_v58, %v1683_v57  ;;  %3207 = vmatprep.subr.bf16.mxu1 %v4069_v2  ;;  %v4023_v58 = vld [vmem:[%s5303_s1 + $0x68] sm:$0xff]  }
 0x20f   : > { %3942 = vmatprep.mubr.msk.bf16.mxu1 %vm1712_vm11, %v1705_v59 }
 0x210   : > { %3208 = vmatpush1.bf16.msra.mxu1 %v4023_v58  ;;  %v4037_v58 = vld [vmem:[%s4163_s22 + $0x40] sm:$0xff] }
 0x211   : > { %3209 = vmatprep.subr.bf16.mxu1 %v4069_v2 }
 0x217   : > { %v1624_v43 = vpop.f32.mrb[44].mxu0 }
 0x218   : > { %v1626_v60 = vpop.f32.mrb[45].mxu0  ;;  %v1685_v62 = vmax.f32 %v1624_v43, 0.0 }
 0x219   : > { %v1627_v61 = vpop.f32.mrb[46].mxu0 }
 0x21a   : > { %v1686_v63 = vmax.f32 %v1627_v61, 0.0  ;;  %v1629_v0 = vpop.f32.mrb[47].mxu0 }
 0x21c   : > { %v1706_v1 = vpack.c.bf16 %v1686_v63, %v1685_v62 }
 0x21e   : > { %3943 = vmatmul.mubr.msk.bf16.gmra.mrb[20].mxu1 %vm1712_vm11, %v1706_v1 }
 0x224   : > { %v1632_v27 = vpop.f32.mrb[48].mxu0 }
 0x225   : > { %v1687_v47 = vmax.f32 %v1632_v27, 0.0  ;;  %v1634_v3 = vpop.f32.mrb[49].mxu0 }
 0x226   : > { %v1635_v55 = vpop.f32.mrb[50].mxu0 }
 0x227   : > { %v1688_v4 = vmax.f32 %v1635_v55, 0.0  ;;  %v1637_v5 = vpop.f32.mrb[51].mxu0  ;;  %v4024_v55 = vld [vmem:[%s5303_s1 + $0x70] sm:$0xff]  }
 0x228   : > { %3210 = vmatpush1.bf16.msra.mxu1 %v4024_v55  ;;  %v4026_v5 = vld [vmem:[%s5303_s1 + $0x80] sm:$0xff]  }
 0x229   : > { %v1707_v6 = vpack.c.bf16 %v1688_v4, %v1687_v47  ;;  %3211 = vmatprep.subr.bf16.mxu1 %v4069_v2  ;;  %v4025_v4 = vld [vmem:[%s5303_s1 + $0x78] sm:$0xff]  }
 0x22b   : > { %3946 = vmatprep.mubr.msk.bf16.mxu1 %vm1712_vm11, %v1707_v6 }
 0x22c   : > { %3212 = vmatpush1.bf16.msra.mxu1 %v4025_v4 }
 0x22d   : > { %3213 = vmatprep.subr.bf16.mxu1 %v4069_v2 }
 0x230   : > { %3214 = vmatpush1.bf16.msra.mxu1 %v4026_v5 }
 0x231   : > { %3215 = vmatprep.subr.bf16.mxu1 %v4069_v2 }
 0x233   : > { %v1640_v30 = vpop.f32.mrb[52].mxu0 }
 0x234   : > { %v1642_v8 = vpop.f32.mrb[53].mxu0  ;;  %v1689_v12 = vmax.f32 %v1640_v30, 0.0  ;;  %v4027_v30 = vld [vmem:[%s5303_s1 + $0x88] sm:$0xff]  }
 0x235   : > { %v1643_v9 = vpop.f32.mrb[54].mxu0  ;;  %3216 = vmatpush1.bf16.msra.mxu1 %v4027_v30 }
 0x236   : > { %v1690_v10 = vmax.f32 %v1643_v9, 0.0  ;;  %v1645_v13 = vpop.f32.mrb[55].mxu0 }
 0x237   : > { %v4032_v13 = vld [vmem:[%s4163_s22 + $0x30] sm:$0xff] }
 0x238   : > { %v1708_v14 = vpack.c.bf16 %v1690_v10, %v1689_v12 }
 0x23a   : > { %3947 = vmatmul.mubr.msk.bf16.gmra.mrb[24].mxu1 %vm1712_vm11, %v1708_v14 }
 0x240   : > { %v1648_v54 = vpop.f32.mrb[56].mxu0 }
 0x241   : > { %v1691_v7 = vmax.f32 %v1648_v54, 0.0  ;;  %v1650_v11 = vpop.f32.mrb[57].mxu0 }
 0x242   : > { %v1651_v19 = vpop.f32.mrb[58].mxu0 }
 0x243   : > { %v1692_v22 = vmax.f32 %v1651_v19, 0.0  ;;  %v1653_v16 = vpop.f32.mrb[59].mxu0 }
 0x244   : > { %v4034_v16 = vld [vmem:[%s4163_s22 + $0x38] sm:$0xff] }
 0x245   : > { %v1709_v25 = vpack.c.bf16 %v1692_v22, %v1691_v7  ;;  %v4033_v7 = vld [vmem:[%s4163_s22 + $0x20] sm:$0xff] }
 0x247   : > { %3950 = vmatprep.mubr.msk.bf16.mxu1 %vm1712_vm11, %v1709_v25 }
 0x24f   : > { %v1656_v26 = vpop.f32.mrb[60].mxu0 }
 0x250   : > { %v1658_v28 = vpop.f32.mrb[61].mxu0  ;;  %v1693_v33 = vmax.f32 %v1656_v26, 0.0 }
 0x251   : > { %v1659_v31 = vpop.f32.mrb[62].mxu0 }
 0x252   : > { %v1694_v32 = vmax.f32 %v1659_v31, 0.0  ;;  %v1661_v15 = vpop.f32.mrb[63].mxu0 }
 0x254   : > { %v1710_v29 = vpack.c.bf16 %v1694_v32, %v1693_v33  ;;  %v4035_v32 = vld [vmem:[%s4163_s22 + $0x28] sm:$0xff] }
 0x256   : > { %3951 = vmatmul.mubr.msk.bf16.gmra.mrb[28].mxu1 %vm1712_vm11, %v1710_v29 }
 0x265   : > { %v3924_v42 = vpop.f32.mrb[0].mxu1 }
 0x266   : > { %v4696_v23 = vadd.f32 %v4028_v44, %v3924_v42  ;;  %v1799_v21 = vpop.f32.mrb[1].mxu1 }
 0x267   : > { %v4700_v46 = vadd.f32 %v4029_v20, %v1799_v21  ;;  %v3925_v48 = vpop.f32.mrb[2].mxu1 }
 0x268   : > { %v1960_v49 = vmax.f32 %v4696_v23, 0.0  ;;  %v4705_v50 = vadd.f32 %v4030_v17, %v3925_v48  ;;  %v1802_v34 = vpop.f32.mrb[3].mxu1 }
 0x269   : > { %v1958_v52 = vmax.f32 %v4700_v46, 0.0  ;;  %v4712_v56 = vadd.f32 %v4031_v53, %v1802_v34 }
 0x26a   : > { %1992 = vst.msk [vmem:[#allocation2 + $0x31] sm:$0xff] %vm175_vm0, %v1960_v49  ;;  %v1961_v57 = vmax.f32 %v4705_v50, 0.0 }
 0x26b   : > { %1990 = vst.msk [vmem:[#allocation2 + $0x19] sm:$0xff] %vm175_vm0, %v1958_v52  ;;  %v1959_v39 = vmax.f32 %v4712_v56, 0.0 }
 0x26c   : > { %1993 = vst.msk [vmem:[#allocation2 + $0x39] sm:$0xff] %vm175_vm0, %v1961_v57  ;;  %v4036_v57 = vld [vmem:[%s4163_s22 + $0x50] sm:$0xff] }
 0x26d   : > { %1991 = vst.msk [vmem:[#allocation2 + $0x21] sm:$0xff] %vm175_vm0, %v1959_v39 }
 0x271   : > { %v2854_v24 = vld [vmem:[#allocation2 + $0x31] sm:$0xff] }
 0x272   : > { %v2726_v59 = vld [vmem:[#allocation2 + $0x30] sm:$0xff]  ;;  %v2342_v1 = vld [vmem:[#allocation2 + $0x18] sm:$0xff] }
 0x273   : > { %v2855_v43 = vld [vmem:[#allocation2 + $0x39] sm:$0xff] }
 0x274   : > { %v2727_v60 = vld [vmem:[#allocation2 + $0x38] sm:$0xff]  ;;  %v2886_v62 = vpack.c.bf16 %v2855_v43, %v2854_v24  ;;  %v2343_v27 = vld [vmem:[#allocation2 + $0x20] sm:$0xff] }
 0x275   : > { %v2600_v61 = vld [vmem:[#allocation2 + $0x32] sm:$0xff]  ;;  %v2758_v63 = vpack.c.bf16 %v2727_v60, %v2726_v59  ;;  %v2601_v0 = vld [vmem:[#allocation2 + $0x3a] sm:$0xff]  ;;  %v2374_v3 = vpack.c.bf16 %v2343_v27, %v2342_v1  ;;  %v2599_v10 = vld [vmem:[#allocation2 + $0x22] sm:$0xff] }
 0x276   : > { %v2631_v47 = vpack.c.bf16 %v2601_v0, %v2600_v61  ;;  %2918 = vrot.lane.b32.xlu0 %v2886_v62, %s4075_s11  ;;  %v2471_v9 = vld [vmem:[#allocation2 + $0x21] sm:$0xff]  ;;  %v2470_v19 = vld [vmem:[#allocation2 + $0x19] sm:$0xff] }
 0x277   : > { %2790 = vrot.lane.b32.xlu1 %v2758_v63, %s4076_s13  ;;  %2072 = vst.msk [vmem:[#allocation3 + $0x20] sm:$0xff] %vm175_vm0, %v2758_v63  ;;  %2071 = vst.msk [vmem:[#allocation3 + $0x10] sm:$0xff] %vm175_vm0, %v2374_v3  ;;  %v2598_v12 = vld [vmem:[#allocation2 + $0x1a] sm:$0xff]  ;;  %v2502_v28 = vpack.c.bf16 %v2471_v9, %v2470_v19  ;;  %v4039_v27 = vld [vmem:[%s4163_s22 + $0x48] sm:$0xff] }
 0x278   : > { %3030 = vst.msk [vmem:[#allocation3 + $0x8] sm:$0xff] %vm175_vm0, %v2631_v47  ;;  %v2630_v31 = vpack.c.bf16 %v2599_v10, %v2598_v12  ;;  %v4038_v61 = vld [vmem:[%s4163_s22 + $0x58] sm:$0xff] }
 0x27a   : > { %2536 = vrot.lane.b32.xlu0 %v2886_v62, %s4074_s10 }
 0x27b   : > { %2408 = vrot.lane.b32.xlu1 %v2758_v63, %s4072_s6 }
 0x27e   : > { %2154 = vrot.lane.b32.xlu0 %v2886_v62, %s4070_s27 }
 0x27f   : > { %2664 = vrot.lane.b32.xlu1 %v2631_v47, %s4073_s7  ;;  %v3047_v6 = vld [vmem:[#allocation3 + $0x8] sm:$0xff] }
 0x280   : > { %3851 = vmatprep.mubr.msk.bf16.mxu1 %vm175_vm0, %v3047_v6 }
 0x281   : > { %v3928_v8 = vpop.f32.mrb[4].mxu1 }
 0x282   : > { %v4755_v14 = vadd.f32 %v4032_v13, %v3928_v8  ;;  %2406 = vrot.lane.b32.xlu0 %v2374_v3, %s4072_s6  ;;  %v1815_v54 = vpop.f32.mrb[5].mxu1 }
 0x283   : > { %2282 = vrot.lane.b32.xlu1 %v2631_v47, %s4071_s30  ;;  %v4760_v2 = vadd.f32 %v4033_v7, %v1815_v54  ;;  %v3929_v11 = vpop.f32.mrb[6].mxu1 }
 0x284   : > { %v1964_v22 = vmax.f32 %v4755_v14, 0.0  ;;  %v4764_v25 = vadd.f32 %v4034_v16, %v3929_v11  ;;  %v1818_v26 = vpop.f32.mrb[7].mxu1 }
 0x285   : > { %v1962_v33 = vmax.f32 %v4760_v2, 0.0  ;;  %v4768_v15 = vadd.f32 %v4035_v32, %v1818_v26 }
 0x286   : > { %1996 = vst.msk [vmem:[#allocation2 + $0x61] sm:$0xff] %vm175_vm0, %v1964_v22  ;;  %v1965_v29 = vmax.f32 %v4764_v25, 0.0  ;;  %2662 = vrot.lane.b32.xlu0 %v2630_v31, %s4073_s7 }
 0x287   : > { %2534 = vrot.lane.b32.xlu1 %v2502_v28, %s4074_s10  ;;  %1994 = vst.msk [vmem:[#allocation2 + $0x49] sm:$0xff] %vm175_vm0, %v1962_v33  ;;  %v1963_v35 = vmax.f32 %v4768_v15, 0.0 }
 0x288   : > { %1997 = vst.msk [vmem:[#allocation2 + $0x69] sm:$0xff] %vm175_vm0, %v1965_v29  ;;  %v4040_v29 = vld [vmem:[%s4163_s22 + $0x70] sm:$0xff] }
 0x289   : > { %1995 = vst.msk [vmem:[#allocation2 + $0x51] sm:$0xff] %vm175_vm0, %v1963_v35 }
 0x28a   : > { %2280 = vrot.lane.b32.xlu0 %v2630_v31, %s4071_s30 }
 0x28b   : > { %2152 = vrot.lane.b32.xlu1 %v2502_v28, %s4070_s27 }
 0x28d   : > { %v2858_v18 = vld [vmem:[#allocation2 + $0x61] sm:$0xff] }
 0x28e   : > { %v2730_v37 = vld [vmem:[#allocation2 + $0x60] sm:$0xff]  ;;  %v2728_v45 = vld [vmem:[#allocation2 + $0x48] sm:$0xff] }
 0x28f   : > { %v2859_v38 = vld [vmem:[#allocation2 + $0x69] sm:$0xff] }
 0x290   : > { %v2731_v41 = vld [vmem:[#allocation2 + $0x68] sm:$0xff]  ;;  %v2888_v36 = vpack.c.bf16 %v2859_v38, %v2858_v18  ;;  %v2729_v20 = vld [vmem:[#allocation2 + $0x50] sm:$0xff] }
 0x291   : > { %v2604_v42 = vld [vmem:[#allocation2 + $0x62] sm:$0xff]  ;;  %v2760_v44 = vpack.c.bf16 %v2731_v41, %v2730_v37  ;;  %v2605_v21 = vld [vmem:[#allocation2 + $0x6a] sm:$0xff]  ;;  %v2759_v49 = vpack.c.bf16 %v2729_v20, %v2728_v45  ;;  %v2603_v34 = vld [vmem:[#allocation2 + $0x52] sm:$0xff] }
 0x292   : > { %v2633_v48 = vpack.c.bf16 %v2605_v21, %v2604_v42  ;;  %v2602_v17 = vld [vmem:[#allocation2 + $0x4a] sm:$0xff]  ;;  %2922 = vrot.lane.b32.xlu0 %v2888_v36, %s4075_s11  ;;  %v4041_v37 = vld [vmem:[%s4163_s22 + $0x60] sm:$0xff] }
 0x293   : > { %2794 = vrot.lane.b32.xlu1 %v2760_v44, %s4076_s13  ;;  %v2632_v51 = vpack.c.bf16 %v2603_v34, %v2602_v17  ;;  %2074 = vst.msk [vmem:[#allocation3 + $0x40] sm:$0xff] %vm175_vm0, %v2760_v44  ;;  %2073 = vst.msk [vmem:[#allocation3 + $0x30] sm:$0xff] %vm175_vm0, %v2759_v49  ;;  %v2857_v53 = vld [vmem:[#allocation2 + $0x51] sm:$0xff]  ;;  %v2856_v43 = vld [vmem:[#allocation2 + $0x49] sm:$0xff] }
 0x294   : > { %3032 = vst.msk [vmem:[#allocation3 + $0x28] sm:$0xff] %vm175_vm0, %v2633_v48  ;;  %v2887_v0 = vpack.c.bf16 %v2857_v53, %v2856_v43 }
 0x295   : > { %3031 = vst.msk [vmem:[#allocation3 + $0x18] sm:$0xff] %vm175_vm0, %v2632_v51 }
 0x296   : > { %2540 = vrot.lane.b32.xlu0 %v2888_v36, %s4074_s10 }
 0x297   : > { %2412 = vrot.lane.b32.xlu1 %v2760_v44, %s4072_s6  ;;  %v4042_v44 = vld [vmem:[%s4163_s22 + $0x78] sm:$0xff] }
 0x29a   : > { %2158 = vrot.lane.b32.xlu0 %v2888_v36, %s4070_s27 }
 0x29b   : > { %2668 = vrot.lane.b32.xlu1 %v2633_v48, %s4073_s7 }
 0x29d   : > { %v3932_v52 = vpop.f32.mrb[8].mxu1 }
 0x29e   : > { %v4791_v39 = vadd.f32 %v4036_v57, %v3932_v52  ;;  %2792 = vrot.lane.b32.xlu0 %v2759_v49, %s4076_s13  ;;  %v1831_v40 = vpop.f32.mrb[9].mxu1 }
 0x29f   : > { %2286 = vrot.lane.b32.xlu1 %v2633_v48, %s4071_s30  ;;  %v4796_v24 = vadd.f32 %v4037_v58, %v1831_v40  ;;  %v3933_v59 = vpop.f32.mrb[10].mxu1 }
 0x2a0   : > { %v1968_v60 = vmax.f32 %v4791_v39, 0.0  ;;  %v4800_v62 = vadd.f32 %v4038_v61, %v3933_v59  ;;  %v1834_v63 = vpop.f32.mrb[11].mxu1 }
 0x2a1   : > { %v1966_v1 = vmax.f32 %v4796_v24, 0.0  ;;  %v4804_v47 = vadd.f32 %v4039_v27, %v1834_v63 }
 0x2a2   : > { %2000 = vst.msk [vmem:[#allocation2 + $0x91] sm:$0xff] %vm175_vm0, %v1968_v60  ;;  %v1969_v3 = vmax.f32 %v4800_v62, 0.0  ;;  %2410 = vrot.lane.b32.xlu0 %v2759_v49, %s4072_s6  ;;  %v4043_v49 = vld [vmem:[%s4163_s22 + $0x68] sm:$0xff] }
 0x2a3   : > { %2920 = vrot.lane.b32.xlu1 %v2887_v0, %s4075_s11  ;;  %1998 = vst.msk [vmem:[#allocation2 + $0x79] sm:$0xff] %vm175_vm0, %v1966_v1  ;;  %v1967_v55 = vmax.f32 %v4804_v47, 0.0 }
 0x2a4   : > { %2001 = vst.msk [vmem:[#allocation2 + $0x99] sm:$0xff] %vm175_vm0, %v1969_v3 }
 0x2a5   : > { %1999 = vst.msk [vmem:[#allocation2 + $0x81] sm:$0xff] %vm175_vm0, %v1967_v55 }
 0x2a6   : > { %2666 = vrot.lane.b32.xlu0 %v2632_v51, %s4073_s7 }
 0x2a7   : > { %2538 = vrot.lane.b32.xlu1 %v2887_v0, %s4074_s10 }
 0x2a9   : > { %v2862_v4 = vld [vmem:[#allocation2 + $0x91] sm:$0xff] }
 0x2aa   : > { %2284 = vrot.lane.b32.xlu0 %v2632_v51, %s4071_s30  ;;  %v2734_v6 = vld [vmem:[#allocation2 + $0x90] sm:$0xff]  ;;  %v2732_v12 = vld [vmem:[#allocation2 + $0x78] sm:$0xff] }
 0x2ab   : > { %2156 = vrot.lane.b32.xlu1 %v2887_v0, %s4070_s27  ;;  %v2863_v5 = vld [vmem:[#allocation2 + $0x99] sm:$0xff] }
 0x2ac   : > { %v2735_v30 = vld [vmem:[#allocation2 + $0x98] sm:$0xff]  ;;  %v2890_v8 = vpack.c.bf16 %v2863_v5, %v2862_v4  ;;  %v2733_v10 = vld [vmem:[#allocation2 + $0x80] sm:$0xff] }
 0x2ad   : > { %v2762_v9 = vpack.c.bf16 %v2735_v30, %v2734_v6  ;;  %v2761_v13 = vpack.c.bf16 %v2733_v10, %v2732_v12  ;;  %v2606_v54 = vld [vmem:[#allocation2 + $0x7a] sm:$0xff]  ;;  %v2607_v7 = vld [vmem:[#allocation2 + $0x82] sm:$0xff]  ;;  %v2990_v11 = vld [vmem:[#allocation2 + $0x92] sm:$0xff] }
 0x2ae   : > { %2926 = vrot.lane.b32.xlu0 %v2890_v8, %s4075_s11  ;;  %v2634_v19 = vpack.c.bf16 %v2607_v7, %v2606_v54  ;;  %v2991_v22 = vld [vmem:[#allocation2 + $0x9a] sm:$0xff]  ;;  %v2608_v26 = vld [vmem:[#allocation2 + $0x92] sm:$0xff] }
 0x2af   : > { %2798 = vrot.lane.b32.xlu1 %v2762_v9, %s4076_s13  ;;  %2076 = vst.msk [vmem:[#allocation3 + $0x60] sm:$0xff] %vm175_vm0, %v2762_v9  ;;  %2075 = vst.msk [vmem:[#allocation3 + $0x50] sm:$0xff] %vm175_vm0, %v2761_v13  ;;  %v3018_v16 = vpack.c.bf16 %v2991_v22, %v2990_v11  ;;  %v2609_v28 = vld [vmem:[#allocation2 + $0x9a] sm:$0xff] }
 0x2b0   : > { %3033 = vst.msk [vmem:[#allocation3 + $0x38] sm:$0xff] %vm175_vm0, %v2634_v19  ;;  %v2635_v31 = vpack.c.bf16 %v2609_v28, %v2608_v26  ;;  %v2861_v32 = vld [vmem:[#allocation2 + $0x81] sm:$0xff]  ;;  %v2860_v42 = vld [vmem:[#allocation2 + $0x79] sm:$0xff] }
 0x2b1   : > { %3034 = vst.msk [vmem:[#allocation3 + $0x48] sm:$0xff] %vm175_vm0, %v3018_v16  ;;  %v2889_v20 = vpack.c.bf16 %v2861_v32, %v2860_v42  ;;  %v4045_v11 = vld [vmem:[%s4163_s22 + $0x80] sm:$0xff]  ;;  %v4046_v28 = vld [vmem:[%s4163_s22 + $0x98] sm:$0xff] }
 0x2b2   : > { %2544 = vrot.lane.b32.xlu0 %v2890_v8, %s4074_s10 }
 0x2b3   : > { %2416 = vrot.lane.b32.xlu1 %v2762_v9, %s4072_s6 }
 0x2b6   : > { %2162 = vrot.lane.b32.xlu0 %v2890_v8, %s4070_s27 }
 0x2b7   : > { %2672 = vrot.lane.b32.xlu1 %v2635_v31, %s4073_s7 }
 0x2b9   : > { %v3936_v33 = vpop.f32.mrb[12].mxu1 }
 0x2ba   : > { %v4829_v35 = vadd.f32 %v4040_v29, %v3936_v33  ;;  %2796 = vrot.lane.b32.xlu0 %v2761_v13, %s4076_s13  ;;  %v1847_v18 = vpop.f32.mrb[13].mxu1 }
 0x2bb   : > { %2290 = vrot.lane.b32.xlu1 %v2635_v31, %s4071_s30  ;;  %v4834_v38 = vadd.f32 %v4041_v37, %v1847_v18  ;;  %v3937_v41 = vpop.f32.mrb[14].mxu1  ;;  %v4047_v18 = vld [vmem:[%s4163_s22 + $0x88] sm:$0xff] }
 0x2bc   : > { %v1972_v36 = vmax.f32 %v4829_v35, 0.0  ;;  %v4838_v21 = vadd.f32 %v4042_v44, %v3937_v41  ;;  %v1850_v45 = vpop.f32.mrb[15].mxu1 }
 0x2bd   : > { %v1970_v48 = vmax.f32 %v4834_v38, 0.0  ;;  %v4842_v17 = vadd.f32 %v4043_v49, %v1850_v45 }
 0x2be   : > { %2004 = vst.msk [vmem:[#allocation2 + $0xc1] sm:$0xff] %vm175_vm0, %v1972_v36  ;;  %v1973_v34 = vmax.f32 %v4838_v21, 0.0  ;;  %2414 = vrot.lane.b32.xlu0 %v2761_v13, %s4072_s6  ;;  %v4044_v13 = vld [vmem:[%s4163_s22 + $0x90] sm:$0xff] }
 0x2bf   : > { %2924 = vrot.lane.b32.xlu1 %v2889_v20, %s4075_s11  ;;  %2002 = vst.msk [vmem:[#allocation2 + $0xa9] sm:$0xff] %vm175_vm0, %v1970_v48  ;;  %v1971_v51 = vmax.f32 %v4842_v17, 0.0 }
 0x2c0   : > { %2005 = vst.msk [vmem:[#allocation2 + $0xc9] sm:$0xff] %vm175_vm0, %v1973_v34 }
 0x2c1   : > { %2003 = vst.msk [vmem:[#allocation2 + $0xb1] sm:$0xff] %vm175_vm0, %v1971_v51 }
 0x2c2   : > { %2670 = vrot.lane.b32.xlu0 %v2634_v19, %s4073_s7 }
 0x2c3   : > { %2542 = vrot.lane.b32.xlu1 %v2889_v20, %s4074_s10 }
 0x2c5   : > { %v2866_v52 = vld [vmem:[#allocation2 + $0xc1] sm:$0xff] }
 0x2c6   : > { %2288 = vrot.lane.b32.xlu0 %v2634_v19, %s4071_s30  ;;  %v2738_v57 = vld [vmem:[#allocation2 + $0xc0] sm:$0xff]  ;;  %v2036_v43 = vld [vmem:[#allocation2 + $0xa8] sm:$0xff] }
 0x2c7   : > { %2160 = vrot.lane.b32.xlu1 %v2889_v20, %s4070_s27  ;;  %v2867_v53 = vld [vmem:[#allocation2 + $0xc9] sm:$0xff] }
 0x2c8   : > { %v2739_v40 = vld [vmem:[#allocation2 + $0xc8] sm:$0xff]  ;;  %v2892_v58 = vpack.c.bf16 %v2867_v53, %v2866_v52  ;;  %v2611_v61 = vld [vmem:[#allocation2 + $0xb2] sm:$0xff] }
 0x2c9   : > { %v2764_v59 = vpack.c.bf16 %v2739_v40, %v2738_v57  ;;  %v2610_v60 = vld [vmem:[#allocation2 + $0xaa] sm:$0xff]  ;;  %v2994_v27 = vld [vmem:[#allocation2 + $0xc2] sm:$0xff] }
 0x2ca   : > { %v2037_v63 = vld [vmem:[#allocation2 + $0xb0] sm:$0xff]  ;;  %2930 = vrot.lane.b32.xlu0 %v2892_v58, %s4075_s11  ;;  %v2636_v0 = vpack.c.bf16 %v2611_v61, %v2610_v60  ;;  %v2612_v4 = vld [vmem:[#allocation2 + $0xc2] sm:$0xff] }
 0x2cb   : > { %2802 = vrot.lane.b32.xlu1 %v2764_v59, %s4076_s13  ;;  %2078 = vst.msk [vmem:[#allocation3 + $0x80] sm:$0xff] %vm175_vm0, %v2764_v59  ;;  %v2061_v1 = vpack.c.bf16 %v2037_v63, %v2036_v43  ;;  %v2995_v3 = vld [vmem:[#allocation2 + $0xca] sm:$0xff] }
 0x2cc   : > { %v3020_v55 = vpack.c.bf16 %v2995_v3, %v2994_v27  ;;  %3035 = vst.msk [vmem:[#allocation3 + $0x58] sm:$0xff] %vm175_vm0, %v2636_v0  ;;  %v2613_v5 = vld [vmem:[#allocation2 + $0xca] sm:$0xff] }
 0x2cd   : > { %2077 = vst.msk [vmem:[#allocation3 + $0x70] sm:$0xff] %vm175_vm0, %v2061_v1  ;;  %v2637_v6 = vpack.c.bf16 %v2613_v5, %v2612_v4  ;;  %v2737_v30 = vld [vmem:[#allocation2 + $0xb0] sm:$0xff]  ;;  %v2736_v8 = vld [vmem:[#allocation2 + $0xa8] sm:$0xff] }
 0x2ce   : > { %3036 = vst.msk [vmem:[#allocation3 + $0x68] sm:$0xff] %vm175_vm0, %v3020_v55  ;;  %2548 = vrot.lane.b32.xlu0 %v2892_v58, %s4074_s10  ;;  %v2763_v9 = vpack.c.bf16 %v2737_v30, %v2736_v8  ;;  %v2865_v10 = vld [vmem:[#allocation2 + $0xb1] sm:$0xff]  ;;  %v2864_v16 = vld [vmem:[#allocation2 + $0xa9] sm:$0xff]  ;;  %v4049_v30 = vld [vmem:[%s4163_s22 + $0xa0] sm:$0xff] }
 0x2cf   : > { %2420 = vrot.lane.b32.xlu1 %v2764_v59, %s4072_s6  ;;  %v2891_v32 = vpack.c.bf16 %v2865_v10, %v2864_v16  ;;  %v4048_v4 = vld [vmem:[%s4163_s22 + $0xb0] sm:$0xff] }
 0x2d2   : > { %2166 = vrot.lane.b32.xlu0 %v2892_v58, %s4070_s27 }
 0x2d3   : > { %2676 = vrot.lane.b32.xlu1 %v2637_v6, %s4073_s7 }
 0x2d5   : > { %v3940_v12 = vpop.f32.mrb[16].mxu1 }
 0x2d6   : > { %v4867_v54 = vadd.f32 %v4044_v13, %v3940_v12  ;;  %2800 = vrot.lane.b32.xlu0 %v2763_v9, %s4076_s13  ;;  %v1863_v7 = vpop.f32.mrb[17].mxu1  ;;  %v4050_v13 = vld [vmem:[%s4163_s22 + $0xb8] sm:$0xff] }
 0x2d7   : > { %2294 = vrot.lane.b32.xlu1 %v2637_v6, %s4071_s30  ;;  %v4872_v19 = vadd.f32 %v4045_v11, %v1863_v7  ;;  %v3941_v22 = vpop.f32.mrb[18].mxu1 }
 0x2d8   : > { %v1976_v26 = vmax.f32 %v4867_v54, 0.0  ;;  %v4876_v31 = vadd.f32 %v4046_v28, %v3941_v22  ;;  %v1866_v33 = vpop.f32.mrb[19].mxu1 }
 0x2d9   : > { %v1974_v29 = vmax.f32 %v4872_v19, 0.0  ;;  %v4880_v37 = vadd.f32 %v4047_v18, %v1866_v33 }
 0x2da   : > { %2008 = vst.msk [vmem:[#allocation2 + $0xf1] sm:$0xff] %vm175_vm0, %v1976_v26  ;;  %v1977_v41 = vmax.f32 %v4876_v31, 0.0  ;;  %2418 = vrot.lane.b32.xlu0 %v2763_v9, %s4072_s6 }
 0x2db   : > { %2928 = vrot.lane.b32.xlu1 %v2891_v32, %s4075_s11  ;;  %2006 = vst.msk [vmem:[#allocation2 + $0xd9] sm:$0xff] %vm175_vm0, %v1974_v29  ;;  %v1975_v42 = vmax.f32 %v4880_v37, 0.0 }
 0x2dc   : > { %2009 = vst.msk [vmem:[#allocation2 + $0xf9] sm:$0xff] %vm175_vm0, %v1977_v41 }
 0x2dd   : > { %2007 = vst.msk [vmem:[#allocation2 + $0xe1] sm:$0xff] %vm175_vm0, %v1975_v42 }
 0x2de   : > { %2674 = vrot.lane.b32.xlu0 %v2636_v0, %s4073_s7 }
 0x2df   : > { %2546 = vrot.lane.b32.xlu1 %v2891_v32, %s4074_s10 }
 0x2e1   : > { %v2870_v36 = vld [vmem:[#allocation2 + $0xf1] sm:$0xff] }
 0x2e2   : > { %2292 = vrot.lane.b32.xlu0 %v2636_v0, %s4071_s30  ;;  %v2742_v44 = vld [vmem:[#allocation2 + $0xf0] sm:$0xff]  ;;  %v2740_v52 = vld [vmem:[#allocation2 + $0xd8] sm:$0xff] }
 0x2e3   : > { %2164 = vrot.lane.b32.xlu1 %v2891_v32, %s4070_s27  ;;  %v2871_v45 = vld [vmem:[#allocation2 + $0xf9] sm:$0xff]  ;;  %v4051_v32 = vld [vmem:[%s4163_s22 + $0xa8] sm:$0xff] }
 0x2e4   : > { %v2743_v20 = vld [vmem:[#allocation2 + $0xf8] sm:$0xff]  ;;  %v2894_v49 = vpack.c.bf16 %v2871_v45, %v2870_v36  ;;  %v2741_v53 = vld [vmem:[#allocation2 + $0xe0] sm:$0xff] }
 0x2e5   : > { %v2616_v48 = vld [vmem:[#allocation2 + $0xf2] sm:$0xff]  ;;  %v2766_v34 = vpack.c.bf16 %v2743_v20, %v2742_v44  ;;  %v2617_v51 = vld [vmem:[#allocation2 + $0xfa] sm:$0xff]  ;;  %v2765_v40 = vpack.c.bf16 %v2741_v53, %v2740_v52  ;;  %v2615_v59 = vld [vmem:[#allocation2 + $0xe2] sm:$0xff] }
 0x2e6   : > { %v2639_v57 = vpack.c.bf16 %v2617_v51, %v2616_v48  ;;  %v2614_v58 = vld [vmem:[#allocation2 + $0xda] sm:$0xff]  ;;  %2934 = vrot.lane.b32.xlu0 %v2894_v49, %s4075_s11 }
 0x2e7   : > { %2806 = vrot.lane.b32.xlu1 %v2766_v34, %s4076_s13  ;;  %v2638_v43 = vpack.c.bf16 %v2615_v59, %v2614_v58  ;;  %2080 = vst.msk [vmem:[#allocation3 + $0xa0] sm:$0xff] %vm175_vm0, %v2766_v34  ;;  %2079 = vst.msk [vmem:[#allocation3 + $0x90] sm:$0xff] %vm175_vm0, %v2765_v40  ;;  %v2869_v55 = vld [vmem:[#allocation2 + $0xe1] sm:$0xff]  ;;  %v2868_v12 = vld [vmem:[#allocation2 + $0xd9] sm:$0xff] }
 0x2e8   : > { %3038 = vst.msk [vmem:[#allocation3 + $0x88] sm:$0xff] %vm175_vm0, %v2639_v57  ;;  %v2919_v60 = vpop.permute.xlu0 %2918  ;;  %v2893_v16 = vpack.c.bf16 %v2869_v55, %v2868_v12  ;;  %v4052_v12 = vld [vmem:[%s4163_s22 + $0xd0] sm:$0xff] }
 0x2e9   : > { %v2791_v61 = vpop.permute.xlu1 %2790  ;;  %3037 = vst.msk [vmem:[#allocation3 + $0x78] sm:$0xff] %vm175_vm0, %v2638_v43 }
 0x2ea   : > { %2552 = vrot.lane.b32.xlu0 %v2894_v49, %s4074_s10 }
 0x2eb   : > { %2424 = vrot.lane.b32.xlu1 %v2766_v34, %s4072_s6 }
 0x2ec   : > { %v2537_v63 = vpop.permute.xlu0 %2536 }
 0x2ed   : > { %v2409_v0 = vpop.permute.xlu1 %2408 }
 0x2ee   : > { %2170 = vrot.lane.b32.xlu0 %v2894_v49, %s4070_s27 }
 0x2ef   : > { %2680 = vrot.lane.b32.xlu1 %v2639_v57, %s4073_s7 }
 0x2f0   : > { %v2155_v27 = vpop.permute.xlu0 %2154 }
 0x2f1   : > { %v2665_v1 = vpop.permute.xlu1 %2664  ;;  %2200 = vst.msk [vmem:[#allocation3 + $0x20] sm:$0xff] %vm494_vm3, %v2155_v27  ;;  %v3944_v3 = vpop.f32.mrb[20].mxu1 }
 0x2f2   : > { %v4906_v5 = vadd.f32 %v4048_v4, %v3944_v3  ;;  %2804 = vrot.lane.b32.xlu0 %v2765_v40, %s4076_s13  ;;  %v1879_v6 = vpop.f32.mrb[21].mxu1 }
 0x2f3   : > { %2298 = vrot.lane.b32.xlu1 %v2639_v57, %s4071_s30  ;;  %v4911_v8 = vadd.f32 %v4049_v30, %v1879_v6  ;;  %v3945_v9 = vpop.f32.mrb[22].mxu1 }
 0x2f4   : > { %v1980_v10 = vmax.f32 %v4906_v5, 0.0  ;;  %v4915_v7 = vadd.f32 %v4050_v13, %v3945_v9  ;;  %v2407_v22 = vpop.permute.xlu0 %2406  ;;  %v1882_v28 = vpop.f32.mrb[23].mxu1 }
 0x2f5   : > { %v2283_v11 = vpop.permute.xlu1 %2282  ;;  %v1978_v26 = vmax.f32 %v4911_v8, 0.0  ;;  %2454 = vst.msk [vmem:[#allocation3] sm:$0xff] %vm752_vm5, %v2407_v22  ;;  %v4923_v29 = vadd.f32 %v4051_v32, %v1882_v28 }
 0x2f6   : > { %2328 = vst.msk [vmem:[#allocation3 + $0x20] sm:$0xff] %vm623_vm4, %v2283_v11  ;;  %v1981_v33 = vmax.f32 %v4915_v7, 0.0  ;;  %2422 = vrot.lane.b32.xlu0 %v2765_v40, %s4072_s6  ;;  %v4053_v11 = vld [vmem:[%s4163_s22 + $0xc0] sm:$0xff] }
 0x2f7   : > { %2012 = vst.msk [vmem:[#allocation2 + $0x121] sm:$0xff] %vm175_vm0, %v1980_v10  ;;  %2932 = vrot.lane.b32.xlu1 %v2893_v16, %s4075_s11  ;;  %2010 = vst.msk [vmem:[#allocation2 + $0x109] sm:$0xff] %vm175_vm0, %v1978_v26  ;;  %v1979_v18 = vmax.f32 %v4923_v29, 0.0 }
 0x2f8   : > { %2013 = vst.msk [vmem:[#allocation2 + $0x129] sm:$0xff] %vm175_vm0, %v1981_v33  ;;  %v2663_v42 = vpop.permute.xlu0 %2662  ;;  %v4054_v33 = vld [vmem:[%s4163_s22 + $0xd8] sm:$0xff] }
 0x2f9   : > { %v2535_v41 = vpop.permute.xlu1 %2534  ;;  %2011 = vst.msk [vmem:[#allocation2 + $0x111] sm:$0xff] %vm175_vm0, %v1979_v18 }
 0x2fa   : > { %2582 = vst.msk [vmem:[#allocation3] sm:$0xff] %vm881_vm6, %v2535_v41  ;;  %2678 = vrot.lane.b32.xlu0 %v2638_v43, %s4073_s7 }
 0x2fb   : > { %2710 = vst.msk [vmem:[#allocation3] sm:$0xff] %vm1010_vm7, %v2663_v42  ;;  %2550 = vrot.lane.b32.xlu1 %v2893_v16, %s4074_s10 }
 0x2fc   : > { %2838 = vst.msk [vmem:[#allocation3] sm:$0xff] %vm1140_vm8, %v2791_v61  ;;  %v2281_v36 = vpop.permute.xlu0 %2280 }
 0x2fd   : > { %2966 = vst.msk [vmem:[#allocation3] sm:$0xff] %vm1269_vm9, %v2919_v60  ;;  %v2153_v44 = vpop.permute.xlu1 %2152 }
 0x2fe   : > { %2199 = vst.msk [vmem:[#allocation3 + $0x10] sm:$0xff] %vm494_vm3, %v2153_v44  ;;  %2296 = vrot.lane.b32.xlu0 %v2638_v43, %s4071_s30  ;;  %v2874_v45 = vld [vmem:[#allocation2 + $0x121] sm:$0xff]  ;;  %v2872_v26 = vld [vmem:[#allocation2 + $0x109] sm:$0xff] }
 0x2ff   : > { %2327 = vst.msk [vmem:[#allocation3 + $0x10] sm:$0xff] %vm623_vm4, %v2281_v36  ;;  %2168 = vrot.lane.b32.xlu1 %v2893_v16, %s4070_s27  ;;  %v2746_v20 = vld [vmem:[#allocation2 + $0x120] sm:$0xff]  ;;  %v2875_v48 = vld [vmem:[#allocation2 + $0x129] sm:$0xff] }
 0x300   : > { %2455 = vst.msk [vmem:[#allocation3 + $0x10] sm:$0xff] %vm752_vm5, %v2409_v0  ;;  %v2747_v49 = vld [vmem:[#allocation2 + $0x128] sm:$0xff]  ;;  %v2896_v51 = vpack.c.bf16 %v2875_v48, %v2874_v45  ;;  %v2745_v58 = vld [vmem:[#allocation2 + $0x110] sm:$0xff] }
 0x301   : > { %v2620_v34 = vld [vmem:[#allocation2 + $0x122] sm:$0xff]  ;;  %2583 = vst.msk [vmem:[#allocation3 + $0x10] sm:$0xff] %vm881_vm6, %v2537_v63  ;;  %v2768_v52 = vpack.c.bf16 %v2747_v49, %v2746_v20  ;;  %v2621_v53 = vld [vmem:[#allocation2 + $0x12a] sm:$0xff]  ;;  %v2619_v60 = vld [vmem:[#allocation2 + $0x112] sm:$0xff] }
 0x302   : > { %2711 = vst.msk [vmem:[#allocation3 + $0x10] sm:$0xff] %vm1010_vm7, %v2665_v1  ;;  %v2641_v57 = vpack.c.bf16 %v2621_v53, %v2620_v34  ;;  %v2744_v40 = vld [vmem:[#allocation2 + $0x108] sm:$0xff]  ;;  %2938 = vrot.lane.b32.xlu0 %v2896_v51, %s4075_s11  ;;  %v2873_v9 = vld [vmem:[#allocation2 + $0x111] sm:$0xff] }
 0x303   : > { %v2618_v59 = vld [vmem:[#allocation2 + $0x10a] sm:$0xff]  ;;  %2810 = vrot.lane.b32.xlu1 %v2768_v52, %s4076_s13  ;;  %v2767_v43 = vpack.c.bf16 %v2745_v58, %v2744_v40  ;;  %2082 = vst.msk [vmem:[#allocation3 + $0xc0] sm:$0xff] %vm175_vm0, %v2768_v52  ;;  %v2895_v42 = vpack.c.bf16 %v2873_v9, %v2872_v26 }
 0x304   : > { %v3046_v61 = vld [vmem:[#allocation3] sm:$0xff]  ;;  %v2640_v0 = vpack.c.bf16 %v2619_v60, %v2618_v59  ;;  %3040 = vst.msk [vmem:[#allocation3 + $0xa8] sm:$0xff] %vm175_vm0, %v2641_v57  ;;  %v4948_v63 = vpop.permute.xlu0 %2922  ;;  %v3049_v1 = vld [vmem:[#allocation3 + $0x18] sm:$0xff] }
 0x305   : > { %v2795_v27 = vpop.permute.xlu1 %2794  ;;  %3232 = vmatmul.mubr.bf16.vlgmr.msra.gmra.mrb[32].mxu1 %v3046_v61  ;;  %2081 = vst.msk [vmem:[#allocation3 + $0xb0] sm:$0xff] %vm175_vm0, %v2767_v43  ;;  %v4055_v20 = vld [vmem:[%s4163_s22 + $0xc8] sm:$0xff] }
 0x306   : > { %3852 = vmatprep.mubr.msk.bf16.mxu1 %vm175_vm0, %v3049_v1  ;;  %3039 = vst.msk [vmem:[#allocation3 + $0x98] sm:$0xff] %vm175_vm0, %v2640_v0  ;;  %2556 = vrot.lane.b32.xlu0 %v2896_v51, %s4074_s10 }
 0x307   : > { %2428 = vrot.lane.b32.xlu1 %v2768_v52, %s4072_s6 }
 0x308   : > { %v4955_v3 = vpop.permute.xlu0 %2540 }
 0x309   : > { %v4957_v55 = vpop.permute.xlu1 %2412 }
 0x30a   : > { %2174 = vrot.lane.b32.xlu0 %v2896_v51, %s4070_s27 }
 0x30b   : > { %2684 = vrot.lane.b32.xlu1 %v2641_v57, %s4073_s7 }
 0x30c   : > { %v2159_v6 = vpop.permute.xlu0 %2158 }
 0x30d   : > { %v4961_v4 = vpop.permute.xlu1 %2668  ;;  %2202 = vst.msk [vmem:[#allocation3 + $0x40] sm:$0xff] %vm494_vm3, %v2159_v6  ;;  %v3948_v30 = vpop.f32.mrb[24].mxu1 }
 0x30e   : > { %v4965_v10 = vadd.f32 %v4052_v12, %v3948_v30  ;;  %2808 = vrot.lane.b32.xlu0 %v2767_v43, %s4076_s13  ;;  %v1895_v13 = vpop.f32.mrb[25].mxu1 }
 0x30f   : > { %2302 = vrot.lane.b32.xlu1 %v2641_v57, %s4071_s30  ;;  %v4970_v22 = vadd.f32 %v4053_v11, %v1895_v13  ;;  %v3949_v16 = vpop.f32.mrb[26].mxu1 }
 0x310   : > { %v1984_v28 = vmax.f32 %v4965_v10, 0.0  ;;  %v4974_v32 = vadd.f32 %v4054_v33, %v3949_v16  ;;  %v2793_v41 = vpop.permute.xlu0 %2792  ;;  %v1898_v44 = vpop.f32.mrb[27].mxu1 }
 0x311   : > { %v2287_v18 = vpop.permute.xlu1 %2286  ;;  %v1982_v36 = vmax.f32 %v4970_v22, 0.0  ;;  %2839 = vst.msk [vmem:[#allocation3 + $0x10] sm:$0xff] %vm1140_vm8, %v2793_v41  ;;  %v4982_v48 = vadd.f32 %v4055_v20, %v1898_v44 }
 0x312   : > { %2330 = vst.msk [vmem:[#allocation3 + $0x40] sm:$0xff] %vm623_vm4, %v2287_v18  ;;  %v1985_v45 = vmax.f32 %v4974_v32, 0.0  ;;  %2426 = vrot.lane.b32.xlu0 %v2767_v43, %s4072_s6 }
 0x313   : > { %2016 = vst.msk [vmem:[#allocation2 + $0x151] sm:$0xff] %vm175_vm0, %v1984_v28  ;;  %2936 = vrot.lane.b32.xlu1 %v2895_v42, %s4075_s11  ;;  %2014 = vst.msk [vmem:[#allocation2 + $0x139] sm:$0xff] %vm175_vm0, %v1982_v36  ;;  %v1983_v49 = vmax.f32 %v4982_v48, 0.0 }
 0x314   : > { %2017 = vst.msk [vmem:[#allocation2 + $0x159] sm:$0xff] %vm175_vm0, %v1985_v45  ;;  %v2411_v51 = vpop.permute.xlu0 %2410  ;;  %v4056_v45 = vld [vmem:[%s4163_s22 + $0xf0] sm:$0xff] }
 0x315   : > { %v2921_v34 = vpop.permute.xlu1 %2920  ;;  %2456 = vst.msk [vmem:[#allocation3 + $0x20] sm:$0xff] %vm752_vm5, %v2411_v51 }
 0x316   : > { %2967 = vst.msk [vmem:[#allocation3 + $0x10] sm:$0xff] %vm1269_vm9, %v2921_v34  ;;  %2682 = vrot.lane.b32.xlu0 %v2640_v0, %s4073_s7  ;;  %v4057_v34 = vld [vmem:[%s4163_s22 + $0xe0] sm:$0xff] }
 0x317   : > { %2015 = vst.msk [vmem:[#allocation2 + $0x141] sm:$0xff] %vm175_vm0, %v1983_v49  ;;  %2554 = vrot.lane.b32.xlu1 %v2895_v42, %s4074_s10 }
 0x318   : > { %v2667_v53 = vpop.permute.xlu0 %2666 }
 0x319   : > { %v2539_v52 = vpop.permute.xlu1 %2538 }
 0x31a   : > { %2584 = vst.msk [vmem:[#allocation3 + $0x20] sm:$0xff] %vm881_vm6, %v2539_v52  ;;  %2300 = vrot.lane.b32.xlu0 %v2640_v0, %s4071_s30  ;;  %v2878_v57 = vld [vmem:[#allocation2 + $0x151] sm:$0xff] }
 0x31b   : > { %2712 = vst.msk [vmem:[#allocation3 + $0x20] sm:$0xff] %vm1010_vm7, %v2667_v53  ;;  %2172 = vrot.lane.b32.xlu1 %v2895_v42, %s4070_s27  ;;  %v2750_v40 = vld [vmem:[#allocation2 + $0x150] sm:$0xff]  ;;  %v2879_v58 = vld [vmem:[#allocation2 + $0x159] sm:$0xff] }
 0x31c   : > { %2840 = vst.msk [vmem:[#allocation3 + $0x20] sm:$0xff] %vm1140_vm8, %v2795_v27  ;;  %v2751_v59 = vld [vmem:[#allocation2 + $0x158] sm:$0xff]  ;;  %v2285_v60 = vpop.permute.xlu0 %2284  ;;  %v2898_v6 = vpack.c.bf16 %v2879_v58, %v2878_v57 }
 0x31d   : > { %v2624_v43 = vld [vmem:[#allocation2 + $0x152] sm:$0xff]  ;;  %2968 = vst.msk [vmem:[#allocation3 + $0x20] sm:$0xff] %vm1269_vm9, %v4948_v63  ;;  %v2157_v61 = vpop.permute.xlu1 %2156  ;;  %v3048_v1 = vld [vmem:[#allocation3 + $0x10] sm:$0xff]  ;;  %v2770_v30 = vpack.c.bf16 %v2751_v59, %v2750_v40 }
 0x31e   : > { %v2625_v9 = vld [vmem:[#allocation2 + $0x15a] sm:$0xff]  ;;  %2201 = vst.msk [vmem:[#allocation3 + $0x30] sm:$0xff] %vm494_vm3, %v2157_v61  ;;  %3240 = vmatmul.mubr.bf16.gmra.mrb[36].mxu1 %v3048_v1  ;;  %2942 = vrot.lane.b32.xlu0 %v2898_v6, %s4075_s11  ;;  %v2623_v16 = vld [vmem:[#allocation2 + $0x142] sm:$0xff] }
 0x31f   : > { %v2643_v0 = vpack.c.bf16 %v2625_v9, %v2624_v43  ;;  %v2748_v12 = vld [vmem:[#allocation2 + $0x138] sm:$0xff]  ;;  %v2749_v13 = vld [vmem:[#allocation2 + $0x140] sm:$0xff]  ;;  %2329 = vst.msk [vmem:[#allocation3 + $0x30] sm:$0xff] %vm623_vm4, %v2285_v60  ;;  %2814 = vrot.lane.b32.xlu1 %v2770_v30, %s4076_s13 }
 0x320   : > { %v2622_v11 = vld [vmem:[#allocation2 + $0x13a] sm:$0xff]  ;;  %v2769_v27 = vpack.c.bf16 %v2749_v13, %v2748_v12  ;;  %2084 = vst.msk [vmem:[#allocation3 + $0xe0] sm:$0xff] %vm175_vm0, %v2770_v30  ;;  %v5012_v28 = vpop.permute.xlu0 %2926 }
 0x321   : > { %v3051_v63 = vld [vmem:[#allocation3 + $0x28] sm:$0xff]  ;;  %2457 = vst.msk [vmem:[#allocation3 + $0x30] sm:$0xff] %vm752_vm5, %v4957_v55  ;;  %v2642_v26 = vpack.c.bf16 %v2623_v16, %v2622_v11  ;;  %v2799_v33 = vpop.permute.xlu1 %2798  ;;  %v2877_v44 = vld [vmem:[#allocation2 + $0x141] sm:$0xff] }
 0x322   : > { %3853 = vmatprep.mubr.msk.bf16.mxu1 %vm175_vm0, %v3051_v63  ;;  %3042 = vst.msk [vmem:[#allocation3 + $0xc8] sm:$0xff] %vm175_vm0, %v2643_v0  ;;  %2083 = vst.msk [vmem:[#allocation3 + $0xd0] sm:$0xff] %vm175_vm0, %v2769_v27  ;;  %2560 = vrot.lane.b32.xlu0 %v2898_v6, %s4074_s10  ;;  %v2876_v53 = vld [vmem:[#allocation2 + $0x139] sm:$0xff] }
 0x323   : > { %2585 = vst.msk [vmem:[#allocation3 + $0x30] sm:$0xff] %vm881_vm6, %v4955_v3  ;;  %2432 = vrot.lane.b32.xlu1 %v2770_v30, %s4072_s6  ;;  %v3053_v3 = vld [vmem:[#allocation3 + $0x38] sm:$0xff]  ;;  %v4058_v40 = vld [vmem:[%s4163_s22 + $0xf8] sm:$0xff]  ;;  %v2897_v60 = vpack.c.bf16 %v2877_v44, %v2876_v53 }
 0x324   : > { %2713 = vst.msk [vmem:[#allocation3 + $0x30] sm:$0xff] %vm1010_vm7, %v4961_v4  ;;  %v3050_v55 = vld [vmem:[#allocation3 + $0x20] sm:$0xff]  ;;  %v5020_v18 = vpop.permute.xlu0 %2544  ;;  %v4059_v30 = vld [vmem:[%s4163_s22 + $0xe8] sm:$0xff] }
 0x325   : > { %3041 = vst.msk [vmem:[#allocation3 + $0xb8] sm:$0xff] %vm175_vm0, %v2642_v26  ;;  %v5022_v41 = vpop.permute.xlu1 %2416 }
 0x326   : > { %3248 = vmatmul.mubr.bf16.gmra.mrb[40].mxu1 %v3050_v55  ;;  %2178 = vrot.lane.b32.xlu0 %v2898_v6, %s4070_s27 }
 0x327   : > { %2688 = vrot.lane.b32.xlu1 %v2643_v0, %s4073_s7  ;;  %3854 = vmatprep.mubr.msk.bf16.mxu1 %vm175_vm0, %v3053_v3 }
 0x328   : > { %v2163_v42 = vpop.permute.xlu0 %2162 }
 0x329   : > { %v5027_v4 = vpop.permute.xlu1 %2672  ;;  %2204 = vst.msk [vmem:[#allocation3 + $0x60] sm:$0xff] %vm494_vm3, %v2163_v42  ;;  %v3952_v36 = vpop.f32.mrb[28].mxu1 }
 0x32a   : > { %v5031_v20 = vadd.f32 %v4056_v45, %v3952_v36  ;;  %2812 = vrot.lane.b32.xlu0 %v2769_v27, %s4076_s13  ;;  %v1911_v49 = vpop.f32.mrb[29].mxu1 }
 0x32b   : > { %2306 = vrot.lane.b32.xlu1 %v2643_v0, %s4071_s30  ;;  %v5036_v51 = vadd.f32 %v4057_v34, %v1911_v49  ;;  %v3953_v52 = vpop.f32.mrb[30].mxu1  ;;  %v3055_v49 = vld [vmem:[#allocation3 + $0x48] sm:$0xff] }
 0x32c   : > { %v1988_v57 = vmax.f32 %v5031_v20, 0.0  ;;  %v5040_v58 = vadd.f32 %v4058_v40, %v3953_v52  ;;  %v2797_v43 = vpop.permute.xlu0 %2796  ;;  %v1914_v1 = vpop.f32.mrb[31].mxu1 }
 0x32d   : > { %v2291_v59 = vpop.permute.xlu1 %2290  ;;  %v1986_v61 = vmax.f32 %v5036_v51, 0.0  ;;  %2841 = vst.msk [vmem:[#allocation3 + $0x30] sm:$0xff] %vm1140_vm8, %v2797_v43  ;;  %v5048_v9 = vadd.f32 %v4059_v30, %v1914_v1 }
 0x32e   : > { %2332 = vst.msk [vmem:[#allocation3 + $0x60] sm:$0xff] %vm623_vm4, %v2291_v59  ;;  %v1989_v6 = vmax.f32 %v5040_v58, 0.0  ;;  %2430 = vrot.lane.b32.xlu0 %v2769_v27, %s4072_s6 }
 0x32f   : > { %2020 = vst.msk [vmem:[#allocation2 + $0x181] sm:$0xff] %vm175_vm0, %v1988_v57  ;;  %2940 = vrot.lane.b32.xlu1 %v2897_v60, %s4075_s11  ;;  %2018 = vst.msk [vmem:[#allocation2 + $0x169] sm:$0xff] %vm175_vm0, %v1986_v61  ;;  %v1987_v0 = vmax.f32 %v5048_v9, 0.0 }
 0x330   : > { %2021 = vst.msk [vmem:[#allocation2 + $0x189] sm:$0xff] %vm175_vm0, %v1989_v6  ;;  %v2415_v13 = vpop.permute.xlu0 %2414 }
 0x331   : > { %v2925_v12 = vpop.permute.xlu1 %2924  ;;  %2458 = vst.msk [vmem:[#allocation3 + $0x40] sm:$0xff] %vm752_vm5, %v2415_v13 }
 0x332   : > { %2969 = vst.msk [vmem:[#allocation3 + $0x30] sm:$0xff] %vm1269_vm9, %v2925_v12  ;;  %2686 = vrot.lane.b32.xlu0 %v2642_v26, %s4073_s7 }
 0x333   : > { %2019 = vst.msk [vmem:[#allocation2 + $0x171] sm:$0xff] %vm175_vm0, %v1987_v0  ;;  %2558 = vrot.lane.b32.xlu1 %v2897_v60, %s4074_s10 }
 0x334   : > { %v2671_v63 = vpop.permute.xlu0 %2670 }
 0x335   : > { %v2543_v11 = vpop.permute.xlu1 %2542 }
 0x336   : > { %2586 = vst.msk [vmem:[#allocation3 + $0x40] sm:$0xff] %vm881_vm6, %v2543_v11  ;;  %2304 = vrot.lane.b32.xlu0 %v2642_v26, %s4071_s30  ;;  %v2882_v27 = vld [vmem:[#allocation2 + $0x181] sm:$0xff]  ;;  %v2880_v0 = vld [vmem:[#allocation2 + $0x169] sm:$0xff] }
 0x337   : > { %2714 = vst.msk [vmem:[#allocation3 + $0x40] sm:$0xff] %vm1010_vm7, %v2671_v63  ;;  %2176 = vrot.lane.b32.xlu1 %v2897_v60, %s4070_s27  ;;  %v2754_v16 = vld [vmem:[#allocation2 + $0x180] sm:$0xff]  ;;  %v2883_v55 = vld [vmem:[#allocation2 + $0x189] sm:$0xff] }
 0x338   : > { %2842 = vst.msk [vmem:[#allocation3 + $0x40] sm:$0xff] %vm1140_vm8, %v2799_v33  ;;  %v2755_v3 = vld [vmem:[#allocation2 + $0x188] sm:$0xff]  ;;  %v2289_v36 = vpop.permute.xlu0 %2288  ;;  %v2900_v34 = vpack.c.bf16 %v2883_v55, %v2882_v27  ;;  %v2756_v27 = vld [vmem:[#allocation2 + $0x198] sm:$0xff] }
 0x339   : > { %v2628_v42 = vld [vmem:[#allocation2 + $0x182] sm:$0xff]  ;;  %2970 = vst.msk [vmem:[#allocation3 + $0x40] sm:$0xff] %vm1269_vm9, %v5012_v28  ;;  %v2161_v44 = vpop.permute.xlu1 %2160  ;;  %v2772_v52 = vpack.c.bf16 %v2755_v3, %v2754_v16  ;;  %v2629_v53 = vld [vmem:[#allocation2 + $0x18a] sm:$0xff] }
 0x33a   : > { %v3052_v45 = vld [vmem:[#allocation3 + $0x30] sm:$0xff]  ;;  %2203 = vst.msk [vmem:[#allocation3 + $0x50] sm:$0xff] %vm494_vm3, %v2161_v44  ;;  %v2752_v26 = vld [vmem:[#allocation2 + $0x168] sm:$0xff]  ;;  %v2753_v57 = vld [vmem:[#allocation2 + $0x170] sm:$0xff]  ;;  %v2645_v33 = vpack.c.bf16 %v2629_v53, %v2628_v42  ;;  %2946 = vrot.lane.b32.xlu0 %v2900_v34, %s4075_s11 }
 0x33b   : > { %3256 = vmatmul.mubr.bf16.gmra.mrb[44].mxu1 %v3052_v45  ;;  %v2626_v40 = vld [vmem:[#allocation2 + $0x16a] sm:$0xff]  ;;  %2331 = vst.msk [vmem:[#allocation3 + $0x50] sm:$0xff] %vm623_vm4, %v2289_v36  ;;  %v2771_v28 = vpack.c.bf16 %v2753_v57, %v2752_v26  ;;  %v2627_v59 = vld [vmem:[#allocation2 + $0x172] sm:$0xff]  ;;  %2818 = vrot.lane.b32.xlu1 %v2772_v52, %s4076_s13  ;;  %v2757_v16 = vld [vmem:[#allocation2 + $0x1a0] sm:$0xff] }
 0x33c   : > { %3855 = vmatprep.mubr.msk.bf16.mxu1 %vm175_vm0, %v3055_v49  ;;  %2459 = vst.msk [vmem:[#allocation3 + $0x50] sm:$0xff] %vm752_vm5, %v5022_v41  ;;  %v2644_v43 = vpack.c.bf16 %v2627_v59, %v2626_v40  ;;  %v2931_v60 = vpop.permute.xlu0 %2930  ;;  %v2881_v41 = vld [vmem:[#allocation2 + $0x171] sm:$0xff]  ;;  %v2884_v42 = vld [vmem:[#allocation2 + $0x199] sm:$0xff]  ;;  %v2885_v36 = vld [vmem:[#allocation2 + $0x1a1] sm:$0xff]  ;;  %v2773_v44 = vpack.c.bf16 %v2757_v16, %v2756_v27 }
 0x33d   : > { %3044 = vst.msk [vmem:[#allocation3 + $0xe8] sm:$0xff] %vm175_vm0, %v2645_v33  ;;  %v2803_v61 = vpop.permute.xlu1 %2802  ;;  %2085 = vst.msk [vmem:[#allocation3 + $0xf0] sm:$0xff] %vm175_vm0, %v2771_v28  ;;  %v2899_v12 = vpack.c.bf16 %v2881_v41, %v2880_v0  ;;  %v2901_v45 = vpack.c.bf16 %v2885_v36, %v2884_v42  ;;  %v3059_v57 = vld [vmem:[#allocation3 + $0x68] sm:$0xff] }
 0x33e   : > { %2587 = vst.msk [vmem:[#allocation3 + $0x50] sm:$0xff] %vm881_vm6, %v5020_v18  ;;  %2816 = vrot.lane.b32.xlu0 %v2771_v28, %s4076_s13  ;;  %v3057_v18 = vld [vmem:[#allocation3 + $0x58] sm:$0xff] }
 0x33f   : > { %2715 = vst.msk [vmem:[#allocation3 + $0x50] sm:$0xff] %vm1010_vm7, %v5027_v4  ;;  %2436 = vrot.lane.b32.xlu1 %v2772_v52, %s4072_s6 }
 0x340   : > { %3043 = vst.msk [vmem:[#allocation3 + $0xd8] sm:$0xff] %vm175_vm0, %v2644_v43  ;;  %v3054_v1 = vld [vmem:[#allocation3 + $0x40] sm:$0xff]  ;;  %v2549_v6 = vpop.permute.xlu0 %2548 }
 0x341   : > { %v2421_v30 = vpop.permute.xlu1 %2420 }
 0x342   : > { %2434 = vrot.lane.b32.xlu0 %v2771_v28, %s4072_s6 }
 0x343   : > { %3264 = vmatmul.mubr.bf16.gmra.mrb[48].mxu1 %v3054_v1  ;;  %2944 = vrot.lane.b32.xlu1 %v2899_v12, %s4075_s11 }
 0x344   : > { %3856 = vmatprep.mubr.msk.bf16.mxu1 %vm175_vm0, %v3057_v18  ;;  %v2167_v13 = vpop.permute.xlu0 %2166 }
 0x345   : > { %v2677_v4 = vpop.permute.xlu1 %2676  ;;  %2206 = vst.msk [vmem:[#allocation3 + $0x80] sm:$0xff] %vm494_vm3, %v2167_v13 }
 0x346   : > { %2690 = vrot.lane.b32.xlu0 %v2644_v43, %s4073_s7 }
 0x347   : > { %2562 = vrot.lane.b32.xlu1 %v2899_v12, %s4074_s10 }
 0x348   : > { %v2801_v63 = vpop.permute.xlu0 %2800 }
 0x349   : > { %v2295_v11 = vpop.permute.xlu1 %2294  ;;  %2843 = vst.msk [vmem:[#allocation3 + $0x50] sm:$0xff] %vm1140_vm8, %v2801_v63  ;;  %v3063_v63 = vld [vmem:[#allocation3 + $0x88] sm:$0xff] }
 0x34a   : > { %2334 = vst.msk [vmem:[#allocation3 + $0x80] sm:$0xff] %vm623_vm4, %v2295_v11  ;;  %2564 = vrot.lane.b32.xlu0 %v2900_v34, %s4074_s10 }
 0x34b   : > { %2180 = vrot.lane.b32.xlu1 %v2899_v12, %s4070_s27 }
 0x34c   : > { %v2419_v3 = vpop.permute.xlu0 %2418 }
 0x34d   : > { %v2929_v55 = vpop.permute.xlu1 %2928  ;;  %2460 = vst.msk [vmem:[#allocation3 + $0x60] sm:$0xff] %vm752_vm5, %v2419_v3 }
 0x34e   : > { %2971 = vst.msk [vmem:[#allocation3 + $0x50] sm:$0xff] %vm1269_vm9, %v2929_v55  ;;  %2308 = vrot.lane.b32.xlu0 %v2644_v43, %s4071_s30  ;;  %v3867_v55 = vld [vmem:[%s5304_s2 + $0x4] sm:$0xf] }
 0x34f   : > { %2692 = vrot.lane.b32.xlu1 %v2645_v33, %s4073_s7  ;;  %3991 = vmatprep.subr.msk.bf16.mxu0 %vm1761_vm10, %v3867_v55  ;;  %v3459_v3 = vsel %vm1761_vm10, %v3867_v55, 0  ;;  %s5202_s7 = scalar_lea.vmem %s5305_s3, %s3780_s19 }
 0x350   : > { %v2675_v34 = vpop.permute.xlu0 %2674  ;;  %3992 = vmatprep.subr.msk.bf16.mxu1 %vm1761_vm10, %v3867_v55  ;;  %3955 = vmatpush3.bf16.msra.mxu0 %v3459_v3 }
 0x351   : > { %v2547_v49 = vpop.permute.xlu1 %2546  ;;  %3989 = vmatpush3.bf16.msra.mxu1 %v3459_v3 }
 0x352   : > { %2588 = vst.msk [vmem:[#allocation3 + $0x60] sm:$0xff] %vm881_vm6, %v2547_v49  ;;  %2820 = vrot.lane.b32.xlu0 %v2773_v44, %s4076_s13 }
 0x353   : > { %2716 = vst.msk [vmem:[#allocation3 + $0x60] sm:$0xff] %vm1010_vm7, %v2675_v34  ;;  %2948 = vrot.lane.b32.xlu1 %v2901_v45, %s4075_s11  ;;  %v3065_v45 = vld [vmem:[#allocation3 + $0x98] sm:$0xff] }
 0x354   : > { %2844 = vst.msk [vmem:[#allocation3 + $0x60] sm:$0xff] %vm1140_vm8, %v2803_v61  ;;  %v2293_v52 = vpop.permute.xlu0 %2292 }
 0x355   : > { %2972 = vst.msk [vmem:[#allocation3 + $0x60] sm:$0xff] %vm1269_vm9, %v2931_v60  ;;  %v2165_v53 = vpop.permute.xlu1 %2164  ;;  %v3056_v26 = vld [vmem:[#allocation3 + $0x50] sm:$0xff]  ;;  %v3061_v60 = vld [vmem:[#allocation3 + $0x78] sm:$0xff] }
 0x356   : > { %2205 = vst.msk [vmem:[#allocation3 + $0x70] sm:$0xff] %vm494_vm3, %v2165_v53  ;;  %3272 = vmatmul.mubr.bf16.gmra.mrb[52].mxu1 %v3056_v26 }
 0x357   : > { %2333 = vst.msk [vmem:[#allocation3 + $0x70] sm:$0xff] %vm623_vm4, %v2293_v52  ;;  %3857 = vmatprep.mubr.msk.bf16.mxu1 %vm175_vm0, %v3059_v57 }
 0x358   : > { %2461 = vst.msk [vmem:[#allocation3 + $0x70] sm:$0xff] %vm752_vm5, %v2421_v30  ;;  %v2935_v40 = vpop.permute.xlu0 %2934 }
 0x359   : > { %2589 = vst.msk [vmem:[#allocation3 + $0x70] sm:$0xff] %vm881_vm6, %v2549_v6  ;;  %v2807_v33 = vpop.permute.xlu1 %2806 }
 0x35a   : > { %2717 = vst.msk [vmem:[#allocation3 + $0x70] sm:$0xff] %vm1010_vm7, %v2677_v4 }
 0x35c   : > { %v3058_v28 = vld [vmem:[#allocation3 + $0x60] sm:$0xff]  ;;  %v2553_v59 = vpop.permute.xlu0 %2552 }
 0x35d   : > { %v2425_v43 = vpop.permute.xlu1 %2424 }
 0x35e   : > { %3280 = vmatmul.mubr.bf16.gmra.mrb[56].mxu1 %v3058_v28 }
 0x35f   : > { %3858 = vmatprep.mubr.msk.bf16.mxu1 %vm175_vm0, %v3061_v60  ;;  %v3067_v60 = vld [vmem:[#allocation3 + $0xa8] sm:$0xff] }
 0x360   : > { %v2171_v41 = vpop.permute.xlu0 %2170 }
 0x361   : > { %v2681_v61 = vpop.permute.xlu1 %2680  ;;  %2208 = vst.msk [vmem:[#allocation3 + $0xa0] sm:$0xff] %vm494_vm3, %v2171_v41 }
 0x364   : > { %v2805_v0 = vpop.permute.xlu0 %2804 }
 0x365   : > { %v2299_v1 = vpop.permute.xlu1 %2298  ;;  %2845 = vst.msk [vmem:[#allocation3 + $0x70] sm:$0xff] %vm1140_vm8, %v2805_v0 }
 0x366   : > { %2336 = vst.msk [vmem:[#allocation3 + $0xa0] sm:$0xff] %vm623_vm4, %v2299_v1 }
 0x368   : > { %v2423_v30 = vpop.permute.xlu0 %2422 }
 0x369   : > { %v2933_v6 = vpop.permute.xlu1 %2932  ;;  %2462 = vst.msk [vmem:[#allocation3 + $0x80] sm:$0xff] %vm752_vm5, %v2423_v30  ;;  %v3069_v30 = vld [vmem:[#allocation3 + $0xb8] sm:$0xff] }
 0x36a   : > { %2973 = vst.msk [vmem:[#allocation3 + $0x70] sm:$0xff] %vm1269_vm9, %v2933_v6 }
 0x36c   : > { %v2679_v12 = vpop.permute.xlu0 %2678 }
 0x36d   : > { %v2551_v18 = vpop.permute.xlu1 %2550 }
 0x36e   : > { %2590 = vst.msk [vmem:[#allocation3 + $0x80] sm:$0xff] %vm881_vm6, %v2551_v18 }
 0x36f   : > { %2718 = vst.msk [vmem:[#allocation3 + $0x80] sm:$0xff] %vm1010_vm7, %v2679_v12 }
 0x370   : > { %2846 = vst.msk [vmem:[#allocation3 + $0x80] sm:$0xff] %vm1140_vm8, %v2807_v33  ;;  %v2297_v4 = vpop.permute.xlu0 %2296 }
 0x371   : > { %2974 = vst.msk [vmem:[#allocation3 + $0x80] sm:$0xff] %vm1269_vm9, %v2935_v40  ;;  %v2169_v13 = vpop.permute.xlu1 %2168  ;;  %v3060_v11 = vld [vmem:[#allocation3 + $0x70] sm:$0xff] }
 0x372   : > { %2207 = vst.msk [vmem:[#allocation3 + $0x90] sm:$0xff] %vm494_vm3, %v2169_v13  ;;  %3288 = vmatmul.mubr.bf16.gmra.mrb[60].mxu1 %v3060_v11 }
 0x373   : > { %2335 = vst.msk [vmem:[#allocation3 + $0x90] sm:$0xff] %vm623_vm4, %v2297_v4  ;;  %3859 = vmatprep.mubr.msk.bf16.mxu1 %vm175_vm0, %v3063_v63 }
 0x374   : > { %2463 = vst.msk [vmem:[#allocation3 + $0x90] sm:$0xff] %vm752_vm5, %v2425_v43  ;;  %v2939_v27 = vpop.permute.xlu0 %2938 }
 0x375   : > { %2591 = vst.msk [vmem:[#allocation3 + $0x90] sm:$0xff] %vm881_vm6, %v2553_v59  ;;  %v2811_v16 = vpop.permute.xlu1 %2810 }
 0x376   : > { %2719 = vst.msk [vmem:[#allocation3 + $0x90] sm:$0xff] %vm1010_vm7, %v2681_v61 }
 0x378   : > { %v3062_v42 = vld [vmem:[#allocation3 + $0x80] sm:$0xff]  ;;  %v2557_v36 = vpop.permute.xlu0 %2556 }
 0x379   : > { %v2429_v44 = vpop.permute.xlu1 %2428 }
 0x37a   : > { %3296 = vmatmul.mubr.bf16.gmra.mrb[64].mxu1 %v3062_v42 }
 0x37b   : > { %3860 = vmatprep.mubr.msk.bf16.mxu1 %vm175_vm0, %v3065_v45 }
 0x37c   : > { %v2175_v34 = vpop.permute.xlu0 %2174 }
 0x37d   : > { %v2685_v49 = vpop.permute.xlu1 %2684  ;;  %2210 = vst.msk [vmem:[#allocation3 + $0xc0] sm:$0xff] %vm494_vm3, %v2175_v34 }
 0x380   : > { %v2809_v53 = vpop.permute.xlu0 %2808 }
 0x381   : > { %v2303_v52 = vpop.permute.xlu1 %2302  ;;  %2847 = vst.msk [vmem:[#allocation3 + $0x90] sm:$0xff] %vm1140_vm8, %v2809_v53  ;;  %v3073_v53 = vld [vmem:[#allocation3 + $0xd8] sm:$0xff] }
 0x382   : > { %2338 = vst.msk [vmem:[#allocation3 + $0xc0] sm:$0xff] %vm623_vm4, %v2303_v52 }
 0x384   : > { %v2427_v57 = vpop.permute.xlu0 %2426 }
 0x385   : > { %v2937_v26 = vpop.permute.xlu1 %2936  ;;  %2464 = vst.msk [vmem:[#allocation3 + $0xa0] sm:$0xff] %vm752_vm5, %v2427_v57 }
 0x386   : > { %2975 = vst.msk [vmem:[#allocation3 + $0x90] sm:$0xff] %vm1269_vm9, %v2937_v26 }
 0x388   : > { %v2683_v33 = vpop.permute.xlu0 %2682 }
 0x389   : > { %v2555_v40 = vpop.permute.xlu1 %2554 }
 0x38a   : > { %2592 = vst.msk [vmem:[#allocation3 + $0xa0] sm:$0xff] %vm881_vm6, %v2555_v40 }
 0x38b   : > { %2720 = vst.msk [vmem:[#allocation3 + $0xa0] sm:$0xff] %vm1010_vm7, %v2683_v33 }
 0x38c   : > { %2848 = vst.msk [vmem:[#allocation3 + $0xa0] sm:$0xff] %vm1140_vm8, %v2811_v16  ;;  %v2301_v28 = vpop.permute.xlu0 %2300 }
 0x38d   : > { %2976 = vst.msk [vmem:[#allocation3 + $0xa0] sm:$0xff] %vm1269_vm9, %v2939_v27  ;;  %v2173_v59 = vpop.permute.xlu1 %2172  ;;  %v3064_v43 = vld [vmem:[#allocation3 + $0x90] sm:$0xff] }
 0x38e   : > { %2209 = vst.msk [vmem:[#allocation3 + $0xb0] sm:$0xff] %vm494_vm3, %v2173_v59  ;;  %3304 = vmatmul.mubr.bf16.gmra.mrb[68].mxu1 %v3064_v43 }
 0x38f   : > { %2337 = vst.msk [vmem:[#allocation3 + $0xb0] sm:$0xff] %vm623_vm4, %v2301_v28  ;;  %3861 = vmatprep.mubr.msk.bf16.mxu1 %vm175_vm0, %v3067_v60  ;;  %v3075_v60 = vld [vmem:[#allocation3 + $0xe8] sm:$0xff] }
 0x390   : > { %2465 = vst.msk [vmem:[#allocation3 + $0xb0] sm:$0xff] %vm752_vm5, %v2429_v44  ;;  %v2943_v61 = vpop.permute.xlu0 %2942 }
 0x391   : > { %2593 = vst.msk [vmem:[#allocation3 + $0xb0] sm:$0xff] %vm881_vm6, %v2557_v36  ;;  %v2815_v41 = vpop.permute.xlu1 %2814  ;;  %v3071_v36 = vld [vmem:[#allocation3 + $0xc8] sm:$0xff] }
 0x392   : > { %2721 = vst.msk [vmem:[#allocation3 + $0xb0] sm:$0xff] %vm1010_vm7, %v2685_v49 }
 0x394   : > { %v3066_v1 = vld [vmem:[#allocation3 + $0xa0] sm:$0xff]  ;;  %v2561_v0 = vpop.permute.xlu0 %2560 }
 0x395   : > { %v2433_v6 = vpop.permute.xlu1 %2432 }
 0x396   : > { %3312 = vmatmul.mubr.bf16.gmra.mrb[72].mxu1 %v3066_v1 }
 0x397   : > { %3862 = vmatprep.mubr.msk.bf16.mxu1 %vm175_vm0, %v3069_v30 }
 0x398   : > { %v2179_v12 = vpop.permute.xlu0 %2178 }
 0x399   : > { %v2689_v18 = vpop.permute.xlu1 %2688  ;;  %2212 = vst.msk [vmem:[#allocation3 + $0xe0] sm:$0xff] %vm494_vm3, %v2179_v12 }
 0x39c   : > { %v2813_v13 = vpop.permute.xlu0 %2812 }
 0x39d   : > { %v2307_v4 = vpop.permute.xlu1 %2306  ;;  %2849 = vst.msk [vmem:[#allocation3 + $0xb0] sm:$0xff] %vm1140_vm8, %v2813_v13 }
 0x39e   : > { %2340 = vst.msk [vmem:[#allocation3 + $0xe0] sm:$0xff] %vm623_vm4, %v2307_v4 }
 0x3a0   : > { %v2431_v63 = vpop.permute.xlu0 %2430 }
 0x3a1   : > { %v2941_v11 = vpop.permute.xlu1 %2940  ;;  %2466 = vst.msk [vmem:[#allocation3 + $0xc0] sm:$0xff] %vm752_vm5, %v2431_v63 }
 0x3a2   : > { %2977 = vst.msk [vmem:[#allocation3 + $0xb0] sm:$0xff] %vm1269_vm9, %v2941_v11 }
 0x3a4   : > { %v2687_v16 = vpop.permute.xlu0 %2686 }
 0x3a5   : > { %v2559_v27 = vpop.permute.xlu1 %2558 }
 0x3a6   : > { %2594 = vst.msk [vmem:[#allocation3 + $0xc0] sm:$0xff] %vm881_vm6, %v2559_v27 }
 0x3a7   : > { %2722 = vst.msk [vmem:[#allocation3 + $0xc0] sm:$0xff] %vm1010_vm7, %v2687_v16 }
 0x3a8   : > { %2850 = vst.msk [vmem:[#allocation3 + $0xc0] sm:$0xff] %vm1140_vm8, %v2815_v41  ;;  %v2305_v55 = vpop.permute.xlu0 %2304 }
 0x3a9   : > { %2978 = vst.msk [vmem:[#allocation3 + $0xc0] sm:$0xff] %vm1269_vm9, %v2943_v61  ;;  %v2177_v3 = vpop.permute.xlu1 %2176  ;;  %v3068_v42 = vld [vmem:[#allocation3 + $0xb0] sm:$0xff] }
 0x3aa   : > { %2211 = vst.msk [vmem:[#allocation3 + $0xd0] sm:$0xff] %vm494_vm3, %v2177_v3  ;;  %3320 = vmatmul.mubr.bf16.gmra.mrb[76].mxu1 %v3068_v42 }
 0x3ab   : > { %2339 = vst.msk [vmem:[#allocation3 + $0xd0] sm:$0xff] %vm623_vm4, %v2305_v55  ;;  %3863 = vmatprep.mubr.msk.bf16.mxu1 %vm175_vm0, %v3071_v36 }
 0x3ac   : > { %2467 = vst.msk [vmem:[#allocation3 + $0xd0] sm:$0xff] %vm752_vm5, %v2433_v6  ;;  %v2947_v44 = vpop.permute.xlu0 %2946  ;;  %v3077_v6 = vld [vmem:[#allocation3 + $0xf8] sm:$0xff] }
 0x3ad   : > { %2595 = vst.msk [vmem:[#allocation3 + $0xd0] sm:$0xff] %vm881_vm6, %v2561_v0  ;;  %v2819_v45 = vpop.permute.xlu1 %2818 }
 0x3ae   : > { %2723 = vst.msk [vmem:[#allocation3 + $0xd0] sm:$0xff] %vm1010_vm7, %v2689_v18 }
 0x3b0   : > { %v3070_v49 = vld [vmem:[#allocation3 + $0xc0] sm:$0xff]  ;;  %v2817_v34 = vpop.permute.xlu0 %2816 }
 0x3b1   : > { %v2437_v52 = vpop.permute.xlu1 %2436  ;;  %2851 = vst.msk [vmem:[#allocation3 + $0xd0] sm:$0xff] %vm1140_vm8, %v2817_v34 }
 0x3b2   : > { %3328 = vmatmul.mubr.bf16.gmra.mrb[80].mxu1 %v3070_v49 }
 0x3b3   : > { %3864 = vmatprep.mubr.msk.bf16.mxu1 %vm175_vm0, %v3073_v53 }
 0x3b4   : > { %v2435_v26 = vpop.permute.xlu0 %2434 }
 0x3b5   : > { %v2945_v57 = vpop.permute.xlu1 %2944  ;;  %2468 = vst.msk [vmem:[#allocation3 + $0xe0] sm:$0xff] %vm752_vm5, %v2435_v26 }
 0x3b6   : > { %2979 = vst.msk [vmem:[#allocation3 + $0xd0] sm:$0xff] %vm1269_vm9, %v2945_v57 }
 0x3b8   : > { %v2691_v40 = vpop.permute.xlu0 %2690 }
 0x3b9   : > { %v2563_v33 = vpop.permute.xlu1 %2562 }
 0x3ba   : > { %2596 = vst.msk [vmem:[#allocation3 + $0xe0] sm:$0xff] %vm881_vm6, %v2563_v33 }
 0x3bb   : > { %2724 = vst.msk [vmem:[#allocation3 + $0xe0] sm:$0xff] %vm1010_vm7, %v2691_v40 }
 0x3bc   : > { %2852 = vst.msk [vmem:[#allocation3 + $0xe0] sm:$0xff] %vm1140_vm8, %v2819_v45  ;;  %v2565_v28 = vpop.permute.xlu0 %2564 }
 0x3bd   : > { %2980 = vst.msk [vmem:[#allocation3 + $0xe0] sm:$0xff] %vm1269_vm9, %v2947_v44  ;;  %v2181_v59 = vpop.permute.xlu1 %2180  ;;  %v3072_v43 = vld [vmem:[#allocation3 + $0xd0] sm:$0xff] }
 0x3be   : > { %2213 = vst.msk [vmem:[#allocation3 + $0xf0] sm:$0xff] %vm494_vm3, %v2181_v59  ;;  %3336 = vmatmul.mubr.bf16.gmra.mrb[84].mxu1 %v3072_v43 }
 0x3bf   : > { %3865 = vmatprep.mubr.msk.bf16.mxu1 %vm175_vm0, %v3075_v60 }
 0x3c0   : > { %v2309_v61 = vpop.permute.xlu0 %2308 }
 0x3c1   : > { %2341 = vst.msk [vmem:[#allocation3 + $0xf0] sm:$0xff] %vm623_vm4, %v2309_v61  ;;  %v2693_v41 = vpop.permute.xlu1 %2692 }
 0x3c2   : > { %2469 = vst.msk [vmem:[#allocation3 + $0xf0] sm:$0xff] %vm752_vm5, %v2437_v52 }
 0x3c3   : > { %2597 = vst.msk [vmem:[#allocation3 + $0xf0] sm:$0xff] %vm881_vm6, %v2565_v28 }
 0x3c4   : > { %2725 = vst.msk [vmem:[#allocation3 + $0xf0] sm:$0xff] %vm1010_vm7, %v2693_v41  ;;  %v2821_v1 = vpop.permute.xlu0 %2820  ;;  %v3074_v0 = vld [vmem:[#allocation3 + $0xe0] sm:$0xff] }
 0x3c5   : > { %2853 = vst.msk [vmem:[#allocation3 + $0xf0] sm:$0xff] %vm1140_vm8, %v2821_v1  ;;  %v2949_v30 = vpop.permute.xlu1 %2948 }
 0x3c6   : > { %3344 = vmatmul.mubr.bf16.gmra.mrb[88].mxu1 %v3074_v0  ;;  %2981 = vst.msk [vmem:[#allocation3 + $0xf0] sm:$0xff] %vm1269_vm9, %v2949_v30 }
 0x3c7   : > { %3866 = vmatprep.mubr.msk.bf16.mxu1 %vm175_vm0, %v3077_v6 }
 0x3cd   : > { %v3076_v18 = vld [vmem:[#allocation3 + $0xf0] sm:$0xff] }
 0x3ce   : > { %3352 = vmatmul.mubr.bf16.gmra.mrb[92].mxu1 %v3076_v18 }
 0x3d8   : > { %v3233_v12 = vpop.f32.mrb[32].mxu1 }
 0x3d9   : > { %v3235_v4 = vpop.f32.mrb[33].mxu1  ;;  %v3360_v11 = vmax.f32 %v3233_v12, 0.0 }
 0x3da   : > { %v3236_v13 = vpop.f32.mrb[34].mxu1 }
 0x3db   : > { %v3361_v63 = vmax.f32 %v3236_v13, 0.0  ;;  %v3238_v27 = vpop.f32.mrb[35].mxu1 }
 0x3dd   : > { %v3392_v16 = vpack.c.bf16 %v3361_v63, %v3360_v11 }
 0x3df   : > { %3956 = vmatprep.mubr.msk.bf16.mxu0 %vm1712_vm11, %v3392_v16 }
 0x3f1   : > { %v3241_v55 = vpop.f32.mrb[36].mxu1 }
 0x3f2   : > { %v3243_v3 = vpop.f32.mrb[37].mxu1  ;;  %v3362_v36 = vmax.f32 %v3241_v55, 0.0 }
 0x3f3   : > { %v3244_v42 = vpop.f32.mrb[38].mxu1 }
 0x3f4   : > { %v3363_v44 = vmax.f32 %v3244_v42, 0.0  ;;  %v3246_v45 = vpop.f32.mrb[39].mxu1 }
 0x3f6   : > { %v3393_v49 = vpack.c.bf16 %v3363_v44, %v3362_v36 }
 0x3f8   : > { %3957 = vmatmul.mubr.msk.bf16.vlgmr.msra.gmra.mrb[64].mxu0 %vm1712_vm11, %v3393_v49 }
 0x3f9   : > { %v3249_v34 = vpop.f32.mrb[40].mxu1 }
 0x3fa   : > { %v3251_v52 = vpop.f32.mrb[41].mxu1  ;;  %v3364_v26 = vmax.f32 %v3249_v34, 0.0 }
 0x3fb   : > { %v3252_v53 = vpop.f32.mrb[42].mxu1 }
 0x3fc   : > { %v3365_v57 = vmax.f32 %v3252_v53, 0.0  ;;  %v3254_v40 = vpop.f32.mrb[43].mxu1 }
 0x3fe   : > { %v3394_v33 = vpack.c.bf16 %v3365_v57, %v3364_v26 }
 0x400   : > { %3960 = vmatprep.mubr.msk.bf16.mxu0 %vm1712_vm11, %v3394_v33 }
 0x40e   : > { %v3257_v28 = vpop.f32.mrb[44].mxu1 }
 0x40f   : > { %v3259_v59 = vpop.f32.mrb[45].mxu1  ;;  %v3366_v60 = vmax.f32 %v3257_v28, 0.0 }
 0x410   : > { %v3260_v43 = vpop.f32.mrb[46].mxu1 }
 0x411   : > { %v3367_v61 = vmax.f32 %v3260_v43, 0.0  ;;  %v3262_v41 = vpop.f32.mrb[47].mxu1 }
 0x413   : > { %v3395_v1 = vpack.c.bf16 %v3367_v61, %v3366_v60 }
 0x415   : > { %3961 = vmatmul.mubr.msk.bf16.gmra.mrb[68].mxu0 %vm1712_vm11, %v3395_v1 }
 0x416   : > { %v3265_v0 = vpop.f32.mrb[48].mxu1 }
 0x417   : > { %v3267_v6 = vpop.f32.mrb[49].mxu1  ;;  %v3368_v18 = vmax.f32 %v3265_v0, 0.0 }
 0x418   : > { %v3268_v30 = vpop.f32.mrb[50].mxu1 }
 0x419   : > { %v3369_v12 = vmax.f32 %v3268_v30, 0.0  ;;  %v3270_v4 = vpop.f32.mrb[51].mxu1 }
 0x41b   : > { %v3396_v13 = vpack.c.bf16 %v3369_v12, %v3368_v18 }
 0x41d   : > { %3964 = vmatprep.mubr.msk.bf16.mxu0 %vm1712_vm11, %v3396_v13 }
 0x429   : > { %v3273_v11 = vpop.f32.mrb[52].mxu1 }
 0x42a   : > { %v3275_v63 = vpop.f32.mrb[53].mxu1  ;;  %v3370_v16 = vmax.f32 %v3273_v11, 0.0 }
 0x42b   : > { %v3276_v27 = vpop.f32.mrb[54].mxu1 }
 0x42c   : > { %v3371_v55 = vmax.f32 %v3276_v27, 0.0  ;;  %v3278_v3 = vpop.f32.mrb[55].mxu1 }
 0x42e   : > { %v3397_v42 = vpack.c.bf16 %v3371_v55, %v3370_v16 }
 0x430   : > { %3965 = vmatmul.mubr.msk.bf16.gmra.mrb[72].mxu0 %vm1712_vm11, %v3397_v42 }
 0x431   : > { %v3281_v36 = vpop.f32.mrb[56].mxu1 }
 0x432   : > { %v3283_v44 = vpop.f32.mrb[57].mxu1  ;;  %v3372_v49 = vmax.f32 %v3281_v36, 0.0 }
 0x433   : > { %v3284_v45 = vpop.f32.mrb[58].mxu1 }
 0x434   : > { %v3373_v34 = vmax.f32 %v3284_v45, 0.0  ;;  %v3286_v52 = vpop.f32.mrb[59].mxu1 }
 0x436   : > { %v3398_v53 = vpack.c.bf16 %v3373_v34, %v3372_v49 }
 0x438   : > { %3968 = vmatprep.mubr.msk.bf16.mxu0 %vm1712_vm11, %v3398_v53 }
 0x445   : > { %v3289_v26 = vpop.f32.mrb[60].mxu1 }
 0x446   : > { %v3291_v57 = vpop.f32.mrb[61].mxu1  ;;  %v3374_v33 = vmax.f32 %v3289_v26, 0.0 }
 0x447   : > { %v3292_v40 = vpop.f32.mrb[62].mxu1 }
 0x448   : > { %v3375_v28 = vmax.f32 %v3292_v40, 0.0  ;;  %v3294_v59 = vpop.f32.mrb[63].mxu1 }
 0x44a   : > { %v3399_v43 = vpack.c.bf16 %v3375_v28, %v3374_v33 }
 0x44c   : > { %3969 = vmatmul.mubr.msk.bf16.gmra.mrb[76].mxu0 %vm1712_vm11, %v3399_v43 }
 0x44d   : > { %v3297_v60 = vpop.f32.mrb[64].mxu1 }
 0x44e   : > { %v3299_v61 = vpop.f32.mrb[65].mxu1  ;;  %v3376_v1 = vmax.f32 %v3297_v60, 0.0 }
 0x44f   : > { %v3300_v41 = vpop.f32.mrb[66].mxu1 }
 0x450   : > { %v3377_v0 = vmax.f32 %v3300_v41, 0.0  ;;  %v3302_v6 = vpop.f32.mrb[67].mxu1 }
 0x452   : > { %v3400_v30 = vpack.c.bf16 %v3377_v0, %v3376_v1 }
 0x454   : > { %3972 = vmatprep.mubr.msk.bf16.mxu0 %vm1712_vm11, %v3400_v30 }
 0x461   : > { %v3305_v18 = vpop.f32.mrb[68].mxu1 }
 0x462   : > { %v3307_v12 = vpop.f32.mrb[69].mxu1  ;;  %v3378_v13 = vmax.f32 %v3305_v18, 0.0 }
 0x463   : > { %v3308_v4 = vpop.f32.mrb[70].mxu1 }
 0x464   : > { %v3379_v11 = vmax.f32 %v3308_v4, 0.0  ;;  %v3310_v63 = vpop.f32.mrb[71].mxu1 }
 0x466   : > { %v3401_v27 = vpack.c.bf16 %v3379_v11, %v3378_v13 }
 0x468   : > { %3973 = vmatmul.mubr.msk.bf16.gmra.mrb[80].mxu0 %vm1712_vm11, %v3401_v27 }
 0x469   : > { %v3313_v16 = vpop.f32.mrb[72].mxu1 }
 0x46a   : > { %v3315_v55 = vpop.f32.mrb[73].mxu1  ;;  %v3380_v42 = vmax.f32 %v3313_v16, 0.0 }
 0x46b   : > { %v3316_v3 = vpop.f32.mrb[74].mxu1 }
 0x46c   : > { %v3381_v36 = vmax.f32 %v3316_v3, 0.0  ;;  %v3318_v44 = vpop.f32.mrb[75].mxu1 }
 0x46e   : > { %v3402_v45 = vpack.c.bf16 %v3381_v36, %v3380_v42 }
 0x470   : > { %3976 = vmatprep.mubr.msk.bf16.mxu0 %vm1712_vm11, %v3402_v45 }
 0x47d   : > { %v3321_v49 = vpop.f32.mrb[76].mxu1 }
 0x47e   : > { %v3323_v34 = vpop.f32.mrb[77].mxu1  ;;  %v3382_v53 = vmax.f32 %v3321_v49, 0.0 }
 0x47f   : > { %v3324_v52 = vpop.f32.mrb[78].mxu1 }
 0x480   : > { %v3383_v26 = vmax.f32 %v3324_v52, 0.0  ;;  %v3326_v57 = vpop.f32.mrb[79].mxu1 }
 0x482   : > { %v3403_v40 = vpack.c.bf16 %v3383_v26, %v3382_v53 }
 0x484   : > { %3977 = vmatmul.mubr.msk.bf16.gmra.mrb[84].mxu0 %vm1712_vm11, %v3403_v40 }
 0x485   : > { %v3329_v33 = vpop.f32.mrb[80].mxu1 }
 0x486   : > { %v3331_v28 = vpop.f32.mrb[81].mxu1  ;;  %v3384_v43 = vmax.f32 %v3329_v33, 0.0 }
 0x487   : > { %v3332_v59 = vpop.f32.mrb[82].mxu1 }
 0x488   : > { %v3385_v60 = vmax.f32 %v3332_v59, 0.0  ;;  %v3334_v61 = vpop.f32.mrb[83].mxu1 }
 0x48a   : > { %v3404_v41 = vpack.c.bf16 %v3385_v60, %v3384_v43 }
 0x48c   : > { %3980 = vmatprep.mubr.msk.bf16.mxu1 %vm1712_vm11, %v3404_v41 }
 0x491   : > { %v3337_v1 = vpop.f32.mrb[84].mxu1 }
 0x492   : > { %v3339_v0 = vpop.f32.mrb[85].mxu1  ;;  %v3386_v30 = vmax.f32 %v3337_v1, 0.0 }
 0x493   : > { %v3340_v6 = vpop.f32.mrb[86].mxu1 }
 0x494   : > { %v3387_v18 = vmax.f32 %v3340_v6, 0.0  ;;  %v3342_v12 = vpop.f32.mrb[87].mxu1 }
 0x496   : > { %v3405_v4 = vpack.c.bf16 %v3387_v18, %v3386_v30 }
 0x498   : > { %3981 = vmatmul.mubr.msk.bf16.vlgmr.msra.gmra.mrb[96].mxu1 %vm1712_vm11, %v3405_v4 }
 0x499   : > { %v3345_v13 = vpop.f32.mrb[88].mxu1 }
 0x49a   : > { %v3347_v11 = vpop.f32.mrb[89].mxu1  ;;  %v3388_v27 = vmax.f32 %v3345_v13, 0.0 }
 0x49b   : > { %v3348_v63 = vpop.f32.mrb[90].mxu1 }
 0x49c   : > { %v3389_v16 = vmax.f32 %v3348_v63, 0.0  ;;  %v3350_v55 = vpop.f32.mrb[91].mxu1 }
 0x49e   : > { %v3406_v3 = vpack.c.bf16 %v3389_v16, %v3388_v27 }
 0x4a0   : > { %3984 = vmatprep.mubr.msk.bf16.mxu1 %vm1712_vm11, %v3406_v3 }
 0x4a1   : > { %v3353_v42 = vpop.f32.mrb[92].mxu1 }
 0x4a2   : > { %v3355_v36 = vpop.f32.mrb[93].mxu1  ;;  %v3390_v45 = vmax.f32 %v3353_v42, 0.0 }
 0x4a3   : > { %v3356_v44 = vpop.f32.mrb[94].mxu1 }
 0x4a4   : > { %v3391_v49 = vmax.f32 %v3356_v44, 0.0  ;;  %v3358_v34 = vpop.f32.mrb[95].mxu1 }
 0x4a6   : > { %v3407_v52 = vpack.c.bf16 %v3391_v49, %v3390_v45 }
 0x4a8   : > { %3985 = vmatmul.mubr.msk.bf16.gmra.mrb[100].mxu1 %vm1712_vm11, %v3407_v52 }
 0x4cb   : > { %v3958_v53 = vpop.f32.mrb[64].mxu0 }
 0x4cc   : > { %v3624_v26 = vadd.f32 %v3958_v53, %v4696_v23  ;;  %v3495_v57 = vpop.f32.mrb[65].mxu0 }
 0x4cd   : > { %v3622_v40 = vadd.f32 %v3495_v57, %v4700_v46  ;;  %v3959_v33 = vpop.f32.mrb[66].mxu0 }
 0x4ce   : > { %v3656_v28 = vmax.f32 %v3624_v26, 0.0  ;;  %v3625_v59 = vadd.f32 %v3959_v33, %v4705_v50  ;;  %v3498_v43 = vpop.f32.mrb[67].mxu0 }
 0x4cf   : > { %v3654_v60 = vmax.f32 %v3622_v40, 0.0  ;;  %v3623_v23 = vadd.f32 %v3498_v43, %v4712_v56 }
 0x4d0   : > { %3688 = vst.msk [vmem:[%s5202_s7 + $0x10] sm:$0xff] %vm175_vm0, %v3656_v28  ;;  %v3657_v61 = vmax.f32 %v3625_v59, 0.0 }
 0x4d1   : > { %3686 = vst.msk [vmem:[%s5202_s7] sm:$0xff] %vm175_vm0, %v3654_v60  ;;  %v3655_v41 = vmax.f32 %v3623_v23, 0.0 }
 0x4d2   : > { %3689 = vst.msk [vmem:[%s5202_s7 + $0x18] sm:$0xff] %vm175_vm0, %v3657_v61 }
 0x4d3   : > { %3687 = vst.msk [vmem:[%s5202_s7 + $0x8] sm:$0xff] %vm175_vm0, %v3655_v41 }
 0x4e8   : > { %v3962_v46 = vpop.f32.mrb[68].mxu0 }
 0x4e9   : > { %v3628_v50 = vadd.f32 %v3962_v46, %v4755_v14  ;;  %v3511_v1 = vpop.f32.mrb[69].mxu0 }
 0x4ea   : > { %v3626_v56 = vadd.f32 %v3511_v1, %v4760_v2  ;;  %v3963_v0 = vpop.f32.mrb[70].mxu0 }
 0x4eb   : > { %v3660_v6 = vmax.f32 %v3628_v50, 0.0  ;;  %v3629_v30 = vadd.f32 %v3963_v0, %v4764_v25  ;;  %v3514_v18 = vpop.f32.mrb[71].mxu0 }
 0x4ec   : > { %v3658_v12 = vmax.f32 %v3626_v56, 0.0  ;;  %v3627_v4 = vadd.f32 %v3514_v18, %v4768_v15 }
 0x4ed   : > { %3692 = vst.msk [vmem:[%s5202_s7 + $0x30] sm:$0xff] %vm175_vm0, %v3660_v6  ;;  %v3661_v13 = vmax.f32 %v3629_v30, 0.0 }
 0x4ee   : > { %3690 = vst.msk [vmem:[%s5202_s7 + $0x20] sm:$0xff] %vm175_vm0, %v3658_v12  ;;  %v3659_v11 = vmax.f32 %v3627_v4, 0.0 }
 0x4ef   : > { %3693 = vst.msk [vmem:[%s5202_s7 + $0x38] sm:$0xff] %vm175_vm0, %v3661_v13 }
 0x4f0   : > { %3691 = vst.msk [vmem:[%s5202_s7 + $0x28] sm:$0xff] %vm175_vm0, %v3659_v11 }
 0x503   : > { %v3966_v14 = vpop.f32.mrb[72].mxu0 }
 0x504   : > { %v3632_v2 = vadd.f32 %v3966_v14, %v4791_v39  ;;  %v3527_v25 = vpop.f32.mrb[73].mxu0 }
 0x505   : > { %v3630_v15 = vadd.f32 %v3527_v25, %v4796_v24  ;;  %v3967_v63 = vpop.f32.mrb[74].mxu0 }
 0x506   : > { %v3664_v27 = vmax.f32 %v3632_v2, 0.0  ;;  %v3633_v16 = vadd.f32 %v3967_v63, %v4800_v62  ;;  %v3530_v55 = vpop.f32.mrb[75].mxu0 }
 0x507   : > { %v3662_v3 = vmax.f32 %v3630_v15, 0.0  ;;  %v3631_v42 = vadd.f32 %v3530_v55, %v4804_v47 }
 0x508   : > { %3696 = vst.msk [vmem:[%s5202_s7 + $0x50] sm:$0xff] %vm175_vm0, %v3664_v27  ;;  %v3665_v36 = vmax.f32 %v3633_v16, 0.0 }
 0x509   : > { %3694 = vst.msk [vmem:[%s5202_s7 + $0x40] sm:$0xff] %vm175_vm0, %v3662_v3  ;;  %v3663_v44 = vmax.f32 %v3631_v42, 0.0 }
 0x50a   : > { %3697 = vst.msk [vmem:[%s5202_s7 + $0x58] sm:$0xff] %vm175_vm0, %v3665_v36 }
 0x50b   : > { %3695 = vst.msk [vmem:[%s5202_s7 + $0x48] sm:$0xff] %vm175_vm0, %v3663_v44 }
 0x51f   : > { %v3970_v39 = vpop.f32.mrb[76].mxu0 }
 0x520   : > { %v3636_v24 = vadd.f32 %v3970_v39, %v4829_v35  ;;  %v3543_v62 = vpop.f32.mrb[77].mxu0 }
 0x521   : > { %v3634_v47 = vadd.f32 %v3543_v62, %v4834_v38  ;;  %v3971_v45 = vpop.f32.mrb[78].mxu0 }
 0x522   : > { %v3668_v49 = vmax.f32 %v3636_v24, 0.0  ;;  %v3637_v34 = vadd.f32 %v3971_v45, %v4838_v21  ;;  %v3546_v52 = vpop.f32.mrb[79].mxu0 }
 0x523   : > { %v3666_v53 = vmax.f32 %v3634_v47, 0.0  ;;  %v3635_v26 = vadd.f32 %v3546_v52, %v4842_v17 }
 0x524   : > { %3700 = vst.msk [vmem:[%s5202_s7 + $0x70] sm:$0xff] %vm175_vm0, %v3668_v49  ;;  %v3669_v57 = vmax.f32 %v3637_v34, 0.0 }
 0x525   : > { %3698 = vst.msk [vmem:[%s5202_s7 + $0x60] sm:$0xff] %vm175_vm0, %v3666_v53  ;;  %v3667_v40 = vmax.f32 %v3635_v26, 0.0 }
 0x526   : > { %3701 = vst.msk [vmem:[%s5202_s7 + $0x78] sm:$0xff] %vm175_vm0, %v3669_v57 }
 0x527   : > { %3699 = vst.msk [vmem:[%s5202_s7 + $0x68] sm:$0xff] %vm175_vm0, %v3667_v40 }
 0x53b   : > { %v3974_v35 = vpop.f32.mrb[80].mxu0 }
 0x53c   : > { %v3640_v38 = vadd.f32 %v3974_v35, %v4867_v54  ;;  %v3559_v21 = vpop.f32.mrb[81].mxu0 }
 0x53d   : > { %v3638_v17 = vadd.f32 %v3559_v21, %v4872_v19  ;;  %v3975_v33 = vpop.f32.mrb[82].mxu0 }
 0x53e   : > { %v3672_v28 = vmax.f32 %v3640_v38, 0.0  ;;  %v3641_v59 = vadd.f32 %v3975_v33, %v4876_v31  ;;  %v3562_v43 = vpop.f32.mrb[83].mxu0 }
 0x53f   : > { %v3670_v60 = vmax.f32 %v3638_v17, 0.0  ;;  %v3639_v23 = vadd.f32 %v3562_v43, %v4880_v37 }
 0x540   : > { %3704 = vst.msk [vmem:[%s5202_s7 + $0x90] sm:$0xff] %vm175_vm0, %v3672_v28  ;;  %v3673_v61 = vmax.f32 %v3641_v59, 0.0 }
 0x541   : > { %3702 = vst.msk [vmem:[%s5202_s7 + $0x80] sm:$0xff] %vm175_vm0, %v3670_v60  ;;  %v3671_v41 = vmax.f32 %v3639_v23, 0.0 }
 0x542   : > { %3705 = vst.msk [vmem:[%s5202_s7 + $0x98] sm:$0xff] %vm175_vm0, %v3673_v61 }
 0x543   : > { %3703 = vst.msk [vmem:[%s5202_s7 + $0x88] sm:$0xff] %vm175_vm0, %v3671_v41 }
 0x557   : > { %v3978_v54 = vpop.f32.mrb[84].mxu0 }
 0x558   : > { %v3644_v19 = vadd.f32 %v3978_v54, %v4906_v5  ;;  %v3575_v31 = vpop.f32.mrb[85].mxu0 }
 0x559   : > { %v3642_v37 = vadd.f32 %v3575_v31, %v4911_v8  ;;  %v3979_v46 = vpop.f32.mrb[86].mxu0 }
 0x55a   : > { %v3676_v50 = vmax.f32 %v3644_v19, 0.0  ;;  %v3645_v1 = vadd.f32 %v3979_v46, %v4915_v7  ;;  %v3578_v56 = vpop.f32.mrb[87].mxu0 }
 0x55b   : > { %v3674_v0 = vmax.f32 %v3642_v37, 0.0  ;;  %v3643_v6 = vadd.f32 %v3578_v56, %v4923_v29 }
 0x55c   : > { %3708 = vst.msk [vmem:[%s5202_s7 + $0xb0] sm:$0xff] %vm175_vm0, %v3676_v50  ;;  %v3677_v30 = vmax.f32 %v3645_v1, 0.0 }
 0x55d   : > { %3706 = vst.msk [vmem:[%s5202_s7 + $0xa0] sm:$0xff] %vm175_vm0, %v3674_v0  ;;  %v3675_v18 = vmax.f32 %v3643_v6, 0.0 }
 0x55e   : > { %3709 = vst.msk [vmem:[%s5202_s7 + $0xb8] sm:$0xff] %vm175_vm0, %v3677_v30 }
 0x55f   : > { %3707 = vst.msk [vmem:[%s5202_s7 + $0xa8] sm:$0xff] %vm175_vm0, %v3675_v18 }
 0x56b   : > { %v3982_v5 = vpop.f32.mrb[96].mxu1 }
 0x56c   : > { %v3648_v8 = vadd.f32 %v3982_v5, %v4965_v10  ;;  %v3591_v7 = vpop.f32.mrb[97].mxu1 }
 0x56d   : > { %v3646_v29 = vadd.f32 %v3591_v7, %v4970_v22  ;;  %v3983_v12 = vpop.f32.mrb[98].mxu1 }
 0x56e   : > { %v3680_v4 = vmax.f32 %v3648_v8, 0.0  ;;  %v3649_v13 = vadd.f32 %v3983_v12, %v4974_v32  ;;  %v3594_v11 = vpop.f32.mrb[99].mxu1 }
 0x56f   : > { %v3678_v14 = vmax.f32 %v3646_v29, 0.0  ;;  %v3647_v2 = vadd.f32 %v3594_v11, %v4982_v48 }
 0x570   : > { %3712 = vst.msk [vmem:[%s5202_s7 + $0xd0] sm:$0xff] %vm175_vm0, %v3680_v4  ;;  %v3681_v25 = vmax.f32 %v3649_v13, 0.0 }
 0x571   : > { %3710 = vst.msk [vmem:[%s5202_s7 + $0xc0] sm:$0xff] %vm175_vm0, %v3678_v14  ;;  %v3679_v15 = vmax.f32 %v3647_v2, 0.0 }
 0x572   : > { %3713 = vst.msk [vmem:[%s5202_s7 + $0xd8] sm:$0xff] %vm175_vm0, %v3681_v25 }
 0x573   : > { %3711 = vst.msk [vmem:[%s5202_s7 + $0xc8] sm:$0xff] %vm175_vm0, %v3679_v15 }
 0x57b   : > { %v3986_v10 = vpop.f32.mrb[100].mxu1 }
 0x57c   : > { %v3652_v22 = vadd.f32 %v3986_v10, %v5031_v20  ;;  %v3607_v32 = vpop.f32.mrb[101].mxu1 }
 0x57d   : > { %v3650_v48 = vadd.f32 %v3607_v32, %v5036_v51  ;;  %v3987_v63 = vpop.f32.mrb[102].mxu1 }
 0x57e   : > { %v3684_v27 = vmax.f32 %v3652_v22, 0.0  ;;  %v3653_v16 = vadd.f32 %v3987_v63, %v5040_v58  ;;  %v3610_v55 = vpop.f32.mrb[103].mxu1 }
 0x57f   : > { %v3682_v3 = vmax.f32 %v3650_v48, 0.0  ;;  %v3651_v42 = vadd.f32 %v3610_v55, %v5048_v9 }
 0x580   : > { %3716 = vst.msk [vmem:[%s5202_s7 + $0xf0] sm:$0xff] %vm175_vm0, %v3684_v27  ;;  %v3685_v36 = vmax.f32 %v3653_v16, 0.0 }
 0x581   : > { %3714 = vst.msk [vmem:[%s5202_s7 + $0xe0] sm:$0xff] %vm175_vm0, %v3682_v3  ;;  %v3683_v44 = vmax.f32 %v3651_v42, 0.0 }
 0x582   : > { %3717 = vst.msk [vmem:[%s5202_s7 + $0xf8] sm:$0xff] %vm175_vm0, %v3685_v36 }
 0x583   : > { %3715 = vst.msk [vmem:[%s5202_s7 + $0xe8] sm:$0xff] %vm175_vm0, %v3683_v44 }
 0x584 PF: > { %s13_s12 = sadd.s32 1, %s4066_s12  }
 0x585   : > { %p10_p4 = scmp.ge.s32.totalorder %s13_s12, 4  }
 0x587   :  { %12 = sbr.rel (!%p10_p4) target bundleno = 1 (0x1), region = 67 }

</bundles_post_ra>
